<compile_context>
chip_gen: v7x
topology: tpu7x:2x2x1
jax: 0.10.0
libtpu: 0.0.40
codegen_flags: <defaults>
</compile_context>

<pallas_src>
import functools

import numpy as np
import jax
import jax.numpy as jnp
from jax import lax
from jax.experimental import pallas as pl
from jax.experimental.pallas import tpu as pltpu


# ----------------------------------------------------------------------------
# In-kernel building blocks (channel-major (C, H*W) bf16 values, one image)
# ----------------------------------------------------------------------------
def _col_keep_masks(hw, w):
    """(1, hw) bool masks over flattened p = i*w + j: keep_l = (j != 0),
    keep_r = (j != w-1).  Built once per resolution level (hoisted)."""
    col = lax.broadcasted_iota(jnp.int32, (1, hw), 1) & (w - 1)
    return col != 0, col != (w - 1)


def _conv3x3_cm(x, w_ref, b_ref, keep_l, keep_r, w, *, relu=True):
    """SAME 3x3 conv on a channel-major (Cin, h*w) bf16 map.

    w_ref : (9, Cout, Cin) bf16 ref, tap order t = dy*3 + dx
    b_ref : (Cout, 1) f32 ref
    Vertical (row) padding comes from a (w+1)-wide zero pad on both lane
    ends; horizontal wrap of the left/right taps is killed by keep_l/keep_r.
    """
    cin, hw = x.shape
    cout = w_ref.shape[1]
    pad = jnp.zeros((cin, w + 1), x.dtype)
    xp = jnp.concatenate([pad, x, pad], axis=1)            # (Cin, hw + 2w + 2)

    acc = jnp.zeros((cout, hw), jnp.float32)
    for dy in range(3):
        for dx in range(3):
            base = dy * w + dx
            xt = xp[:, base:base + hw]                     # shifted tap, (Cin, hw)
            if dx == 0:
                xt = jnp.where(keep_l, xt, 0)
            elif dx == 2:
                xt = jnp.where(keep_r, xt, 0)
            acc = acc + jnp.dot(w_ref[dy * 3 + dx], xt,
                                preferred_element_type=jnp.float32)
    acc = acc + b_ref[...]
    if relu:
        acc = jnp.maximum(acc, 0.0)
    return acc.astype(jnp.bfloat16)


def _maxpool2_cm(x, w, sel_ref):
    """2x2 max pool (stride 2) on a (C, h*w) map.

    max over the 4 window taps (lane-shifted views), then an exact 0/1
    selection matmul picks the even-row/even-col positions -> (C, h*w/4).
    """
    c, hw = x.shape
    xp = jnp.concatenate([x, jnp.zeros((c, w + 1), x.dtype)], axis=1)
    m = jnp.maximum(jnp.maximum(xp[:, 0:hw], xp[:, 1:hw + 1]),
                    jnp.maximum(xp[:, w:w + hw], xp[:, w + 1:w + 1 + hw]))
    return jnp.dot(m, sel_ref[...],
                   preferred_element_type=jnp.float32).astype(jnp.bfloat16)


def _upsample2_cm(x, up_ref):
    """Nearest-neighbour 2x upsample via an exact 0/1 duplication matmul."""
    return jnp.dot(x, up_ref[...],
                   preferred_element_type=jnp.float32).astype(jnp.bfloat16)


# ----------------------------------------------------------------------------
# Whole-UNet fused kernel: one batch element per grid step
# ----------------------------------------------------------------------------
def _unet_kernel(x_ref, sel1, sel2, up1, up2,
                 w_e1a, b_e1a, w_e1b, b_e1b,
                 w_e2a, b_e2a, w_e2b, b_e2b,
                 w_e3, b_e3, w_d2, b_d2, w_d1, b_d1,
                 w_out, b_out, o_ref, *, H, W):
    x = x_ref[0].astype(jnp.bfloat16)                      # (Cin, H*W)

    # Boundary masks, one pair per resolution level (hoisted out of the convs).
    kl0, kr0 = _col_keep_masks(H * W, W)
    kl1, kr1 = _col_keep_masks((H // 2) * (W // 2), W // 2)
    kl2, kr2 = _col_keep_masks((H // 4) * (W // 4), W // 4)

    # ---- encoder ----
    x1 = _conv3x3_cm(_conv3x3_cm(x, w_e1a, b_e1a, kl0, kr0, W),
                     w_e1b, b_e1b, kl0, kr0, W)            # (8,  HW)
    p1 = _maxpool2_cm(x1, W, sel1)                         # (8,  HW/4)
    x2 = _conv3x3_cm(_conv3x3_cm(p1, w_e2a, b_e2a, kl1, kr1, W // 2),
                     w_e2b, b_e2b, kl1, kr1, W // 2)       # (16, HW/4)
    p2 = _maxpool2_cm(x2, W // 2, sel2)                    # (16, HW/16)
    x3 = _conv3x3_cm(p2, w_e3, b_e3, kl2, kr2, W // 4)     # (32, HW/16)

    # ---- decoder: two UpConcateBlocks (Up -> Concat -> Block) ----
    u2 = jnp.concatenate([_upsample2_cm(x3, up1), x2], axis=0)   # (48, HW/4)
    z2 = _conv3x3_cm(u2, w_d2, b_d2, kl1, kr1, W // 2)           # (16, HW/4)
    u1 = jnp.concatenate([_upsample2_cm(z2, up2), x1], axis=0)   # (24, HW)
    z1 = _conv3x3_cm(u1, w_d1, b_d1, kl0, kr0, W)                # (8,  HW)

    # ---- fused final 1x1 conv epilogue (lane-dense (out_ch, HW) store) ----
    y = jnp.dot(w_out[...], z1, preferred_element_type=jnp.float32) + b_out[...]
    o_ref[0] = y.astype(o_ref.dtype)


# ----------------------------------------------------------------------------
# Host-side parameter packing / constant shuffle matrices
# ----------------------------------------------------------------------------
def _conv3x3_params(key, cin, cout):
    """He-init 3x3 conv packed as per-tap (Cout, Cin) bf16 slabs, bias (Cout,1)."""
    k_w, k_b = jax.random.split(key)
    fan_in = 9 * cin
    w = jax.random.normal(k_w, (3, 3, cin, cout), jnp.float32) * (2.0 / fan_in) ** 0.5
    b = 0.01 * jax.random.normal(k_b, (cout,), jnp.float32)
    w_taps = jnp.transpose(w, (0, 1, 3, 2)).reshape(9, cout, cin).astype(jnp.bfloat16)
    return w_taps, b.reshape(cout, 1)


def _conv1x1_params(key, cin, cout):
    k_w, k_b = jax.random.split(key)
    w = jax.random.normal(k_w, (cin, cout), jnp.float32) * (2.0 / cin) ** 0.5
    b = 0.01 * jax.random.normal(k_b, (cout,), jnp.float32)
    return w.T.astype(jnp.bfloat16), b.reshape(cout, 1)


def _pool_select_matrix(H, W):
    """(HW, HW/4) 0/1 matrix selecting the even-row/even-col window anchors."""
    S = np.zeros((H * W, (H // 2) * (W // 2)), np.float32)
    for i in range(H // 2):
        for j in range(W // 2):
            S[(2 * i) * W + (2 * j), i * (W // 2) + j] = 1.0
    return jnp.asarray(S, dtype=jnp.bfloat16)


def _upsample_matrix(h, w):
    """(hw, 4hw) 0/1 matrix duplicating each pixel into its 2x2 output block."""
    U = np.zeros((h * w, (2 * h) * (2 * w)), np.float32)
    for i in range(2 * h):
        for j in range(2 * w):
            U[(i // 2) * w + (j // 2), i * (2 * w) + j] = 1.0
    return jnp.asarray(U, dtype=jnp.bfloat16)


class UNetPallas:
    """UNet(encoder, decoder with UpConcateBlocks); whole forward in one kernel."""

    def __init__(self, in_ch=4, base=8, out_ch=2, key=jax.random.PRNGKey(42)):
        ks = jax.random.split(key, 8)
        self.params = (
            _conv3x3_params(ks[0], in_ch, base)
            + _conv3x3_params(ks[1], base, base)
            + _conv3x3_params(ks[2], base, base * 2)
            + _conv3x3_params(ks[3], base * 2, base * 2)
            + _conv3x3_params(ks[4], base * 2, base * 4)
            + _conv3x3_params(ks[5], base * 4 + base * 2, base * 2)   # d2 (48->16)
            + _conv3x3_params(ks[6], base * 2 + base, base)           # d1 (24->8)
            + _conv1x1_params(ks[7], base, out_ch)
        )
        self.out_ch = out_ch

    def __call__(self, x_nchw):
        N, Cin, H, W = x_nchw.shape
        assert H % 4 == 0 and W % 4 == 0
        # W a power of two => W/2, W/4 are powers of two as well (mask arithmetic).
        assert (W & (W - 1)) == 0 and W >= 8, "W must be a power of two >= 8"
        hw = H * W

        x = x_nchw.astype(jnp.float32).reshape(N, Cin, hw)   # NCHW -> (N,C,HW): free

        # Exact 0/1 shuffle matrices (pool selection / nearest upsample), resident.
        sel1 = _pool_select_matrix(H, W)                     # (HW,    HW/4)
        sel2 = _pool_select_matrix(H // 2, W // 2)           # (HW/4,  HW/16)
        up1 = _upsample_matrix(H // 4, W // 4)               # (HW/16, HW/4)
        up2 = _upsample_matrix(H // 2, W // 2)               # (HW/4,  HW)
        resident = (sel1, sel2, up1, up2) + self.params

        def _resident_spec(a):
            nd = a.ndim
            return pl.BlockSpec(a.shape, lambda n, _nd=nd: (0,) * _nd)

        out = pl.pallas_call(
            functools.partial(_unet_kernel, H=H, W=W),
            out_shape=jax.ShapeDtypeStruct((N, self.out_ch, hw), jnp.float32),
            grid_spec=pltpu.PrefetchScalarGridSpec(
                num_scalar_prefetch=0,
                grid=(N,),                                   # one image per step
                in_specs=[pl.BlockSpec((1, Cin, hw), lambda n: (n, 0, 0))]
                         + [_resident_spec(a) for a in resident],
                out_specs=pl.BlockSpec((1, self.out_ch, hw), lambda n: (n, 0, 0)),
            ),
            compiler_params=pltpu.CompilerParams(
                dimension_semantics=("parallel",),           # batch across v7x TCs
                vmem_limit_bytes=32 * 1024 * 1024,           # resident ~2 MiB here
            ),
        )(x, *resident)
        return out.reshape(N, self.out_ch, H, W)             # (N,C,HW) -> NCHW: free


# ----------------------------------------------------------------------------
# Pure-JAX reference (same bf16-cast weights) for a correctness sanity check
# ----------------------------------------------------------------------------
def _reference_forward(x_nchw, params):
    (w_e1a, b_e1a, w_e1b, b_e1b, w_e2a, b_e2a, w_e2b, b_e2b,
     w_e3, b_e3, w_d2, b_d2, w_d1, b_d1, w_out, b_out) = params

    def unpack3(w_taps):                       # (9,Cout,Cin) -> (3,3,Cin,Cout) f32
        w = w_taps.astype(jnp.float32)
        cout, cin = w.shape[1], w.shape[2]
        return jnp.transpose(w.reshape(3, 3, cout, cin), (0, 1, 3, 2))

    def conv3(x, w_taps, b):
        y = lax.conv_general_dilated(
            x, unpack3(w_taps), (1, 1), "SAME",
            dimension_numbers=("NHWC", "HWIO", "NHWC"),
            precision=lax.Precision.HIGHEST)
        return jnp.maximum(y + b.reshape(1, 1, 1, -1), 0.0)

    def conv1(x, w_oc_ic, b):
        w = jnp.transpose(w_oc_ic.astype(jnp.float32))[None, None]   # (1,1,Cin,Cout)
        y = lax.conv_general_dilated(
            x, w, (1, 1), "VALID",
            dimension_numbers=("NHWC", "HWIO", "NHWC"),
            precision=lax.Precision.HIGHEST)
        return y + b.reshape(1, 1, 1, -1)

    def pool(x):
        n, h, w, c = x.shape
        return x.reshape(n, h // 2, 2, w // 2, 2, c).max(axis=(2, 4))

    def up(x):
        return jnp.repeat(jnp.repeat(x, 2, axis=1), 2, axis=2)

    x = jnp.transpose(x_nchw, (0, 2, 3, 1)).astype(jnp.float32)
    x1 = conv3(conv3(x, w_e1a, b_e1a), w_e1b, b_e1b)
    x2 = conv3(conv3(pool(x1), w_e2a, b_e2a), w_e2b, b_e2b)
    x3 = conv3(pool(x2), w_e3, b_e3)
    z2 = conv3(jnp.concatenate([up(x3), x2], axis=-1), w_d2, b_d2)
    z1 = conv3(jnp.concatenate([up(z2), x1], axis=-1), w_d1, b_d1)
    y = conv1(z1, w_out, b_out)
    return jnp.transpose(y, (0, 3, 1, 2))


if __name__ == "__main__":
    key = jax.random.PRNGKey(0)
    x = jax.random.normal(key, (2, 4, 16, 16), jnp.float32)    # NCHW, like torch
    model = UNetPallas(in_ch=4, base=8, out_ch=2)

    fwd = jax.jit(model.__call__)
    y = jax.block_until_ready(fwd(x))
    assert y.shape == (2, 2, 16, 16), y.shape

    # Sanity check vs. a pure-JAX reference using the same bf16-cast weights.
    # Residual error is bf16-operand rounding of activations across 8 layers
    # (weights match exactly); observed error is typically O(1e-2).
    y_ref = _reference_forward(x, model.params)
    max_err = float(jnp.max(jnp.abs(y - y_ref)))
    assert max_err < 1e-1, f"kernel/reference mismatch: {max_err}"

    print("KERNEL_OK")
</pallas_src>

<mosaic_0001>
module attributes {stable_mosaic.version = 11 : i64} {
  func.func @_unet_kernel(%arg0: i32, %arg1: memref<1x4x256xf32, #tpu.memory_space<vmem>>, %arg2: memref<256x64xbf16, #tpu.memory_space<vmem>>, %arg3: memref<64x16xbf16, #tpu.memory_space<vmem>>, %arg4: memref<16x64xbf16, #tpu.memory_space<vmem>>, %arg5: memref<64x256xbf16, #tpu.memory_space<vmem>>, %arg6: memref<9x8x4xbf16, #tpu.memory_space<vmem>>, %arg7: memref<8x1xf32, #tpu.memory_space<vmem>>, %arg8: memref<9x8x8xbf16, #tpu.memory_space<vmem>>, %arg9: memref<8x1xf32, #tpu.memory_space<vmem>>, %arg10: memref<9x16x8xbf16, #tpu.memory_space<vmem>>, %arg11: memref<16x1xf32, #tpu.memory_space<vmem>>, %arg12: memref<9x16x16xbf16, #tpu.memory_space<vmem>>, %arg13: memref<16x1xf32, #tpu.memory_space<vmem>>, %arg14: memref<9x32x16xbf16, #tpu.memory_space<vmem>>, %arg15: memref<32x1xf32, #tpu.memory_space<vmem>>, %arg16: memref<9x16x48xbf16, #tpu.memory_space<vmem>>, %arg17: memref<16x1xf32, #tpu.memory_space<vmem>>, %arg18: memref<9x8x24xbf16, #tpu.memory_space<vmem>>, %arg19: memref<8x1xf32, #tpu.memory_space<vmem>>, %arg20: memref<2x8xbf16, #tpu.memory_space<vmem>>, %arg21: memref<2x1xf32, #tpu.memory_space<vmem>>, %arg22: memref<1x2x256xf32, #tpu.memory_space<vmem>>) attributes {dimension_semantics = [#tpu.dimension_semantics<parallel>], iteration_bounds = array<i64: 2>, scalar_prefetch = 0 : i64, scratch_operands = 0 : i64, tpu.core_type = #tpu.core_type<tc>, window_params = [{transform_indices = @transform_0, window_bounds = array<i64: 1, 4, 256>}, {pipeline_mode = #tpu.pipeline_mode<synchronous>, transform_indices = @transform_1, window_bounds = array<i64: 256, 64>}, {pipeline_mode = #tpu.pipeline_mode<synchronous>, transform_indices = @transform_2, window_bounds = array<i64: 64, 16>}, {pipeline_mode = #tpu.pipeline_mode<synchronous>, transform_indices = @transform_3, window_bounds = array<i64: 16, 64>}, {pipeline_mode = #tpu.pipeline_mode<synchronous>, transform_indices = @transform_4, window_bounds = array<i64: 64, 256>}, {pipeline_mode = #tpu.pipeline_mode<synchronous>, transform_indices = @transform_5, window_bounds = array<i64: 9, 8, 4>}, {pipeline_mode = #tpu.pipeline_mode<synchronous>, transform_indices = @transform_6, window_bounds = array<i64: 8, 1>}, {pipeline_mode = #tpu.pipeline_mode<synchronous>, transform_indices = @transform_7, window_bounds = array<i64: 9, 8, 8>}, {pipeline_mode = #tpu.pipeline_mode<synchronous>, transform_indices = @transform_8, window_bounds = array<i64: 8, 1>}, {pipeline_mode = #tpu.pipeline_mode<synchronous>, transform_indices = @transform_9, window_bounds = array<i64: 9, 16, 8>}, {pipeline_mode = #tpu.pipeline_mode<synchronous>, transform_indices = @transform_10, window_bounds = array<i64: 16, 1>}, {pipeline_mode = #tpu.pipeline_mode<synchronous>, transform_indices = @transform_11, window_bounds = array<i64: 9, 16, 16>}, {pipeline_mode = #tpu.pipeline_mode<synchronous>, transform_indices = @transform_12, window_bounds = array<i64: 16, 1>}, {pipeline_mode = #tpu.pipeline_mode<synchronous>, transform_indices = @transform_13, window_bounds = array<i64: 9, 32, 16>}, {pipeline_mode = #tpu.pipeline_mode<synchronous>, transform_indices = @transform_14, window_bounds = array<i64: 32, 1>}, {pipeline_mode = #tpu.pipeline_mode<synchronous>, transform_indices = @transform_15, window_bounds = array<i64: 9, 16, 48>}, {pipeline_mode = #tpu.pipeline_mode<synchronous>, transform_indices = @transform_16, window_bounds = array<i64: 16, 1>}, {pipeline_mode = #tpu.pipeline_mode<synchronous>, transform_indices = @transform_17, window_bounds = array<i64: 9, 8, 24>}, {pipeline_mode = #tpu.pipeline_mode<synchronous>, transform_indices = @transform_18, window_bounds = array<i64: 8, 1>}, {pipeline_mode = #tpu.pipeline_mode<synchronous>, transform_indices = @transform_19, window_bounds = array<i64: 2, 8>}, {pipeline_mode = #tpu.pipeline_mode<synchronous>, transform_indices = @transform_20, window_bounds = array<i64: 2, 1>}, {transform_indices = @transform_21, window_bounds = array<i64: 1, 2, 256>}]} {
    %c0 = arith.constant 0 : index
    %c0_0 = arith.constant 0 : index
    %c0_1 = arith.constant 0 : index
    %0 = vector.load %arg1[%c0, %c0_0, %c0_1] : memref<1x4x256xf32, #tpu.memory_space<vmem>>, vector<1x4x256xf32>
    %1 = vector.shape_cast %0 : vector<1x4x256xf32> to vector<4x256xf32>
    %2 = arith.truncf %1 : vector<4x256xf32> to vector<4x256xbf16>
    %3 = tpu.iota {dimensions = array<i32: 1>} : vector<1x256xi32>
    %c15_i32 = arith.constant 15 : i32
    %4 = vector.broadcast %c15_i32 : i32 to vector<1x256xi32>
    %5 = arith.andi %3, %4 : vector<1x256xi32>
    %c0_i32 = arith.constant 0 : i32
    %6 = vector.broadcast %c0_i32 : i32 to vector<1x256xi32>
    %7 = arith.cmpi ne, %5, %6 : vector<1x256xi32>
    %c15_i32_2 = arith.constant 15 : i32
    %8 = vector.broadcast %c15_i32_2 : i32 to vector<1x256xi32>
    %9 = arith.cmpi ne, %5, %8 : vector<1x256xi32>
    %10 = tpu.iota {dimensions = array<i32: 1>} : vector<1x64xi32>
    %c7_i32 = arith.constant 7 : i32
    %11 = vector.broadcast %c7_i32 : i32 to vector<1x64xi32>
    %12 = arith.andi %10, %11 : vector<1x64xi32>
    %c0_i32_3 = arith.constant 0 : i32
    %13 = vector.broadcast %c0_i32_3 : i32 to vector<1x64xi32>
    %14 = arith.cmpi ne, %12, %13 : vector<1x64xi32>
    %c7_i32_4 = arith.constant 7 : i32
    %15 = vector.broadcast %c7_i32_4 : i32 to vector<1x64xi32>
    %16 = arith.cmpi ne, %12, %15 : vector<1x64xi32>
    %17 = tpu.iota {dimensions = array<i32: 1>} : vector<1x16xi32>
    %c3_i32 = arith.constant 3 : i32
    %18 = vector.broadcast %c3_i32 : i32 to vector<1x16xi32>
    %19 = arith.andi %17, %18 : vector<1x16xi32>
    %c0_i32_5 = arith.constant 0 : i32
    %20 = vector.broadcast %c0_i32_5 : i32 to vector<1x16xi32>
    %21 = arith.cmpi ne, %19, %20 : vector<1x16xi32>
    %c3_i32_6 = arith.constant 3 : i32
    %22 = vector.broadcast %c3_i32_6 : i32 to vector<1x16xi32>
    %23 = arith.cmpi ne, %19, %22 : vector<1x16xi32>
    %cst = arith.constant 0.000000e+00 : bf16
    %24 = vector.broadcast %cst : bf16 to vector<4x17xbf16>
    %25 = tpu.concatenate %24, %2, %24 in 1 : vector<4x17xbf16>, vector<4x256xbf16>, vector<4x17xbf16> -> vector<4x290xbf16>
    %cst_7 = arith.constant 0.000000e+00 : f32
    %26 = vector.broadcast %cst_7 : f32 to vector<8x256xf32>
    %27 = vector.extract_strided_slice %25 {offsets = [0, 0], sizes = [4, 256], strides = [1, 1]} : vector<4x290xbf16> to vector<4x256xbf16>
    %c0_i32_8 = arith.constant 0 : i32
    %28 = arith.sitofp %c0_i32_8 : i32 to bf16
    %29 = vector.shape_cast %7 : vector<1x256xi1> to vector<1x256xi1>
    %30 = vector.broadcast %29 : vector<1x256xi1> to vector<4x256xi1>
    %31 = vector.broadcast %28 : bf16 to vector<4x256xbf16>
    %32 = arith.select %30, %27, %31 : vector<4x256xi1>, vector<4x256xbf16>
    %c0_9 = arith.constant 0 : index
    %c0_10 = arith.constant 0 : index
    %c0_11 = arith.constant 0 : index
    %33 = vector.load %arg6[%c0_9, %c0_10, %c0_11] : memref<9x8x4xbf16, #tpu.memory_space<vmem>>, vector<1x8x4xbf16>
    %34 = vector.shape_cast %33 : vector<1x8x4xbf16> to vector<8x4xbf16>
    %cst_12 = arith.constant dense<0.000000e+00> : vector<8x256xf32>
    %35 = tpu.matmul %34, %32, %cst_12 {dimension_numbers = #tpu.dot_dimension_numbers<[1], [0], [0], [1], [0, 0, 1, 1], [], []>} : vector<8x4xbf16>, vector<4x256xbf16>, vector<8x256xf32> -> vector<8x256xf32>
    %36 = arith.addf %26, %35 : vector<8x256xf32>
    %37 = vector.extract_strided_slice %25 {offsets = [0, 1], sizes = [4, 256], strides = [1, 1]} : vector<4x290xbf16> to vector<4x256xbf16>
    %c1 = arith.constant 1 : index
    %c0_13 = arith.constant 0 : index
    %c0_14 = arith.constant 0 : index
    %38 = vector.load %arg6[%c1, %c0_13, %c0_14] : memref<9x8x4xbf16, #tpu.memory_space<vmem>>, vector<1x8x4xbf16>
    %39 = vector.shape_cast %38 : vector<1x8x4xbf16> to vector<8x4xbf16>
    %cst_15 = arith.constant dense<0.000000e+00> : vector<8x256xf32>
    %40 = tpu.matmul %39, %37, %cst_15 {dimension_numbers = #tpu.dot_dimension_numbers<[1], [0], [0], [1], [0, 0, 1, 1], [], []>} : vector<8x4xbf16>, vector<4x256xbf16>, vector<8x256xf32> -> vector<8x256xf32>
    %41 = arith.addf %36, %40 : vector<8x256xf32>
    %42 = vector.extract_strided_slice %25 {offsets = [0, 2], sizes = [4, 256], strides = [1, 1]} : vector<4x290xbf16> to vector<4x256xbf16>
    %c0_i32_16 = arith.constant 0 : i32
    %43 = arith.sitofp %c0_i32_16 : i32 to bf16
    %44 = vector.shape_cast %9 : vector<1x256xi1> to vector<1x256xi1>
    %45 = vector.broadcast %44 : vector<1x256xi1> to vector<4x256xi1>
    %46 = vector.broadcast %43 : bf16 to vector<4x256xbf16>
    %47 = arith.select %45, %42, %46 : vector<4x256xi1>, vector<4x256xbf16>
    %c2 = arith.constant 2 : index
    %c0_17 = arith.constant 0 : index
    %c0_18 = arith.constant 0 : index
    %48 = vector.load %arg6[%c2, %c0_17, %c0_18] : memref<9x8x4xbf16, #tpu.memory_space<vmem>>, vector<1x8x4xbf16>
    %49 = vector.shape_cast %48 : vector<1x8x4xbf16> to vector<8x4xbf16>
    %cst_19 = arith.constant dense<0.000000e+00> : vector<8x256xf32>
    %50 = tpu.matmul %49, %47, %cst_19 {dimension_numbers = #tpu.dot_dimension_numbers<[1], [0], [0], [1], [0, 0, 1, 1], [], []>} : vector<8x4xbf16>, vector<4x256xbf16>, vector<8x256xf32> -> vector<8x256xf32>
    %51 = arith.addf %41, %50 : vector<8x256xf32>
    %52 = vector.extract_strided_slice %25 {offsets = [0, 16], sizes = [4, 256], strides = [1, 1]} : vector<4x290xbf16> to vector<4x256xbf16>
    %c0_i32_20 = arith.constant 0 : i32
    %53 = arith.sitofp %c0_i32_20 : i32 to bf16
    %54 = vector.shape_cast %7 : vector<1x256xi1> to vector<1x256xi1>
    %55 = vector.broadcast %54 : vector<1x256xi1> to vector<4x256xi1>
    %56 = vector.broadcast %53 : bf16 to vector<4x256xbf16>
    %57 = arith.select %55, %52, %56 : vector<4x256xi1>, vector<4x256xbf16>
    %c3 = arith.constant 3 : index
    %c0_21 = arith.constant 0 : index
    %c0_22 = arith.constant 0 : index
    %58 = vector.load %arg6[%c3, %c0_21, %c0_22] : memref<9x8x4xbf16, #tpu.memory_space<vmem>>, vector<1x8x4xbf16>
    %59 = vector.shape_cast %58 : vector<1x8x4xbf16> to vector<8x4xbf16>
    %cst_23 = arith.constant dense<0.000000e+00> : vector<8x256xf32>
    %60 = tpu.matmul %59, %57, %cst_23 {dimension_numbers = #tpu.dot_dimension_numbers<[1], [0], [0], [1], [0, 0, 1, 1], [], []>} : vector<8x4xbf16>, vector<4x256xbf16>, vector<8x256xf32> -> vector<8x256xf32>
    %61 = arith.addf %51, %60 : vector<8x256xf32>
    %62 = vector.extract_strided_slice %25 {offsets = [0, 17], sizes = [4, 256], strides = [1, 1]} : vector<4x290xbf16> to vector<4x256xbf16>
    %c4 = arith.constant 4 : index
    %c0_24 = arith.constant 0 : index
    %c0_25 = arith.constant 0 : index
    %63 = vector.load %arg6[%c4, %c0_24, %c0_25] : memref<9x8x4xbf16, #tpu.memory_space<vmem>>, vector<1x8x4xbf16>
    %64 = vector.shape_cast %63 : vector<1x8x4xbf16> to vector<8x4xbf16>
    %cst_26 = arith.constant dense<0.000000e+00> : vector<8x256xf32>
    %65 = tpu.matmul %64, %62, %cst_26 {dimension_numbers = #tpu.dot_dimension_numbers<[1], [0], [0], [1], [0, 0, 1, 1], [], []>} : vector<8x4xbf16>, vector<4x256xbf16>, vector<8x256xf32> -> vector<8x256xf32>
    %66 = arith.addf %61, %65 : vector<8x256xf32>
    %67 = vector.extract_strided_slice %25 {offsets = [0, 18], sizes = [4, 256], strides = [1, 1]} : vector<4x290xbf16> to vector<4x256xbf16>
    %c0_i32_27 = arith.constant 0 : i32
    %68 = arith.sitofp %c0_i32_27 : i32 to bf16
    %69 = vector.shape_cast %9 : vector<1x256xi1> to vector<1x256xi1>
    %70 = vector.broadcast %69 : vector<1x256xi1> to vector<4x256xi1>
    %71 = vector.broadcast %68 : bf16 to vector<4x256xbf16>
    %72 = arith.select %70, %67, %71 : vector<4x256xi1>, vector<4x256xbf16>
    %c5 = arith.constant 5 : index
    %c0_28 = arith.constant 0 : index
    %c0_29 = arith.constant 0 : index
    %73 = vector.load %arg6[%c5, %c0_28, %c0_29] : memref<9x8x4xbf16, #tpu.memory_space<vmem>>, vector<1x8x4xbf16>
    %74 = vector.shape_cast %73 : vector<1x8x4xbf16> to vector<8x4xbf16>
    %cst_30 = arith.constant dense<0.000000e+00> : vector<8x256xf32>
    %75 = tpu.matmul %74, %72, %cst_30 {dimension_numbers = #tpu.dot_dimension_numbers<[1], [0], [0], [1], [0, 0, 1, 1], [], []>} : vector<8x4xbf16>, vector<4x256xbf16>, vector<8x256xf32> -> vector<8x256xf32>
    %76 = arith.addf %66, %75 : vector<8x256xf32>
    %77 = vector.extract_strided_slice %25 {offsets = [0, 32], sizes = [4, 256], strides = [1, 1]} : vector<4x290xbf16> to vector<4x256xbf16>
    %c0_i32_31 = arith.constant 0 : i32
    %78 = arith.sitofp %c0_i32_31 : i32 to bf16
    %79 = vector.shape_cast %7 : vector<1x256xi1> to vector<1x256xi1>
    %80 = vector.broadcast %79 : vector<1x256xi1> to vector<4x256xi1>
    %81 = vector.broadcast %78 : bf16 to vector<4x256xbf16>
    %82 = arith.select %80, %77, %81 : vector<4x256xi1>, vector<4x256xbf16>
    %c6 = arith.constant 6 : index
    %c0_32 = arith.constant 0 : index
    %c0_33 = arith.constant 0 : index
    %83 = vector.load %arg6[%c6, %c0_32, %c0_33] : memref<9x8x4xbf16, #tpu.memory_space<vmem>>, vector<1x8x4xbf16>
    %84 = vector.shape_cast %83 : vector<1x8x4xbf16> to vector<8x4xbf16>
    %cst_34 = arith.constant dense<0.000000e+00> : vector<8x256xf32>
    %85 = tpu.matmul %84, %82, %cst_34 {dimension_numbers = #tpu.dot_dimension_numbers<[1], [0], [0], [1], [0, 0, 1, 1], [], []>} : vector<8x4xbf16>, vector<4x256xbf16>, vector<8x256xf32> -> vector<8x256xf32>
    %86 = arith.addf %76, %85 : vector<8x256xf32>
    %87 = vector.extract_strided_slice %25 {offsets = [0, 33], sizes = [4, 256], strides = [1, 1]} : vector<4x290xbf16> to vector<4x256xbf16>
    %c7 = arith.constant 7 : index
    %c0_35 = arith.constant 0 : index
    %c0_36 = arith.constant 0 : index
    %88 = vector.load %arg6[%c7, %c0_35, %c0_36] : memref<9x8x4xbf16, #tpu.memory_space<vmem>>, vector<1x8x4xbf16>
    %89 = vector.shape_cast %88 : vector<1x8x4xbf16> to vector<8x4xbf16>
    %cst_37 = arith.constant dense<0.000000e+00> : vector<8x256xf32>
    %90 = tpu.matmul %89, %87, %cst_37 {dimension_numbers = #tpu.dot_dimension_numbers<[1], [0], [0], [1], [0, 0, 1, 1], [], []>} : vector<8x4xbf16>, vector<4x256xbf16>, vector<8x256xf32> -> vector<8x256xf32>
    %91 = arith.addf %86, %90 : vector<8x256xf32>
    %92 = vector.extract_strided_slice %25 {offsets = [0, 34], sizes = [4, 256], strides = [1, 1]} : vector<4x290xbf16> to vector<4x256xbf16>
    %c0_i32_38 = arith.constant 0 : i32
    %93 = arith.sitofp %c0_i32_38 : i32 to bf16
    %94 = vector.shape_cast %9 : vector<1x256xi1> to vector<1x256xi1>
    %95 = vector.broadcast %94 : vector<1x256xi1> to vector<4x256xi1>
    %96 = vector.broadcast %93 : bf16 to vector<4x256xbf16>
    %97 = arith.select %95, %92, %96 : vector<4x256xi1>, vector<4x256xbf16>
    %c8 = arith.constant 8 : index
    %c0_39 = arith.constant 0 : index
    %c0_40 = arith.constant 0 : index
    %98 = vector.load %arg6[%c8, %c0_39, %c0_40] : memref<9x8x4xbf16, #tpu.memory_space<vmem>>, vector<1x8x4xbf16>
    %99 = vector.shape_cast %98 : vector<1x8x4xbf16> to vector<8x4xbf16>
    %cst_41 = arith.constant dense<0.000000e+00> : vector<8x256xf32>
    %100 = tpu.matmul %99, %97, %cst_41 {dimension_numbers = #tpu.dot_dimension_numbers<[1], [0], [0], [1], [0, 0, 1, 1], [], []>} : vector<8x4xbf16>, vector<4x256xbf16>, vector<8x256xf32> -> vector<8x256xf32>
    %101 = arith.addf %91, %100 : vector<8x256xf32>
    %c0_42 = arith.constant 0 : index
    %c0_43 = arith.constant 0 : index
    %102 = vector.load %arg7[%c0_42, %c0_43] : memref<8x1xf32, #tpu.memory_space<vmem>>, vector<8x1xf32>
    %103 = vector.broadcast %102 : vector<8x1xf32> to vector<8x256xf32>
    %104 = arith.addf %101, %103 : vector<8x256xf32>
    %cst_44 = arith.constant 0.000000e+00 : f32
    %105 = vector.broadcast %cst_44 : f32 to vector<8x256xf32>
    %106 = arith.maximumf %104, %105 : vector<8x256xf32>
    %107 = arith.truncf %106 : vector<8x256xf32> to vector<8x256xbf16>
    %cst_45 = arith.constant 0.000000e+00 : bf16
    %108 = vector.broadcast %cst_45 : bf16 to vector<8x17xbf16>
    %109 = tpu.concatenate %108, %107, %108 in 1 : vector<8x17xbf16>, vector<8x256xbf16>, vector<8x17xbf16> -> vector<8x290xbf16>
    %cst_46 = arith.constant 0.000000e+00 : f32
    %110 = vector.broadcast %cst_46 : f32 to vector<8x256xf32>
    %111 = vector.extract_strided_slice %109 {offsets = [0, 0], sizes = [8, 256], strides = [1, 1]} : vector<8x290xbf16> to vector<8x256xbf16>
    %c0_i32_47 = arith.constant 0 : i32
    %112 = arith.sitofp %c0_i32_47 : i32 to bf16
    %113 = vector.shape_cast %7 : vector<1x256xi1> to vector<1x256xi1>
    %114 = vector.broadcast %113 : vector<1x256xi1> to vector<8x256xi1>
    %115 = vector.broadcast %112 : bf16 to vector<8x256xbf16>
    %116 = arith.select %114, %111, %115 : vector<8x256xi1>, vector<8x256xbf16>
    %c0_48 = arith.constant 0 : index
    %c0_49 = arith.constant 0 : index
    %c0_50 = arith.constant 0 : index
    %117 = vector.load %arg8[%c0_48, %c0_49, %c0_50] : memref<9x8x8xbf16, #tpu.memory_space<vmem>>, vector<1x8x8xbf16>
    %118 = vector.shape_cast %117 : vector<1x8x8xbf16> to vector<8x8xbf16>
    %cst_51 = arith.constant dense<0.000000e+00> : vector<8x256xf32>
    %119 = tpu.matmul %118, %116, %cst_51 {dimension_numbers = #tpu.dot_dimension_numbers<[1], [0], [0], [1], [0, 0, 1, 1], [], []>} : vector<8x8xbf16>, vector<8x256xbf16>, vector<8x256xf32> -> vector<8x256xf32>
    %120 = arith.addf %110, %119 : vector<8x256xf32>
    %121 = vector.extract_strided_slice %109 {offsets = [0, 1], sizes = [8, 256], strides = [1, 1]} : vector<8x290xbf16> to vector<8x256xbf16>
    %c1_52 = arith.constant 1 : index
    %c0_53 = arith.constant 0 : index
    %c0_54 = arith.constant 0 : index
    %122 = vector.load %arg8[%c1_52, %c0_53, %c0_54] : memref<9x8x8xbf16, #tpu.memory_space<vmem>>, vector<1x8x8xbf16>
    %123 = vector.shape_cast %122 : vector<1x8x8xbf16> to vector<8x8xbf16>
    %cst_55 = arith.constant dense<0.000000e+00> : vector<8x256xf32>
    %124 = tpu.matmul %123, %121, %cst_55 {dimension_numbers = #tpu.dot_dimension_numbers<[1], [0], [0], [1], [0, 0, 1, 1], [], []>} : vector<8x8xbf16>, vector<8x256xbf16>, vector<8x256xf32> -> vector<8x256xf32>
    %125 = arith.addf %120, %124 : vector<8x256xf32>
    %126 = vector.extract_strided_slice %109 {offsets = [0, 2], sizes = [8, 256], strides = [1, 1]} : vector<8x290xbf16> to vector<8x256xbf16>
    %c0_i32_56 = arith.constant 0 : i32
    %127 = arith.sitofp %c0_i32_56 : i32 to bf16
    %128 = vector.shape_cast %9 : vector<1x256xi1> to vector<1x256xi1>
    %129 = vector.broadcast %128 : vector<1x256xi1> to vector<8x256xi1>
    %130 = vector.broadcast %127 : bf16 to vector<8x256xbf16>
    %131 = arith.select %129, %126, %130 : vector<8x256xi1>, vector<8x256xbf16>
    %c2_57 = arith.constant 2 : index
    %c0_58 = arith.constant 0 : index
    %c0_59 = arith.constant 0 : index
    %132 = vector.load %arg8[%c2_57, %c0_58, %c0_59] : memref<9x8x8xbf16, #tpu.memory_space<vmem>>, vector<1x8x8xbf16>
    %133 = vector.shape_cast %132 : vector<1x8x8xbf16> to vector<8x8xbf16>
    %cst_60 = arith.constant dense<0.000000e+00> : vector<8x256xf32>
    %134 = tpu.matmul %133, %131, %cst_60 {dimension_numbers = #tpu.dot_dimension_numbers<[1], [0], [0], [1], [0, 0, 1, 1], [], []>} : vector<8x8xbf16>, vector<8x256xbf16>, vector<8x256xf32> -> vector<8x256xf32>
    %135 = arith.addf %125, %134 : vector<8x256xf32>
    %136 = vector.extract_strided_slice %109 {offsets = [0, 16], sizes = [8, 256], strides = [1, 1]} : vector<8x290xbf16> to vector<8x256xbf16>
    %c0_i32_61 = arith.constant 0 : i32
    %137 = arith.sitofp %c0_i32_61 : i32 to bf16
    %138 = vector.shape_cast %7 : vector<1x256xi1> to vector<1x256xi1>
    %139 = vector.broadcast %138 : vector<1x256xi1> to vector<8x256xi1>
    %140 = vector.broadcast %137 : bf16 to vector<8x256xbf16>
    %141 = arith.select %139, %136, %140 : vector<8x256xi1>, vector<8x256xbf16>
    %c3_62 = arith.constant 3 : index
    %c0_63 = arith.constant 0 : index
    %c0_64 = arith.constant 0 : index
    %142 = vector.load %arg8[%c3_62, %c0_63, %c0_64] : memref<9x8x8xbf16, #tpu.memory_space<vmem>>, vector<1x8x8xbf16>
    %143 = vector.shape_cast %142 : vector<1x8x8xbf16> to vector<8x8xbf16>
    %cst_65 = arith.constant dense<0.000000e+00> : vector<8x256xf32>
    %144 = tpu.matmul %143, %141, %cst_65 {dimension_numbers = #tpu.dot_dimension_numbers<[1], [0], [0], [1], [0, 0, 1, 1], [], []>} : vector<8x8xbf16>, vector<8x256xbf16>, vector<8x256xf32> -> vector<8x256xf32>
    %145 = arith.addf %135, %144 : vector<8x256xf32>
    %146 = vector.extract_strided_slice %109 {offsets = [0, 17], sizes = [8, 256], strides = [1, 1]} : vector<8x290xbf16> to vector<8x256xbf16>
    %c4_66 = arith.constant 4 : index
    %c0_67 = arith.constant 0 : index
    %c0_68 = arith.constant 0 : index
    %147 = vector.load %arg8[%c4_66, %c0_67, %c0_68] : memref<9x8x8xbf16, #tpu.memory_space<vmem>>, vector<1x8x8xbf16>
    %148 = vector.shape_cast %147 : vector<1x8x8xbf16> to vector<8x8xbf16>
    %cst_69 = arith.constant dense<0.000000e+00> : vector<8x256xf32>
    %149 = tpu.matmul %148, %146, %cst_69 {dimension_numbers = #tpu.dot_dimension_numbers<[1], [0], [0], [1], [0, 0, 1, 1], [], []>} : vector<8x8xbf16>, vector<8x256xbf16>, vector<8x256xf32> -> vector<8x256xf32>
    %150 = arith.addf %145, %149 : vector<8x256xf32>
    %151 = vector.extract_strided_slice %109 {offsets = [0, 18], sizes = [8, 256], strides = [1, 1]} : vector<8x290xbf16> to vector<8x256xbf16>
    %c0_i32_70 = arith.constant 0 : i32
    %152 = arith.sitofp %c0_i32_70 : i32 to bf16
    %153 = vector.shape_cast %9 : vector<1x256xi1> to vector<1x256xi1>
    %154 = vector.broadcast %153 : vector<1x256xi1> to vector<8x256xi1>
    %155 = vector.broadcast %152 : bf16 to vector<8x256xbf16>
    %156 = arith.select %154, %151, %155 : vector<8x256xi1>, vector<8x256xbf16>
    %c5_71 = arith.constant 5 : index
    %c0_72 = arith.constant 0 : index
    %c0_73 = arith.constant 0 : index
    %157 = vector.load %arg8[%c5_71, %c0_72, %c0_73] : memref<9x8x8xbf16, #tpu.memory_space<vmem>>, vector<1x8x8xbf16>
    %158 = vector.shape_cast %157 : vector<1x8x8xbf16> to vector<8x8xbf16>
    %cst_74 = arith.constant dense<0.000000e+00> : vector<8x256xf32>
    %159 = tpu.matmul %158, %156, %cst_74 {dimension_numbers = #tpu.dot_dimension_numbers<[1], [0], [0], [1], [0, 0, 1, 1], [], []>} : vector<8x8xbf16>, vector<8x256xbf16>, vector<8x256xf32> -> vector<8x256xf32>
    %160 = arith.addf %150, %159 : vector<8x256xf32>
    %161 = vector.extract_strided_slice %109 {offsets = [0, 32], sizes = [8, 256], strides = [1, 1]} : vector<8x290xbf16> to vector<8x256xbf16>
    %c0_i32_75 = arith.constant 0 : i32
    %162 = arith.sitofp %c0_i32_75 : i32 to bf16
    %163 = vector.shape_cast %7 : vector<1x256xi1> to vector<1x256xi1>
    %164 = vector.broadcast %163 : vector<1x256xi1> to vector<8x256xi1>
    %165 = vector.broadcast %162 : bf16 to vector<8x256xbf16>
    %166 = arith.select %164, %161, %165 : vector<8x256xi1>, vector<8x256xbf16>
    %c6_76 = arith.constant 6 : index
    %c0_77 = arith.constant 0 : index
    %c0_78 = arith.constant 0 : index
    %167 = vector.load %arg8[%c6_76, %c0_77, %c0_78] : memref<9x8x8xbf16, #tpu.memory_space<vmem>>, vector<1x8x8xbf16>
    %168 = vector.shape_cast %167 : vector<1x8x8xbf16> to vector<8x8xbf16>
    %cst_79 = arith.constant dense<0.000000e+00> : vector<8x256xf32>
    %169 = tpu.matmul %168, %166, %cst_79 {dimension_numbers = #tpu.dot_dimension_numbers<[1], [0], [0], [1], [0, 0, 1, 1], [], []>} : vector<8x8xbf16>, vector<8x256xbf16>, vector<8x256xf32> -> vector<8x256xf32>
    %170 = arith.addf %160, %169 : vector<8x256xf32>
    %171 = vector.extract_strided_slice %109 {offsets = [0, 33], sizes = [8, 256], strides = [1, 1]} : vector<8x290xbf16> to vector<8x256xbf16>
    %c7_80 = arith.constant 7 : index
    %c0_81 = arith.constant 0 : index
    %c0_82 = arith.constant 0 : index
    %172 = vector.load %arg8[%c7_80, %c0_81, %c0_82] : memref<9x8x8xbf16, #tpu.memory_space<vmem>>, vector<1x8x8xbf16>
    %173 = vector.shape_cast %172 : vector<1x8x8xbf16> to vector<8x8xbf16>
    %cst_83 = arith.constant dense<0.000000e+00> : vector<8x256xf32>
    %174 = tpu.matmul %173, %171, %cst_83 {dimension_numbers = #tpu.dot_dimension_numbers<[1], [0], [0], [1], [0, 0, 1, 1], [], []>} : vector<8x8xbf16>, vector<8x256xbf16>, vector<8x256xf32> -> vector<8x256xf32>
    %175 = arith.addf %170, %174 : vector<8x256xf32>
    %176 = vector.extract_strided_slice %109 {offsets = [0, 34], sizes = [8, 256], strides = [1, 1]} : vector<8x290xbf16> to vector<8x256xbf16>
    %c0_i32_84 = arith.constant 0 : i32
    %177 = arith.sitofp %c0_i32_84 : i32 to bf16
    %178 = vector.shape_cast %9 : vector<1x256xi1> to vector<1x256xi1>
    %179 = vector.broadcast %178 : vector<1x256xi1> to vector<8x256xi1>
    %180 = vector.broadcast %177 : bf16 to vector<8x256xbf16>
    %181 = arith.select %179, %176, %180 : vector<8x256xi1>, vector<8x256xbf16>
    %c8_85 = arith.constant 8 : index
    %c0_86 = arith.constant 0 : index
    %c0_87 = arith.constant 0 : index
    %182 = vector.load %arg8[%c8_85, %c0_86, %c0_87] : memref<9x8x8xbf16, #tpu.memory_space<vmem>>, vector<1x8x8xbf16>
    %183 = vector.shape_cast %182 : vector<1x8x8xbf16> to vector<8x8xbf16>
    %cst_88 = arith.constant dense<0.000000e+00> : vector<8x256xf32>
    %184 = tpu.matmul %183, %181, %cst_88 {dimension_numbers = #tpu.dot_dimension_numbers<[1], [0], [0], [1], [0, 0, 1, 1], [], []>} : vector<8x8xbf16>, vector<8x256xbf16>, vector<8x256xf32> -> vector<8x256xf32>
    %185 = arith.addf %175, %184 : vector<8x256xf32>
    %c0_89 = arith.constant 0 : index
    %c0_90 = arith.constant 0 : index
    %186 = vector.load %arg9[%c0_89, %c0_90] : memref<8x1xf32, #tpu.memory_space<vmem>>, vector<8x1xf32>
    %187 = vector.broadcast %186 : vector<8x1xf32> to vector<8x256xf32>
    %188 = arith.addf %185, %187 : vector<8x256xf32>
    %cst_91 = arith.constant 0.000000e+00 : f32
    %189 = vector.broadcast %cst_91 : f32 to vector<8x256xf32>
    %190 = arith.maximumf %188, %189 : vector<8x256xf32>
    %191 = arith.truncf %190 : vector<8x256xf32> to vector<8x256xbf16>
    %cst_92 = arith.constant 0.000000e+00 : bf16
    %192 = vector.broadcast %cst_92 : bf16 to vector<8x17xbf16>
    %193 = tpu.concatenate %191, %192 in 1 : vector<8x256xbf16>, vector<8x17xbf16> -> vector<8x273xbf16>
    %194 = vector.extract_strided_slice %193 {offsets = [0, 0], sizes = [8, 256], strides = [1, 1]} : vector<8x273xbf16> to vector<8x256xbf16>
    %195 = vector.extract_strided_slice %193 {offsets = [0, 1], sizes = [8, 256], strides = [1, 1]} : vector<8x273xbf16> to vector<8x256xbf16>
    %196 = arith.maximumf %194, %195 : vector<8x256xbf16>
    %197 = vector.extract_strided_slice %193 {offsets = [0, 16], sizes = [8, 256], strides = [1, 1]} : vector<8x273xbf16> to vector<8x256xbf16>
    %198 = vector.extract_strided_slice %193 {offsets = [0, 17], sizes = [8, 256], strides = [1, 1]} : vector<8x273xbf16> to vector<8x256xbf16>
    %199 = arith.maximumf %197, %198 : vector<8x256xbf16>
    %200 = arith.maximumf %196, %199 : vector<8x256xbf16>
    %c0_93 = arith.constant 0 : index
    %c0_94 = arith.constant 0 : index
    %201 = vector.load %arg2[%c0_93, %c0_94] : memref<256x64xbf16, #tpu.memory_space<vmem>>, vector<256x64xbf16>
    %cst_95 = arith.constant dense<0.000000e+00> : vector<8x64xf32>
    %202 = tpu.matmul %200, %201, %cst_95 {dimension_numbers = #tpu.dot_dimension_numbers<[1], [0], [0], [1], [0, 0, 1, 1], [], []>} : vector<8x256xbf16>, vector<256x64xbf16>, vector<8x64xf32> -> vector<8x64xf32>
    %203 = arith.truncf %202 : vector<8x64xf32> to vector<8x64xbf16>
    %cst_96 = arith.constant 0.000000e+00 : bf16
    %204 = vector.broadcast %cst_96 : bf16 to vector<8x9xbf16>
    %205 = tpu.concatenate %204, %203, %204 in 1 : vector<8x9xbf16>, vector<8x64xbf16>, vector<8x9xbf16> -> vector<8x82xbf16>
    %cst_97 = arith.constant 0.000000e+00 : f32
    %206 = vector.broadcast %cst_97 : f32 to vector<16x64xf32>
    %207 = vector.extract_strided_slice %205 {offsets = [0, 0], sizes = [8, 64], strides = [1, 1]} : vector<8x82xbf16> to vector<8x64xbf16>
    %c0_i32_98 = arith.constant 0 : i32
    %208 = arith.sitofp %c0_i32_98 : i32 to bf16
    %209 = vector.shape_cast %14 : vector<1x64xi1> to vector<1x64xi1>
    %210 = vector.broadcast %209 : vector<1x64xi1> to vector<8x64xi1>
    %211 = vector.broadcast %208 : bf16 to vector<8x64xbf16>
    %212 = arith.select %210, %207, %211 : vector<8x64xi1>, vector<8x64xbf16>
    %c0_99 = arith.constant 0 : index
    %c0_100 = arith.constant 0 : index
    %c0_101 = arith.constant 0 : index
    %213 = vector.load %arg10[%c0_99, %c0_100, %c0_101] : memref<9x16x8xbf16, #tpu.memory_space<vmem>>, vector<1x16x8xbf16>
    %214 = vector.shape_cast %213 : vector<1x16x8xbf16> to vector<16x8xbf16>
    %cst_102 = arith.constant dense<0.000000e+00> : vector<16x64xf32>
    %215 = tpu.matmul %214, %212, %cst_102 {dimension_numbers = #tpu.dot_dimension_numbers<[1], [0], [0], [1], [0, 0, 1, 1], [], []>} : vector<16x8xbf16>, vector<8x64xbf16>, vector<16x64xf32> -> vector<16x64xf32>
    %216 = arith.addf %206, %215 : vector<16x64xf32>
    %217 = vector.extract_strided_slice %205 {offsets = [0, 1], sizes = [8, 64], strides = [1, 1]} : vector<8x82xbf16> to vector<8x64xbf16>
    %c1_103 = arith.constant 1 : index
    %c0_104 = arith.constant 0 : index
    %c0_105 = arith.constant 0 : index
    %218 = vector.load %arg10[%c1_103, %c0_104, %c0_105] : memref<9x16x8xbf16, #tpu.memory_space<vmem>>, vector<1x16x8xbf16>
    %219 = vector.shape_cast %218 : vector<1x16x8xbf16> to vector<16x8xbf16>
    %cst_106 = arith.constant dense<0.000000e+00> : vector<16x64xf32>
    %220 = tpu.matmul %219, %217, %cst_106 {dimension_numbers = #tpu.dot_dimension_numbers<[1], [0], [0], [1], [0, 0, 1, 1], [], []>} : vector<16x8xbf16>, vector<8x64xbf16>, vector<16x64xf32> -> vector<16x64xf32>
    %221 = arith.addf %216, %220 : vector<16x64xf32>
    %222 = vector.extract_strided_slice %205 {offsets = [0, 2], sizes = [8, 64], strides = [1, 1]} : vector<8x82xbf16> to vector<8x64xbf16>
    %c0_i32_107 = arith.constant 0 : i32
    %223 = arith.sitofp %c0_i32_107 : i32 to bf16
    %224 = vector.shape_cast %16 : vector<1x64xi1> to vector<1x64xi1>
    %225 = vector.broadcast %224 : vector<1x64xi1> to vector<8x64xi1>
    %226 = vector.broadcast %223 : bf16 to vector<8x64xbf16>
    %227 = arith.select %225, %222, %226 : vector<8x64xi1>, vector<8x64xbf16>
    %c2_108 = arith.constant 2 : index
    %c0_109 = arith.constant 0 : index
    %c0_110 = arith.constant 0 : index
    %228 = vector.load %arg10[%c2_108, %c0_109, %c0_110] : memref<9x16x8xbf16, #tpu.memory_space<vmem>>, vector<1x16x8xbf16>
    %229 = vector.shape_cast %228 : vector<1x16x8xbf16> to vector<16x8xbf16>
    %cst_111 = arith.constant dense<0.000000e+00> : vector<16x64xf32>
    %230 = tpu.matmul %229, %227, %cst_111 {dimension_numbers = #tpu.dot_dimension_numbers<[1], [0], [0], [1], [0, 0, 1, 1], [], []>} : vector<16x8xbf16>, vector<8x64xbf16>, vector<16x64xf32> -> vector<16x64xf32>
    %231 = arith.addf %221, %230 : vector<16x64xf32>
    %232 = vector.extract_strided_slice %205 {offsets = [0, 8], sizes = [8, 64], strides = [1, 1]} : vector<8x82xbf16> to vector<8x64xbf16>
    %c0_i32_112 = arith.constant 0 : i32
    %233 = arith.sitofp %c0_i32_112 : i32 to bf16
    %234 = vector.shape_cast %14 : vector<1x64xi1> to vector<1x64xi1>
    %235 = vector.broadcast %234 : vector<1x64xi1> to vector<8x64xi1>
    %236 = vector.broadcast %233 : bf16 to vector<8x64xbf16>
    %237 = arith.select %235, %232, %236 : vector<8x64xi1>, vector<8x64xbf16>
    %c3_113 = arith.constant 3 : index
    %c0_114 = arith.constant 0 : index
    %c0_115 = arith.constant 0 : index
    %238 = vector.load %arg10[%c3_113, %c0_114, %c0_115] : memref<9x16x8xbf16, #tpu.memory_space<vmem>>, vector<1x16x8xbf16>
    %239 = vector.shape_cast %238 : vector<1x16x8xbf16> to vector<16x8xbf16>
    %cst_116 = arith.constant dense<0.000000e+00> : vector<16x64xf32>
    %240 = tpu.matmul %239, %237, %cst_116 {dimension_numbers = #tpu.dot_dimension_numbers<[1], [0], [0], [1], [0, 0, 1, 1], [], []>} : vector<16x8xbf16>, vector<8x64xbf16>, vector<16x64xf32> -> vector<16x64xf32>
    %241 = arith.addf %231, %240 : vector<16x64xf32>
    %242 = vector.extract_strided_slice %205 {offsets = [0, 9], sizes = [8, 64], strides = [1, 1]} : vector<8x82xbf16> to vector<8x64xbf16>
    %c4_117 = arith.constant 4 : index
    %c0_118 = arith.constant 0 : index
    %c0_119 = arith.constant 0 : index
    %243 = vector.load %arg10[%c4_117, %c0_118, %c0_119] : memref<9x16x8xbf16, #tpu.memory_space<vmem>>, vector<1x16x8xbf16>
    %244 = vector.shape_cast %243 : vector<1x16x8xbf16> to vector<16x8xbf16>
    %cst_120 = arith.constant dense<0.000000e+00> : vector<16x64xf32>
    %245 = tpu.matmul %244, %242, %cst_120 {dimension_numbers = #tpu.dot_dimension_numbers<[1], [0], [0], [1], [0, 0, 1, 1], [], []>} : vector<16x8xbf16>, vector<8x64xbf16>, vector<16x64xf32> -> vector<16x64xf32>
    %246 = arith.addf %241, %245 : vector<16x64xf32>
    %247 = vector.extract_strided_slice %205 {offsets = [0, 10], sizes = [8, 64], strides = [1, 1]} : vector<8x82xbf16> to vector<8x64xbf16>
    %c0_i32_121 = arith.constant 0 : i32
    %248 = arith.sitofp %c0_i32_121 : i32 to bf16
    %249 = vector.shape_cast %16 : vector<1x64xi1> to vector<1x64xi1>
    %250 = vector.broadcast %249 : vector<1x64xi1> to vector<8x64xi1>
    %251 = vector.broadcast %248 : bf16 to vector<8x64xbf16>
    %252 = arith.select %250, %247, %251 : vector<8x64xi1>, vector<8x64xbf16>
    %c5_122 = arith.constant 5 : index
    %c0_123 = arith.constant 0 : index
    %c0_124 = arith.constant 0 : index
    %253 = vector.load %arg10[%c5_122, %c0_123, %c0_124] : memref<9x16x8xbf16, #tpu.memory_space<vmem>>, vector<1x16x8xbf16>
    %254 = vector.shape_cast %253 : vector<1x16x8xbf16> to vector<16x8xbf16>
    %cst_125 = arith.constant dense<0.000000e+00> : vector<16x64xf32>
    %255 = tpu.matmul %254, %252, %cst_125 {dimension_numbers = #tpu.dot_dimension_numbers<[1], [0], [0], [1], [0, 0, 1, 1], [], []>} : vector<16x8xbf16>, vector<8x64xbf16>, vector<16x64xf32> -> vector<16x64xf32>
    %256 = arith.addf %246, %255 : vector<16x64xf32>
    %257 = vector.extract_strided_slice %205 {offsets = [0, 16], sizes = [8, 64], strides = [1, 1]} : vector<8x82xbf16> to vector<8x64xbf16>
    %c0_i32_126 = arith.constant 0 : i32
    %258 = arith.sitofp %c0_i32_126 : i32 to bf16
    %259 = vector.shape_cast %14 : vector<1x64xi1> to vector<1x64xi1>
    %260 = vector.broadcast %259 : vector<1x64xi1> to vector<8x64xi1>
    %261 = vector.broadcast %258 : bf16 to vector<8x64xbf16>
    %262 = arith.select %260, %257, %261 : vector<8x64xi1>, vector<8x64xbf16>
    %c6_127 = arith.constant 6 : index
    %c0_128 = arith.constant 0 : index
    %c0_129 = arith.constant 0 : index
    %263 = vector.load %arg10[%c6_127, %c0_128, %c0_129] : memref<9x16x8xbf16, #tpu.memory_space<vmem>>, vector<1x16x8xbf16>
    %264 = vector.shape_cast %263 : vector<1x16x8xbf16> to vector<16x8xbf16>
    %cst_130 = arith.constant dense<0.000000e+00> : vector<16x64xf32>
    %265 = tpu.matmul %264, %262, %cst_130 {dimension_numbers = #tpu.dot_dimension_numbers<[1], [0], [0], [1], [0, 0, 1, 1], [], []>} : vector<16x8xbf16>, vector<8x64xbf16>, vector<16x64xf32> -> vector<16x64xf32>
    %266 = arith.addf %256, %265 : vector<16x64xf32>
    %267 = vector.extract_strided_slice %205 {offsets = [0, 17], sizes = [8, 64], strides = [1, 1]} : vector<8x82xbf16> to vector<8x64xbf16>
    %c7_131 = arith.constant 7 : index
    %c0_132 = arith.constant 0 : index
    %c0_133 = arith.constant 0 : index
    %268 = vector.load %arg10[%c7_131, %c0_132, %c0_133] : memref<9x16x8xbf16, #tpu.memory_space<vmem>>, vector<1x16x8xbf16>
    %269 = vector.shape_cast %268 : vector<1x16x8xbf16> to vector<16x8xbf16>
    %cst_134 = arith.constant dense<0.000000e+00> : vector<16x64xf32>
    %270 = tpu.matmul %269, %267, %cst_134 {dimension_numbers = #tpu.dot_dimension_numbers<[1], [0], [0], [1], [0, 0, 1, 1], [], []>} : vector<16x8xbf16>, vector<8x64xbf16>, vector<16x64xf32> -> vector<16x64xf32>
    %271 = arith.addf %266, %270 : vector<16x64xf32>
    %272 = vector.extract_strided_slice %205 {offsets = [0, 18], sizes = [8, 64], strides = [1, 1]} : vector<8x82xbf16> to vector<8x64xbf16>
    %c0_i32_135 = arith.constant 0 : i32
    %273 = arith.sitofp %c0_i32_135 : i32 to bf16
    %274 = vector.shape_cast %16 : vector<1x64xi1> to vector<1x64xi1>
    %275 = vector.broadcast %274 : vector<1x64xi1> to vector<8x64xi1>
    %276 = vector.broadcast %273 : bf16 to vector<8x64xbf16>
    %277 = arith.select %275, %272, %276 : vector<8x64xi1>, vector<8x64xbf16>
    %c8_136 = arith.constant 8 : index
    %c0_137 = arith.constant 0 : index
    %c0_138 = arith.constant 0 : index
    %278 = vector.load %arg10[%c8_136, %c0_137, %c0_138] : memref<9x16x8xbf16, #tpu.memory_space<vmem>>, vector<1x16x8xbf16>
    %279 = vector.shape_cast %278 : vector<1x16x8xbf16> to vector<16x8xbf16>
    %cst_139 = arith.constant dense<0.000000e+00> : vector<16x64xf32>
    %280 = tpu.matmul %279, %277, %cst_139 {dimension_numbers = #tpu.dot_dimension_numbers<[1], [0], [0], [1], [0, 0, 1, 1], [], []>} : vector<16x8xbf16>, vector<8x64xbf16>, vector<16x64xf32> -> vector<16x64xf32>
    %281 = arith.addf %271, %280 : vector<16x64xf32>
    %c0_140 = arith.constant 0 : index
    %c0_141 = arith.constant 0 : index
    %282 = vector.load %arg11[%c0_140, %c0_141] : memref<16x1xf32, #tpu.memory_space<vmem>>, vector<16x1xf32>
    %283 = vector.broadcast %282 : vector<16x1xf32> to vector<16x64xf32>
    %284 = arith.addf %281, %283 : vector<16x64xf32>
    %cst_142 = arith.constant 0.000000e+00 : f32
    %285 = vector.broadcast %cst_142 : f32 to vector<16x64xf32>
    %286 = arith.maximumf %284, %285 : vector<16x64xf32>
    %287 = arith.truncf %286 : vector<16x64xf32> to vector<16x64xbf16>
    %cst_143 = arith.constant 0.000000e+00 : bf16
    %288 = vector.broadcast %cst_143 : bf16 to vector<16x9xbf16>
    %289 = tpu.concatenate %288, %287, %288 in 1 : vector<16x9xbf16>, vector<16x64xbf16>, vector<16x9xbf16> -> vector<16x82xbf16>
    %cst_144 = arith.constant 0.000000e+00 : f32
    %290 = vector.broadcast %cst_144 : f32 to vector<16x64xf32>
    %291 = vector.extract_strided_slice %289 {offsets = [0, 0], sizes = [16, 64], strides = [1, 1]} : vector<16x82xbf16> to vector<16x64xbf16>
    %c0_i32_145 = arith.constant 0 : i32
    %292 = arith.sitofp %c0_i32_145 : i32 to bf16
    %293 = vector.shape_cast %14 : vector<1x64xi1> to vector<1x64xi1>
    %294 = vector.broadcast %293 : vector<1x64xi1> to vector<16x64xi1>
    %295 = vector.broadcast %292 : bf16 to vector<16x64xbf16>
    %296 = arith.select %294, %291, %295 : vector<16x64xi1>, vector<16x64xbf16>
    %c0_146 = arith.constant 0 : index
    %c0_147 = arith.constant 0 : index
    %c0_148 = arith.constant 0 : index
    %297 = vector.load %arg12[%c0_146, %c0_147, %c0_148] : memref<9x16x16xbf16, #tpu.memory_space<vmem>>, vector<1x16x16xbf16>
    %298 = vector.shape_cast %297 : vector<1x16x16xbf16> to vector<16x16xbf16>
    %cst_149 = arith.constant dense<0.000000e+00> : vector<16x64xf32>
    %299 = tpu.matmul %298, %296, %cst_149 {dimension_numbers = #tpu.dot_dimension_numbers<[1], [0], [0], [1], [0, 0, 1, 1], [], []>} : vector<16x16xbf16>, vector<16x64xbf16>, vector<16x64xf32> -> vector<16x64xf32>
    %300 = arith.addf %290, %299 : vector<16x64xf32>
    %301 = vector.extract_strided_slice %289 {offsets = [0, 1], sizes = [16, 64], strides = [1, 1]} : vector<16x82xbf16> to vector<16x64xbf16>
    %c1_150 = arith.constant 1 : index
    %c0_151 = arith.constant 0 : index
    %c0_152 = arith.constant 0 : index
    %302 = vector.load %arg12[%c1_150, %c0_151, %c0_152] : memref<9x16x16xbf16, #tpu.memory_space<vmem>>, vector<1x16x16xbf16>
    %303 = vector.shape_cast %302 : vector<1x16x16xbf16> to vector<16x16xbf16>
    %cst_153 = arith.constant dense<0.000000e+00> : vector<16x64xf32>
    %304 = tpu.matmul %303, %301, %cst_153 {dimension_numbers = #tpu.dot_dimension_numbers<[1], [0], [0], [1], [0, 0, 1, 1], [], []>} : vector<16x16xbf16>, vector<16x64xbf16>, vector<16x64xf32> -> vector<16x64xf32>
    %305 = arith.addf %300, %304 : vector<16x64xf32>
    %306 = vector.extract_strided_slice %289 {offsets = [0, 2], sizes = [16, 64], strides = [1, 1]} : vector<16x82xbf16> to vector<16x64xbf16>
    %c0_i32_154 = arith.constant 0 : i32
    %307 = arith.sitofp %c0_i32_154 : i32 to bf16
    %308 = vector.shape_cast %16 : vector<1x64xi1> to vector<1x64xi1>
    %309 = vector.broadcast %308 : vector<1x64xi1> to vector<16x64xi1>
    %310 = vector.broadcast %307 : bf16 to vector<16x64xbf16>
    %311 = arith.select %309, %306, %310 : vector<16x64xi1>, vector<16x64xbf16>
    %c2_155 = arith.constant 2 : index
    %c0_156 = arith.constant 0 : index
    %c0_157 = arith.constant 0 : index
    %312 = vector.load %arg12[%c2_155, %c0_156, %c0_157] : memref<9x16x16xbf16, #tpu.memory_space<vmem>>, vector<1x16x16xbf16>
    %313 = vector.shape_cast %312 : vector<1x16x16xbf16> to vector<16x16xbf16>
    %cst_158 = arith.constant dense<0.000000e+00> : vector<16x64xf32>
    %314 = tpu.matmul %313, %311, %cst_158 {dimension_numbers = #tpu.dot_dimension_numbers<[1], [0], [0], [1], [0, 0, 1, 1], [], []>} : vector<16x16xbf16>, vector<16x64xbf16>, vector<16x64xf32> -> vector<16x64xf32>
    %315 = arith.addf %305, %314 : vector<16x64xf32>
    %316 = vector.extract_strided_slice %289 {offsets = [0, 8], sizes = [16, 64], strides = [1, 1]} : vector<16x82xbf16> to vector<16x64xbf16>
    %c0_i32_159 = arith.constant 0 : i32
    %317 = arith.sitofp %c0_i32_159 : i32 to bf16
    %318 = vector.shape_cast %14 : vector<1x64xi1> to vector<1x64xi1>
    %319 = vector.broadcast %318 : vector<1x64xi1> to vector<16x64xi1>
    %320 = vector.broadcast %317 : bf16 to vector<16x64xbf16>
    %321 = arith.select %319, %316, %320 : vector<16x64xi1>, vector<16x64xbf16>
    %c3_160 = arith.constant 3 : index
    %c0_161 = arith.constant 0 : index
    %c0_162 = arith.constant 0 : index
    %322 = vector.load %arg12[%c3_160, %c0_161, %c0_162] : memref<9x16x16xbf16, #tpu.memory_space<vmem>>, vector<1x16x16xbf16>
    %323 = vector.shape_cast %322 : vector<1x16x16xbf16> to vector<16x16xbf16>
    %cst_163 = arith.constant dense<0.000000e+00> : vector<16x64xf32>
    %324 = tpu.matmul %323, %321, %cst_163 {dimension_numbers = #tpu.dot_dimension_numbers<[1], [0], [0], [1], [0, 0, 1, 1], [], []>} : vector<16x16xbf16>, vector<16x64xbf16>, vector<16x64xf32> -> vector<16x64xf32>
    %325 = arith.addf %315, %324 : vector<16x64xf32>
    %326 = vector.extract_strided_slice %289 {offsets = [0, 9], sizes = [16, 64], strides = [1, 1]} : vector<16x82xbf16> to vector<16x64xbf16>
    %c4_164 = arith.constant 4 : index
    %c0_165 = arith.constant 0 : index
    %c0_166 = arith.constant 0 : index
    %327 = vector.load %arg12[%c4_164, %c0_165, %c0_166] : memref<9x16x16xbf16, #tpu.memory_space<vmem>>, vector<1x16x16xbf16>
    %328 = vector.shape_cast %327 : vector<1x16x16xbf16> to vector<16x16xbf16>
    %cst_167 = arith.constant dense<0.000000e+00> : vector<16x64xf32>
    %329 = tpu.matmul %328, %326, %cst_167 {dimension_numbers = #tpu.dot_dimension_numbers<[1], [0], [0], [1], [0, 0, 1, 1], [], []>} : vector<16x16xbf16>, vector<16x64xbf16>, vector<16x64xf32> -> vector<16x64xf32>
    %330 = arith.addf %325, %329 : vector<16x64xf32>
    %331 = vector.extract_strided_slice %289 {offsets = [0, 10], sizes = [16, 64], strides = [1, 1]} : vector<16x82xbf16> to vector<16x64xbf16>
    %c0_i32_168 = arith.constant 0 : i32
    %332 = arith.sitofp %c0_i32_168 : i32 to bf16
    %333 = vector.shape_cast %16 : vector<1x64xi1> to vector<1x64xi1>
    %334 = vector.broadcast %333 : vector<1x64xi1> to vector<16x64xi1>
    %335 = vector.broadcast %332 : bf16 to vector<16x64xbf16>
    %336 = arith.select %334, %331, %335 : vector<16x64xi1>, vector<16x64xbf16>
    %c5_169 = arith.constant 5 : index
    %c0_170 = arith.constant 0 : index
    %c0_171 = arith.constant 0 : index
    %337 = vector.load %arg12[%c5_169, %c0_170, %c0_171] : memref<9x16x16xbf16, #tpu.memory_space<vmem>>, vector<1x16x16xbf16>
    %338 = vector.shape_cast %337 : vector<1x16x16xbf16> to vector<16x16xbf16>
    %cst_172 = arith.constant dense<0.000000e+00> : vector<16x64xf32>
    %339 = tpu.matmul %338, %336, %cst_172 {dimension_numbers = #tpu.dot_dimension_numbers<[1], [0], [0], [1], [0, 0, 1, 1], [], []>} : vector<16x16xbf16>, vector<16x64xbf16>, vector<16x64xf32> -> vector<16x64xf32>
    %340 = arith.addf %330, %339 : vector<16x64xf32>
    %341 = vector.extract_strided_slice %289 {offsets = [0, 16], sizes = [16, 64], strides = [1, 1]} : vector<16x82xbf16> to vector<16x64xbf16>
    %c0_i32_173 = arith.constant 0 : i32
    %342 = arith.sitofp %c0_i32_173 : i32 to bf16
    %343 = vector.shape_cast %14 : vector<1x64xi1> to vector<1x64xi1>
    %344 = vector.broadcast %343 : vector<1x64xi1> to vector<16x64xi1>
    %345 = vector.broadcast %342 : bf16 to vector<16x64xbf16>
    %346 = arith.select %344, %341, %345 : vector<16x64xi1>, vector<16x64xbf16>
    %c6_174 = arith.constant 6 : index
    %c0_175 = arith.constant 0 : index
    %c0_176 = arith.constant 0 : index
    %347 = vector.load %arg12[%c6_174, %c0_175, %c0_176] : memref<9x16x16xbf16, #tpu.memory_space<vmem>>, vector<1x16x16xbf16>
    %348 = vector.shape_cast %347 : vector<1x16x16xbf16> to vector<16x16xbf16>
    %cst_177 = arith.constant dense<0.000000e+00> : vector<16x64xf32>
    %349 = tpu.matmul %348, %346, %cst_177 {dimension_numbers = #tpu.dot_dimension_numbers<[1], [0], [0], [1], [0, 0, 1, 1], [], []>} : vector<16x16xbf16>, vector<16x64xbf16>, vector<16x64xf32> -> vector<16x64xf32>
    %350 = arith.addf %340, %349 : vector<16x64xf32>
    %351 = vector.extract_strided_slice %289 {offsets = [0, 17], sizes = [16, 64], strides = [1, 1]} : vector<16x82xbf16> to vector<16x64xbf16>
    %c7_178 = arith.constant 7 : index
    %c0_179 = arith.constant 0 : index
    %c0_180 = arith.constant 0 : index
    %352 = vector.load %arg12[%c7_178, %c0_179, %c0_180] : memref<9x16x16xbf16, #tpu.memory_space<vmem>>, vector<1x16x16xbf16>
    %353 = vector.shape_cast %352 : vector<1x16x16xbf16> to vector<16x16xbf16>
    %cst_181 = arith.constant dense<0.000000e+00> : vector<16x64xf32>
    %354 = tpu.matmul %353, %351, %cst_181 {dimension_numbers = #tpu.dot_dimension_numbers<[1], [0], [0], [1], [0, 0, 1, 1], [], []>} : vector<16x16xbf16>, vector<16x64xbf16>, vector<16x64xf32> -> vector<16x64xf32>
    %355 = arith.addf %350, %354 : vector<16x64xf32>
    %356 = vector.extract_strided_slice %289 {offsets = [0, 18], sizes = [16, 64], strides = [1, 1]} : vector<16x82xbf16> to vector<16x64xbf16>
    %c0_i32_182 = arith.constant 0 : i32
    %357 = arith.sitofp %c0_i32_182 : i32 to bf16
    %358 = vector.shape_cast %16 : vector<1x64xi1> to vector<1x64xi1>
    %359 = vector.broadcast %358 : vector<1x64xi1> to vector<16x64xi1>
    %360 = vector.broadcast %357 : bf16 to vector<16x64xbf16>
    %361 = arith.select %359, %356, %360 : vector<16x64xi1>, vector<16x64xbf16>
    %c8_183 = arith.constant 8 : index
    %c0_184 = arith.constant 0 : index
    %c0_185 = arith.constant 0 : index
    %362 = vector.load %arg12[%c8_183, %c0_184, %c0_185] : memref<9x16x16xbf16, #tpu.memory_space<vmem>>, vector<1x16x16xbf16>
    %363 = vector.shape_cast %362 : vector<1x16x16xbf16> to vector<16x16xbf16>
    %cst_186 = arith.constant dense<0.000000e+00> : vector<16x64xf32>
    %364 = tpu.matmul %363, %361, %cst_186 {dimension_numbers = #tpu.dot_dimension_numbers<[1], [0], [0], [1], [0, 0, 1, 1], [], []>} : vector<16x16xbf16>, vector<16x64xbf16>, vector<16x64xf32> -> vector<16x64xf32>
    %365 = arith.addf %355, %364 : vector<16x64xf32>
    %c0_187 = arith.constant 0 : index
    %c0_188 = arith.constant 0 : index
    %366 = vector.load %arg13[%c0_187, %c0_188] : memref<16x1xf32, #tpu.memory_space<vmem>>, vector<16x1xf32>
    %367 = vector.broadcast %366 : vector<16x1xf32> to vector<16x64xf32>
    %368 = arith.addf %365, %367 : vector<16x64xf32>
    %cst_189 = arith.constant 0.000000e+00 : f32
    %369 = vector.broadcast %cst_189 : f32 to vector<16x64xf32>
    %370 = arith.maximumf %368, %369 : vector<16x64xf32>
    %371 = arith.truncf %370 : vector<16x64xf32> to vector<16x64xbf16>
    %cst_190 = arith.constant 0.000000e+00 : bf16
    %372 = vector.broadcast %cst_190 : bf16 to vector<16x9xbf16>
    %373 = tpu.concatenate %371, %372 in 1 : vector<16x64xbf16>, vector<16x9xbf16> -> vector<16x73xbf16>
    %374 = vector.extract_strided_slice %373 {offsets = [0, 0], sizes = [16, 64], strides = [1, 1]} : vector<16x73xbf16> to vector<16x64xbf16>
    %375 = vector.extract_strided_slice %373 {offsets = [0, 1], sizes = [16, 64], strides = [1, 1]} : vector<16x73xbf16> to vector<16x64xbf16>
    %376 = arith.maximumf %374, %375 : vector<16x64xbf16>
    %377 = vector.extract_strided_slice %373 {offsets = [0, 8], sizes = [16, 64], strides = [1, 1]} : vector<16x73xbf16> to vector<16x64xbf16>
    %378 = vector.extract_strided_slice %373 {offsets = [0, 9], sizes = [16, 64], strides = [1, 1]} : vector<16x73xbf16> to vector<16x64xbf16>
    %379 = arith.maximumf %377, %378 : vector<16x64xbf16>
    %380 = arith.maximumf %376, %379 : vector<16x64xbf16>
    %c0_191 = arith.constant 0 : index
    %c0_192 = arith.constant 0 : index
    %381 = vector.load %arg3[%c0_191, %c0_192] : memref<64x16xbf16, #tpu.memory_space<vmem>>, vector<64x16xbf16>
    %cst_193 = arith.constant dense<0.000000e+00> : vector<16x16xf32>
    %382 = tpu.matmul %380, %381, %cst_193 {dimension_numbers = #tpu.dot_dimension_numbers<[1], [0], [0], [1], [0, 0, 1, 1], [], []>} : vector<16x64xbf16>, vector<64x16xbf16>, vector<16x16xf32> -> vector<16x16xf32>
    %383 = arith.truncf %382 : vector<16x16xf32> to vector<16x16xbf16>
    %cst_194 = arith.constant 0.000000e+00 : bf16
    %384 = vector.broadcast %cst_194 : bf16 to vector<16x5xbf16>
    %385 = tpu.concatenate %384, %383, %384 in 1 : vector<16x5xbf16>, vector<16x16xbf16>, vector<16x5xbf16> -> vector<16x26xbf16>
    %cst_195 = arith.constant 0.000000e+00 : f32
    %386 = vector.broadcast %cst_195 : f32 to vector<32x16xf32>
    %387 = vector.extract_strided_slice %385 {offsets = [0, 0], sizes = [16, 16], strides = [1, 1]} : vector<16x26xbf16> to vector<16x16xbf16>
    %c0_i32_196 = arith.constant 0 : i32
    %388 = arith.sitofp %c0_i32_196 : i32 to bf16
    %389 = vector.shape_cast %21 : vector<1x16xi1> to vector<1x16xi1>
    %390 = vector.broadcast %389 : vector<1x16xi1> to vector<16x16xi1>
    %391 = vector.broadcast %388 : bf16 to vector<16x16xbf16>
    %392 = arith.select %390, %387, %391 : vector<16x16xi1>, vector<16x16xbf16>
    %c0_197 = arith.constant 0 : index
    %c0_198 = arith.constant 0 : index
    %c0_199 = arith.constant 0 : index
    %393 = vector.load %arg14[%c0_197, %c0_198, %c0_199] : memref<9x32x16xbf16, #tpu.memory_space<vmem>>, vector<1x32x16xbf16>
    %394 = vector.shape_cast %393 : vector<1x32x16xbf16> to vector<32x16xbf16>
    %cst_200 = arith.constant dense<0.000000e+00> : vector<32x16xf32>
    %395 = tpu.matmul %394, %392, %cst_200 {dimension_numbers = #tpu.dot_dimension_numbers<[1], [0], [0], [1], [0, 0, 1, 1], [], []>} : vector<32x16xbf16>, vector<16x16xbf16>, vector<32x16xf32> -> vector<32x16xf32>
    %396 = arith.addf %386, %395 : vector<32x16xf32>
    %397 = vector.extract_strided_slice %385 {offsets = [0, 1], sizes = [16, 16], strides = [1, 1]} : vector<16x26xbf16> to vector<16x16xbf16>
    %c1_201 = arith.constant 1 : index
    %c0_202 = arith.constant 0 : index
    %c0_203 = arith.constant 0 : index
    %398 = vector.load %arg14[%c1_201, %c0_202, %c0_203] : memref<9x32x16xbf16, #tpu.memory_space<vmem>>, vector<1x32x16xbf16>
    %399 = vector.shape_cast %398 : vector<1x32x16xbf16> to vector<32x16xbf16>
    %cst_204 = arith.constant dense<0.000000e+00> : vector<32x16xf32>
    %400 = tpu.matmul %399, %397, %cst_204 {dimension_numbers = #tpu.dot_dimension_numbers<[1], [0], [0], [1], [0, 0, 1, 1], [], []>} : vector<32x16xbf16>, vector<16x16xbf16>, vector<32x16xf32> -> vector<32x16xf32>
    %401 = arith.addf %396, %400 : vector<32x16xf32>
    %402 = vector.extract_strided_slice %385 {offsets = [0, 2], sizes = [16, 16], strides = [1, 1]} : vector<16x26xbf16> to vector<16x16xbf16>
    %c0_i32_205 = arith.constant 0 : i32
    %403 = arith.sitofp %c0_i32_205 : i32 to bf16
    %404 = vector.shape_cast %23 : vector<1x16xi1> to vector<1x16xi1>
    %405 = vector.broadcast %404 : vector<1x16xi1> to vector<16x16xi1>
    %406 = vector.broadcast %403 : bf16 to vector<16x16xbf16>
    %407 = arith.select %405, %402, %406 : vector<16x16xi1>, vector<16x16xbf16>
    %c2_206 = arith.constant 2 : index
    %c0_207 = arith.constant 0 : index
    %c0_208 = arith.constant 0 : index
    %408 = vector.load %arg14[%c2_206, %c0_207, %c0_208] : memref<9x32x16xbf16, #tpu.memory_space<vmem>>, vector<1x32x16xbf16>
    %409 = vector.shape_cast %408 : vector<1x32x16xbf16> to vector<32x16xbf16>
    %cst_209 = arith.constant dense<0.000000e+00> : vector<32x16xf32>
    %410 = tpu.matmul %409, %407, %cst_209 {dimension_numbers = #tpu.dot_dimension_numbers<[1], [0], [0], [1], [0, 0, 1, 1], [], []>} : vector<32x16xbf16>, vector<16x16xbf16>, vector<32x16xf32> -> vector<32x16xf32>
    %411 = arith.addf %401, %410 : vector<32x16xf32>
    %412 = vector.extract_strided_slice %385 {offsets = [0, 4], sizes = [16, 16], strides = [1, 1]} : vector<16x26xbf16> to vector<16x16xbf16>
    %c0_i32_210 = arith.constant 0 : i32
    %413 = arith.sitofp %c0_i32_210 : i32 to bf16
    %414 = vector.shape_cast %21 : vector<1x16xi1> to vector<1x16xi1>
    %415 = vector.broadcast %414 : vector<1x16xi1> to vector<16x16xi1>
    %416 = vector.broadcast %413 : bf16 to vector<16x16xbf16>
    %417 = arith.select %415, %412, %416 : vector<16x16xi1>, vector<16x16xbf16>
    %c3_211 = arith.constant 3 : index
    %c0_212 = arith.constant 0 : index
    %c0_213 = arith.constant 0 : index
    %418 = vector.load %arg14[%c3_211, %c0_212, %c0_213] : memref<9x32x16xbf16, #tpu.memory_space<vmem>>, vector<1x32x16xbf16>
    %419 = vector.shape_cast %418 : vector<1x32x16xbf16> to vector<32x16xbf16>
    %cst_214 = arith.constant dense<0.000000e+00> : vector<32x16xf32>
    %420 = tpu.matmul %419, %417, %cst_214 {dimension_numbers = #tpu.dot_dimension_numbers<[1], [0], [0], [1], [0, 0, 1, 1], [], []>} : vector<32x16xbf16>, vector<16x16xbf16>, vector<32x16xf32> -> vector<32x16xf32>
    %421 = arith.addf %411, %420 : vector<32x16xf32>
    %422 = vector.extract_strided_slice %385 {offsets = [0, 5], sizes = [16, 16], strides = [1, 1]} : vector<16x26xbf16> to vector<16x16xbf16>
    %c4_215 = arith.constant 4 : index
    %c0_216 = arith.constant 0 : index
    %c0_217 = arith.constant 0 : index
    %423 = vector.load %arg14[%c4_215, %c0_216, %c0_217] : memref<9x32x16xbf16, #tpu.memory_space<vmem>>, vector<1x32x16xbf16>
    %424 = vector.shape_cast %423 : vector<1x32x16xbf16> to vector<32x16xbf16>
    %cst_218 = arith.constant dense<0.000000e+00> : vector<32x16xf32>
    %425 = tpu.matmul %424, %422, %cst_218 {dimension_numbers = #tpu.dot_dimension_numbers<[1], [0], [0], [1], [0, 0, 1, 1], [], []>} : vector<32x16xbf16>, vector<16x16xbf16>, vector<32x16xf32> -> vector<32x16xf32>
    %426 = arith.addf %421, %425 : vector<32x16xf32>
    %427 = vector.extract_strided_slice %385 {offsets = [0, 6], sizes = [16, 16], strides = [1, 1]} : vector<16x26xbf16> to vector<16x16xbf16>
    %c0_i32_219 = arith.constant 0 : i32
    %428 = arith.sitofp %c0_i32_219 : i32 to bf16
    %429 = vector.shape_cast %23 : vector<1x16xi1> to vector<1x16xi1>
    %430 = vector.broadcast %429 : vector<1x16xi1> to vector<16x16xi1>
    %431 = vector.broadcast %428 : bf16 to vector<16x16xbf16>
    %432 = arith.select %430, %427, %431 : vector<16x16xi1>, vector<16x16xbf16>
    %c5_220 = arith.constant 5 : index
    %c0_221 = arith.constant 0 : index
    %c0_222 = arith.constant 0 : index
    %433 = vector.load %arg14[%c5_220, %c0_221, %c0_222] : memref<9x32x16xbf16, #tpu.memory_space<vmem>>, vector<1x32x16xbf16>
    %434 = vector.shape_cast %433 : vector<1x32x16xbf16> to vector<32x16xbf16>
    %cst_223 = arith.constant dense<0.000000e+00> : vector<32x16xf32>
    %435 = tpu.matmul %434, %432, %cst_223 {dimension_numbers = #tpu.dot_dimension_numbers<[1], [0], [0], [1], [0, 0, 1, 1], [], []>} : vector<32x16xbf16>, vector<16x16xbf16>, vector<32x16xf32> -> vector<32x16xf32>
    %436 = arith.addf %426, %435 : vector<32x16xf32>
    %437 = vector.extract_strided_slice %385 {offsets = [0, 8], sizes = [16, 16], strides = [1, 1]} : vector<16x26xbf16> to vector<16x16xbf16>
    %c0_i32_224 = arith.constant 0 : i32
    %438 = arith.sitofp %c0_i32_224 : i32 to bf16
    %439 = vector.shape_cast %21 : vector<1x16xi1> to vector<1x16xi1>
    %440 = vector.broadcast %439 : vector<1x16xi1> to vector<16x16xi1>
    %441 = vector.broadcast %438 : bf16 to vector<16x16xbf16>
    %442 = arith.select %440, %437, %441 : vector<16x16xi1>, vector<16x16xbf16>
    %c6_225 = arith.constant 6 : index
    %c0_226 = arith.constant 0 : index
    %c0_227 = arith.constant 0 : index
    %443 = vector.load %arg14[%c6_225, %c0_226, %c0_227] : memref<9x32x16xbf16, #tpu.memory_space<vmem>>, vector<1x32x16xbf16>
    %444 = vector.shape_cast %443 : vector<1x32x16xbf16> to vector<32x16xbf16>
    %cst_228 = arith.constant dense<0.000000e+00> : vector<32x16xf32>
    %445 = tpu.matmul %444, %442, %cst_228 {dimension_numbers = #tpu.dot_dimension_numbers<[1], [0], [0], [1], [0, 0, 1, 1], [], []>} : vector<32x16xbf16>, vector<16x16xbf16>, vector<32x16xf32> -> vector<32x16xf32>
    %446 = arith.addf %436, %445 : vector<32x16xf32>
    %447 = vector.extract_strided_slice %385 {offsets = [0, 9], sizes = [16, 16], strides = [1, 1]} : vector<16x26xbf16> to vector<16x16xbf16>
    %c7_229 = arith.constant 7 : index
    %c0_230 = arith.constant 0 : index
    %c0_231 = arith.constant 0 : index
    %448 = vector.load %arg14[%c7_229, %c0_230, %c0_231] : memref<9x32x16xbf16, #tpu.memory_space<vmem>>, vector<1x32x16xbf16>
    %449 = vector.shape_cast %448 : vector<1x32x16xbf16> to vector<32x16xbf16>
    %cst_232 = arith.constant dense<0.000000e+00> : vector<32x16xf32>
    %450 = tpu.matmul %449, %447, %cst_232 {dimension_numbers = #tpu.dot_dimension_numbers<[1], [0], [0], [1], [0, 0, 1, 1], [], []>} : vector<32x16xbf16>, vector<16x16xbf16>, vector<32x16xf32> -> vector<32x16xf32>
    %451 = arith.addf %446, %450 : vector<32x16xf32>
    %452 = vector.extract_strided_slice %385 {offsets = [0, 10], sizes = [16, 16], strides = [1, 1]} : vector<16x26xbf16> to vector<16x16xbf16>
    %c0_i32_233 = arith.constant 0 : i32
    %453 = arith.sitofp %c0_i32_233 : i32 to bf16
    %454 = vector.shape_cast %23 : vector<1x16xi1> to vector<1x16xi1>
    %455 = vector.broadcast %454 : vector<1x16xi1> to vector<16x16xi1>
    %456 = vector.broadcast %453 : bf16 to vector<16x16xbf16>
    %457 = arith.select %455, %452, %456 : vector<16x16xi1>, vector<16x16xbf16>
    %c8_234 = arith.constant 8 : index
    %c0_235 = arith.constant 0 : index
    %c0_236 = arith.constant 0 : index
    %458 = vector.load %arg14[%c8_234, %c0_235, %c0_236] : memref<9x32x16xbf16, #tpu.memory_space<vmem>>, vector<1x32x16xbf16>
    %459 = vector.shape_cast %458 : vector<1x32x16xbf16> to vector<32x16xbf16>
    %cst_237 = arith.constant dense<0.000000e+00> : vector<32x16xf32>
    %460 = tpu.matmul %459, %457, %cst_237 {dimension_numbers = #tpu.dot_dimension_numbers<[1], [0], [0], [1], [0, 0, 1, 1], [], []>} : vector<32x16xbf16>, vector<16x16xbf16>, vector<32x16xf32> -> vector<32x16xf32>
    %461 = arith.addf %451, %460 : vector<32x16xf32>
    %c0_238 = arith.constant 0 : index
    %c0_239 = arith.constant 0 : index
    %462 = vector.load %arg15[%c0_238, %c0_239] : memref<32x1xf32, #tpu.memory_space<vmem>>, vector<32x1xf32>
    %463 = vector.broadcast %462 : vector<32x1xf32> to vector<32x16xf32>
    %464 = arith.addf %461, %463 : vector<32x16xf32>
    %cst_240 = arith.constant 0.000000e+00 : f32
    %465 = vector.broadcast %cst_240 : f32 to vector<32x16xf32>
    %466 = arith.maximumf %464, %465 : vector<32x16xf32>
    %467 = arith.truncf %466 : vector<32x16xf32> to vector<32x16xbf16>
    %c0_241 = arith.constant 0 : index
    %c0_242 = arith.constant 0 : index
    %468 = vector.load %arg4[%c0_241, %c0_242] : memref<16x64xbf16, #tpu.memory_space<vmem>>, vector<16x64xbf16>
    %cst_243 = arith.constant dense<0.000000e+00> : vector<32x64xf32>
    %469 = tpu.matmul %467, %468, %cst_243 {dimension_numbers = #tpu.dot_dimension_numbers<[1], [0], [0], [1], [0, 0, 1, 1], [], []>} : vector<32x16xbf16>, vector<16x64xbf16>, vector<32x64xf32> -> vector<32x64xf32>
    %470 = arith.truncf %469 : vector<32x64xf32> to vector<32x64xbf16>
    %471 = tpu.concatenate %470, %371 in 0 : vector<32x64xbf16>, vector<16x64xbf16> -> vector<48x64xbf16>
    %cst_244 = arith.constant 0.000000e+00 : bf16
    %472 = vector.broadcast %cst_244 : bf16 to vector<48x9xbf16>
    %473 = tpu.concatenate %472, %471, %472 in 1 : vector<48x9xbf16>, vector<48x64xbf16>, vector<48x9xbf16> -> vector<48x82xbf16>
    %cst_245 = arith.constant 0.000000e+00 : f32
    %474 = vector.broadcast %cst_245 : f32 to vector<16x64xf32>
    %475 = vector.extract_strided_slice %473 {offsets = [0, 0], sizes = [48, 64], strides = [1, 1]} : vector<48x82xbf16> to vector<48x64xbf16>
    %c0_i32_246 = arith.constant 0 : i32
    %476 = arith.sitofp %c0_i32_246 : i32 to bf16
    %477 = vector.shape_cast %14 : vector<1x64xi1> to vector<1x64xi1>
    %478 = vector.broadcast %477 : vector<1x64xi1> to vector<48x64xi1>
    %479 = vector.broadcast %476 : bf16 to vector<48x64xbf16>
    %480 = arith.select %478, %475, %479 : vector<48x64xi1>, vector<48x64xbf16>
    %c0_247 = arith.constant 0 : index
    %c0_248 = arith.constant 0 : index
    %c0_249 = arith.constant 0 : index
    %481 = vector.load %arg16[%c0_247, %c0_248, %c0_249] : memref<9x16x48xbf16, #tpu.memory_space<vmem>>, vector<1x16x48xbf16>
    %482 = vector.shape_cast %481 : vector<1x16x48xbf16> to vector<16x48xbf16>
    %cst_250 = arith.constant dense<0.000000e+00> : vector<16x64xf32>
    %483 = tpu.matmul %482, %480, %cst_250 {dimension_numbers = #tpu.dot_dimension_numbers<[1], [0], [0], [1], [0, 0, 1, 1], [], []>} : vector<16x48xbf16>, vector<48x64xbf16>, vector<16x64xf32> -> vector<16x64xf32>
    %484 = arith.addf %474, %483 : vector<16x64xf32>
    %485 = vector.extract_strided_slice %473 {offsets = [0, 1], sizes = [48, 64], strides = [1, 1]} : vector<48x82xbf16> to vector<48x64xbf16>
    %c1_251 = arith.constant 1 : index
    %c0_252 = arith.constant 0 : index
    %c0_253 = arith.constant 0 : index
    %486 = vector.load %arg16[%c1_251, %c0_252, %c0_253] : memref<9x16x48xbf16, #tpu.memory_space<vmem>>, vector<1x16x48xbf16>
    %487 = vector.shape_cast %486 : vector<1x16x48xbf16> to vector<16x48xbf16>
    %cst_254 = arith.constant dense<0.000000e+00> : vector<16x64xf32>
    %488 = tpu.matmul %487, %485, %cst_254 {dimension_numbers = #tpu.dot_dimension_numbers<[1], [0], [0], [1], [0, 0, 1, 1], [], []>} : vector<16x48xbf16>, vector<48x64xbf16>, vector<16x64xf32> -> vector<16x64xf32>
    %489 = arith.addf %484, %488 : vector<16x64xf32>
    %490 = vector.extract_strided_slice %473 {offsets = [0, 2], sizes = [48, 64], strides = [1, 1]} : vector<48x82xbf16> to vector<48x64xbf16>
    %c0_i32_255 = arith.constant 0 : i32
    %491 = arith.sitofp %c0_i32_255 : i32 to bf16
    %492 = vector.shape_cast %16 : vector<1x64xi1> to vector<1x64xi1>
    %493 = vector.broadcast %492 : vector<1x64xi1> to vector<48x64xi1>
    %494 = vector.broadcast %491 : bf16 to vector<48x64xbf16>
    %495 = arith.select %493, %490, %494 : vector<48x64xi1>, vector<48x64xbf16>
    %c2_256 = arith.constant 2 : index
    %c0_257 = arith.constant 0 : index
    %c0_258 = arith.constant 0 : index
    %496 = vector.load %arg16[%c2_256, %c0_257, %c0_258] : memref<9x16x48xbf16, #tpu.memory_space<vmem>>, vector<1x16x48xbf16>
    %497 = vector.shape_cast %496 : vector<1x16x48xbf16> to vector<16x48xbf16>
    %cst_259 = arith.constant dense<0.000000e+00> : vector<16x64xf32>
    %498 = tpu.matmul %497, %495, %cst_259 {dimension_numbers = #tpu.dot_dimension_numbers<[1], [0], [0], [1], [0, 0, 1, 1], [], []>} : vector<16x48xbf16>, vector<48x64xbf16>, vector<16x64xf32> -> vector<16x64xf32>
    %499 = arith.addf %489, %498 : vector<16x64xf32>
    %500 = vector.extract_strided_slice %473 {offsets = [0, 8], sizes = [48, 64], strides = [1, 1]} : vector<48x82xbf16> to vector<48x64xbf16>
    %c0_i32_260 = arith.constant 0 : i32
    %501 = arith.sitofp %c0_i32_260 : i32 to bf16
    %502 = vector.shape_cast %14 : vector<1x64xi1> to vector<1x64xi1>
    %503 = vector.broadcast %502 : vector<1x64xi1> to vector<48x64xi1>
    %504 = vector.broadcast %501 : bf16 to vector<48x64xbf16>
    %505 = arith.select %503, %500, %504 : vector<48x64xi1>, vector<48x64xbf16>
    %c3_261 = arith.constant 3 : index
    %c0_262 = arith.constant 0 : index
    %c0_263 = arith.constant 0 : index
    %506 = vector.load %arg16[%c3_261, %c0_262, %c0_263] : memref<9x16x48xbf16, #tpu.memory_space<vmem>>, vector<1x16x48xbf16>
    %507 = vector.shape_cast %506 : vector<1x16x48xbf16> to vector<16x48xbf16>
    %cst_264 = arith.constant dense<0.000000e+00> : vector<16x64xf32>
    %508 = tpu.matmul %507, %505, %cst_264 {dimension_numbers = #tpu.dot_dimension_numbers<[1], [0], [0], [1], [0, 0, 1, 1], [], []>} : vector<16x48xbf16>, vector<48x64xbf16>, vector<16x64xf32> -> vector<16x64xf32>
    %509 = arith.addf %499, %508 : vector<16x64xf32>
    %510 = vector.extract_strided_slice %473 {offsets = [0, 9], sizes = [48, 64], strides = [1, 1]} : vector<48x82xbf16> to vector<48x64xbf16>
    %c4_265 = arith.constant 4 : index
    %c0_266 = arith.constant 0 : index
    %c0_267 = arith.constant 0 : index
    %511 = vector.load %arg16[%c4_265, %c0_266, %c0_267] : memref<9x16x48xbf16, #tpu.memory_space<vmem>>, vector<1x16x48xbf16>
    %512 = vector.shape_cast %511 : vector<1x16x48xbf16> to vector<16x48xbf16>
    %cst_268 = arith.constant dense<0.000000e+00> : vector<16x64xf32>
    %513 = tpu.matmul %512, %510, %cst_268 {dimension_numbers = #tpu.dot_dimension_numbers<[1], [0], [0], [1], [0, 0, 1, 1], [], []>} : vector<16x48xbf16>, vector<48x64xbf16>, vector<16x64xf32> -> vector<16x64xf32>
    %514 = arith.addf %509, %513 : vector<16x64xf32>
    %515 = vector.extract_strided_slice %473 {offsets = [0, 10], sizes = [48, 64], strides = [1, 1]} : vector<48x82xbf16> to vector<48x64xbf16>
    %c0_i32_269 = arith.constant 0 : i32
    %516 = arith.sitofp %c0_i32_269 : i32 to bf16
    %517 = vector.shape_cast %16 : vector<1x64xi1> to vector<1x64xi1>
    %518 = vector.broadcast %517 : vector<1x64xi1> to vector<48x64xi1>
    %519 = vector.broadcast %516 : bf16 to vector<48x64xbf16>
    %520 = arith.select %518, %515, %519 : vector<48x64xi1>, vector<48x64xbf16>
    %c5_270 = arith.constant 5 : index
    %c0_271 = arith.constant 0 : index
    %c0_272 = arith.constant 0 : index
    %521 = vector.load %arg16[%c5_270, %c0_271, %c0_272] : memref<9x16x48xbf16, #tpu.memory_space<vmem>>, vector<1x16x48xbf16>
    %522 = vector.shape_cast %521 : vector<1x16x48xbf16> to vector<16x48xbf16>
    %cst_273 = arith.constant dense<0.000000e+00> : vector<16x64xf32>
    %523 = tpu.matmul %522, %520, %cst_273 {dimension_numbers = #tpu.dot_dimension_numbers<[1], [0], [0], [1], [0, 0, 1, 1], [], []>} : vector<16x48xbf16>, vector<48x64xbf16>, vector<16x64xf32> -> vector<16x64xf32>
    %524 = arith.addf %514, %523 : vector<16x64xf32>
    %525 = vector.extract_strided_slice %473 {offsets = [0, 16], sizes = [48, 64], strides = [1, 1]} : vector<48x82xbf16> to vector<48x64xbf16>
    %c0_i32_274 = arith.constant 0 : i32
    %526 = arith.sitofp %c0_i32_274 : i32 to bf16
    %527 = vector.shape_cast %14 : vector<1x64xi1> to vector<1x64xi1>
    %528 = vector.broadcast %527 : vector<1x64xi1> to vector<48x64xi1>
    %529 = vector.broadcast %526 : bf16 to vector<48x64xbf16>
    %530 = arith.select %528, %525, %529 : vector<48x64xi1>, vector<48x64xbf16>
    %c6_275 = arith.constant 6 : index
    %c0_276 = arith.constant 0 : index
    %c0_277 = arith.constant 0 : index
    %531 = vector.load %arg16[%c6_275, %c0_276, %c0_277] : memref<9x16x48xbf16, #tpu.memory_space<vmem>>, vector<1x16x48xbf16>
    %532 = vector.shape_cast %531 : vector<1x16x48xbf16> to vector<16x48xbf16>
    %cst_278 = arith.constant dense<0.000000e+00> : vector<16x64xf32>
    %533 = tpu.matmul %532, %530, %cst_278 {dimension_numbers = #tpu.dot_dimension_numbers<[1], [0], [0], [1], [0, 0, 1, 1], [], []>} : vector<16x48xbf16>, vector<48x64xbf16>, vector<16x64xf32> -> vector<16x64xf32>
    %534 = arith.addf %524, %533 : vector<16x64xf32>
    %535 = vector.extract_strided_slice %473 {offsets = [0, 17], sizes = [48, 64], strides = [1, 1]} : vector<48x82xbf16> to vector<48x64xbf16>
    %c7_279 = arith.constant 7 : index
    %c0_280 = arith.constant 0 : index
    %c0_281 = arith.constant 0 : index
    %536 = vector.load %arg16[%c7_279, %c0_280, %c0_281] : memref<9x16x48xbf16, #tpu.memory_space<vmem>>, vector<1x16x48xbf16>
    %537 = vector.shape_cast %536 : vector<1x16x48xbf16> to vector<16x48xbf16>
    %cst_282 = arith.constant dense<0.000000e+00> : vector<16x64xf32>
    %538 = tpu.matmul %537, %535, %cst_282 {dimension_numbers = #tpu.dot_dimension_numbers<[1], [0], [0], [1], [0, 0, 1, 1], [], []>} : vector<16x48xbf16>, vector<48x64xbf16>, vector<16x64xf32> -> vector<16x64xf32>
    %539 = arith.addf %534, %538 : vector<16x64xf32>
    %540 = vector.extract_strided_slice %473 {offsets = [0, 18], sizes = [48, 64], strides = [1, 1]} : vector<48x82xbf16> to vector<48x64xbf16>
    %c0_i32_283 = arith.constant 0 : i32
    %541 = arith.sitofp %c0_i32_283 : i32 to bf16
    %542 = vector.shape_cast %16 : vector<1x64xi1> to vector<1x64xi1>
    %543 = vector.broadcast %542 : vector<1x64xi1> to vector<48x64xi1>
    %544 = vector.broadcast %541 : bf16 to vector<48x64xbf16>
    %545 = arith.select %543, %540, %544 : vector<48x64xi1>, vector<48x64xbf16>
    %c8_284 = arith.constant 8 : index
    %c0_285 = arith.constant 0 : index
    %c0_286 = arith.constant 0 : index
    %546 = vector.load %arg16[%c8_284, %c0_285, %c0_286] : memref<9x16x48xbf16, #tpu.memory_space<vmem>>, vector<1x16x48xbf16>
    %547 = vector.shape_cast %546 : vector<1x16x48xbf16> to vector<16x48xbf16>
    %cst_287 = arith.constant dense<0.000000e+00> : vector<16x64xf32>
    %548 = tpu.matmul %547, %545, %cst_287 {dimension_numbers = #tpu.dot_dimension_numbers<[1], [0], [0], [1], [0, 0, 1, 1], [], []>} : vector<16x48xbf16>, vector<48x64xbf16>, vector<16x64xf32> -> vector<16x64xf32>
    %549 = arith.addf %539, %548 : vector<16x64xf32>
    %c0_288 = arith.constant 0 : index
    %c0_289 = arith.constant 0 : index
    %550 = vector.load %arg17[%c0_288, %c0_289] : memref<16x1xf32, #tpu.memory_space<vmem>>, vector<16x1xf32>
    %551 = vector.broadcast %550 : vector<16x1xf32> to vector<16x64xf32>
    %552 = arith.addf %549, %551 : vector<16x64xf32>
    %cst_290 = arith.constant 0.000000e+00 : f32
    %553 = vector.broadcast %cst_290 : f32 to vector<16x64xf32>
    %554 = arith.maximumf %552, %553 : vector<16x64xf32>
    %555 = arith.truncf %554 : vector<16x64xf32> to vector<16x64xbf16>
    %c0_291 = arith.constant 0 : index
    %c0_292 = arith.constant 0 : index
    %556 = vector.load %arg5[%c0_291, %c0_292] : memref<64x256xbf16, #tpu.memory_space<vmem>>, vector<64x256xbf16>
    %cst_293 = arith.constant dense<0.000000e+00> : vector<16x256xf32>
    %557 = tpu.matmul %555, %556, %cst_293 {dimension_numbers = #tpu.dot_dimension_numbers<[1], [0], [0], [1], [0, 0, 1, 1], [], []>} : vector<16x64xbf16>, vector<64x256xbf16>, vector<16x256xf32> -> vector<16x256xf32>
    %558 = arith.truncf %557 : vector<16x256xf32> to vector<16x256xbf16>
    %559 = tpu.concatenate %558, %191 in 0 : vector<16x256xbf16>, vector<8x256xbf16> -> vector<24x256xbf16>
    %cst_294 = arith.constant 0.000000e+00 : bf16
    %560 = vector.broadcast %cst_294 : bf16 to vector<24x17xbf16>
    %561 = tpu.concatenate %560, %559, %560 in 1 : vector<24x17xbf16>, vector<24x256xbf16>, vector<24x17xbf16> -> vector<24x290xbf16>
    %cst_295 = arith.constant 0.000000e+00 : f32
    %562 = vector.broadcast %cst_295 : f32 to vector<8x256xf32>
    %563 = vector.extract_strided_slice %561 {offsets = [0, 0], sizes = [24, 256], strides = [1, 1]} : vector<24x290xbf16> to vector<24x256xbf16>
    %c0_i32_296 = arith.constant 0 : i32
    %564 = arith.sitofp %c0_i32_296 : i32 to bf16
    %565 = vector.shape_cast %7 : vector<1x256xi1> to vector<1x256xi1>
    %566 = vector.broadcast %565 : vector<1x256xi1> to vector<24x256xi1>
    %567 = vector.broadcast %564 : bf16 to vector<24x256xbf16>
    %568 = arith.select %566, %563, %567 : vector<24x256xi1>, vector<24x256xbf16>
    %c0_297 = arith.constant 0 : index
    %c0_298 = arith.constant 0 : index
    %c0_299 = arith.constant 0 : index
    %569 = vector.load %arg18[%c0_297, %c0_298, %c0_299] : memref<9x8x24xbf16, #tpu.memory_space<vmem>>, vector<1x8x24xbf16>
    %570 = vector.shape_cast %569 : vector<1x8x24xbf16> to vector<8x24xbf16>
    %cst_300 = arith.constant dense<0.000000e+00> : vector<8x256xf32>
    %571 = tpu.matmul %570, %568, %cst_300 {dimension_numbers = #tpu.dot_dimension_numbers<[1], [0], [0], [1], [0, 0, 1, 1], [], []>} : vector<8x24xbf16>, vector<24x256xbf16>, vector<8x256xf32> -> vector<8x256xf32>
    %572 = arith.addf %562, %571 : vector<8x256xf32>
    %573 = vector.extract_strided_slice %561 {offsets = [0, 1], sizes = [24, 256], strides = [1, 1]} : vector<24x290xbf16> to vector<24x256xbf16>
    %c1_301 = arith.constant 1 : index
    %c0_302 = arith.constant 0 : index
    %c0_303 = arith.constant 0 : index
    %574 = vector.load %arg18[%c1_301, %c0_302, %c0_303] : memref<9x8x24xbf16, #tpu.memory_space<vmem>>, vector<1x8x24xbf16>
    %575 = vector.shape_cast %574 : vector<1x8x24xbf16> to vector<8x24xbf16>
    %cst_304 = arith.constant dense<0.000000e+00> : vector<8x256xf32>
    %576 = tpu.matmul %575, %573, %cst_304 {dimension_numbers = #tpu.dot_dimension_numbers<[1], [0], [0], [1], [0, 0, 1, 1], [], []>} : vector<8x24xbf16>, vector<24x256xbf16>, vector<8x256xf32> -> vector<8x256xf32>
    %577 = arith.addf %572, %576 : vector<8x256xf32>
    %578 = vector.extract_strided_slice %561 {offsets = [0, 2], sizes = [24, 256], strides = [1, 1]} : vector<24x290xbf16> to vector<24x256xbf16>
    %c0_i32_305 = arith.constant 0 : i32
    %579 = arith.sitofp %c0_i32_305 : i32 to bf16
    %580 = vector.shape_cast %9 : vector<1x256xi1> to vector<1x256xi1>
    %581 = vector.broadcast %580 : vector<1x256xi1> to vector<24x256xi1>
    %582 = vector.broadcast %579 : bf16 to vector<24x256xbf16>
    %583 = arith.select %581, %578, %582 : vector<24x256xi1>, vector<24x256xbf16>
    %c2_306 = arith.constant 2 : index
    %c0_307 = arith.constant 0 : index
    %c0_308 = arith.constant 0 : index
    %584 = vector.load %arg18[%c2_306, %c0_307, %c0_308] : memref<9x8x24xbf16, #tpu.memory_space<vmem>>, vector<1x8x24xbf16>
    %585 = vector.shape_cast %584 : vector<1x8x24xbf16> to vector<8x24xbf16>
    %cst_309 = arith.constant dense<0.000000e+00> : vector<8x256xf32>
    %586 = tpu.matmul %585, %583, %cst_309 {dimension_numbers = #tpu.dot_dimension_numbers<[1], [0], [0], [1], [0, 0, 1, 1], [], []>} : vector<8x24xbf16>, vector<24x256xbf16>, vector<8x256xf32> -> vector<8x256xf32>
    %587 = arith.addf %577, %586 : vector<8x256xf32>
    %588 = vector.extract_strided_slice %561 {offsets = [0, 16], sizes = [24, 256], strides = [1, 1]} : vector<24x290xbf16> to vector<24x256xbf16>
    %c0_i32_310 = arith.constant 0 : i32
    %589 = arith.sitofp %c0_i32_310 : i32 to bf16
    %590 = vector.shape_cast %7 : vector<1x256xi1> to vector<1x256xi1>
    %591 = vector.broadcast %590 : vector<1x256xi1> to vector<24x256xi1>
    %592 = vector.broadcast %589 : bf16 to vector<24x256xbf16>
    %593 = arith.select %591, %588, %592 : vector<24x256xi1>, vector<24x256xbf16>
    %c3_311 = arith.constant 3 : index
    %c0_312 = arith.constant 0 : index
    %c0_313 = arith.constant 0 : index
    %594 = vector.load %arg18[%c3_311, %c0_312, %c0_313] : memref<9x8x24xbf16, #tpu.memory_space<vmem>>, vector<1x8x24xbf16>
    %595 = vector.shape_cast %594 : vector<1x8x24xbf16> to vector<8x24xbf16>
    %cst_314 = arith.constant dense<0.000000e+00> : vector<8x256xf32>
    %596 = tpu.matmul %595, %593, %cst_314 {dimension_numbers = #tpu.dot_dimension_numbers<[1], [0], [0], [1], [0, 0, 1, 1], [], []>} : vector<8x24xbf16>, vector<24x256xbf16>, vector<8x256xf32> -> vector<8x256xf32>
    %597 = arith.addf %587, %596 : vector<8x256xf32>
    %598 = vector.extract_strided_slice %561 {offsets = [0, 17], sizes = [24, 256], strides = [1, 1]} : vector<24x290xbf16> to vector<24x256xbf16>
    %c4_315 = arith.constant 4 : index
    %c0_316 = arith.constant 0 : index
    %c0_317 = arith.constant 0 : index
    %599 = vector.load %arg18[%c4_315, %c0_316, %c0_317] : memref<9x8x24xbf16, #tpu.memory_space<vmem>>, vector<1x8x24xbf16>
    %600 = vector.shape_cast %599 : vector<1x8x24xbf16> to vector<8x24xbf16>
    %cst_318 = arith.constant dense<0.000000e+00> : vector<8x256xf32>
    %601 = tpu.matmul %600, %598, %cst_318 {dimension_numbers = #tpu.dot_dimension_numbers<[1], [0], [0], [1], [0, 0, 1, 1], [], []>} : vector<8x24xbf16>, vector<24x256xbf16>, vector<8x256xf32> -> vector<8x256xf32>
    %602 = arith.addf %597, %601 : vector<8x256xf32>
    %603 = vector.extract_strided_slice %561 {offsets = [0, 18], sizes = [24, 256], strides = [1, 1]} : vector<24x290xbf16> to vector<24x256xbf16>
    %c0_i32_319 = arith.constant 0 : i32
    %604 = arith.sitofp %c0_i32_319 : i32 to bf16
    %605 = vector.shape_cast %9 : vector<1x256xi1> to vector<1x256xi1>
    %606 = vector.broadcast %605 : vector<1x256xi1> to vector<24x256xi1>
    %607 = vector.broadcast %604 : bf16 to vector<24x256xbf16>
    %608 = arith.select %606, %603, %607 : vector<24x256xi1>, vector<24x256xbf16>
    %c5_320 = arith.constant 5 : index
    %c0_321 = arith.constant 0 : index
    %c0_322 = arith.constant 0 : index
    %609 = vector.load %arg18[%c5_320, %c0_321, %c0_322] : memref<9x8x24xbf16, #tpu.memory_space<vmem>>, vector<1x8x24xbf16>
    %610 = vector.shape_cast %609 : vector<1x8x24xbf16> to vector<8x24xbf16>
    %cst_323 = arith.constant dense<0.000000e+00> : vector<8x256xf32>
    %611 = tpu.matmul %610, %608, %cst_323 {dimension_numbers = #tpu.dot_dimension_numbers<[1], [0], [0], [1], [0, 0, 1, 1], [], []>} : vector<8x24xbf16>, vector<24x256xbf16>, vector<8x256xf32> -> vector<8x256xf32>
    %612 = arith.addf %602, %611 : vector<8x256xf32>
    %613 = vector.extract_strided_slice %561 {offsets = [0, 32], sizes = [24, 256], strides = [1, 1]} : vector<24x290xbf16> to vector<24x256xbf16>
    %c0_i32_324 = arith.constant 0 : i32
    %614 = arith.sitofp %c0_i32_324 : i32 to bf16
    %615 = vector.shape_cast %7 : vector<1x256xi1> to vector<1x256xi1>
    %616 = vector.broadcast %615 : vector<1x256xi1> to vector<24x256xi1>
    %617 = vector.broadcast %614 : bf16 to vector<24x256xbf16>
    %618 = arith.select %616, %613, %617 : vector<24x256xi1>, vector<24x256xbf16>
    %c6_325 = arith.constant 6 : index
    %c0_326 = arith.constant 0 : index
    %c0_327 = arith.constant 0 : index
    %619 = vector.load %arg18[%c6_325, %c0_326, %c0_327] : memref<9x8x24xbf16, #tpu.memory_space<vmem>>, vector<1x8x24xbf16>
    %620 = vector.shape_cast %619 : vector<1x8x24xbf16> to vector<8x24xbf16>
    %cst_328 = arith.constant dense<0.000000e+00> : vector<8x256xf32>
    %621 = tpu.matmul %620, %618, %cst_328 {dimension_numbers = #tpu.dot_dimension_numbers<[1], [0], [0], [1], [0, 0, 1, 1], [], []>} : vector<8x24xbf16>, vector<24x256xbf16>, vector<8x256xf32> -> vector<8x256xf32>
    %622 = arith.addf %612, %621 : vector<8x256xf32>
    %623 = vector.extract_strided_slice %561 {offsets = [0, 33], sizes = [24, 256], strides = [1, 1]} : vector<24x290xbf16> to vector<24x256xbf16>
    %c7_329 = arith.constant 7 : index
    %c0_330 = arith.constant 0 : index
    %c0_331 = arith.constant 0 : index
    %624 = vector.load %arg18[%c7_329, %c0_330, %c0_331] : memref<9x8x24xbf16, #tpu.memory_space<vmem>>, vector<1x8x24xbf16>
    %625 = vector.shape_cast %624 : vector<1x8x24xbf16> to vector<8x24xbf16>
    %cst_332 = arith.constant dense<0.000000e+00> : vector<8x256xf32>
    %626 = tpu.matmul %625, %623, %cst_332 {dimension_numbers = #tpu.dot_dimension_numbers<[1], [0], [0], [1], [0, 0, 1, 1], [], []>} : vector<8x24xbf16>, vector<24x256xbf16>, vector<8x256xf32> -> vector<8x256xf32>
    %627 = arith.addf %622, %626 : vector<8x256xf32>
    %628 = vector.extract_strided_slice %561 {offsets = [0, 34], sizes = [24, 256], strides = [1, 1]} : vector<24x290xbf16> to vector<24x256xbf16>
    %c0_i32_333 = arith.constant 0 : i32
    %629 = arith.sitofp %c0_i32_333 : i32 to bf16
    %630 = vector.shape_cast %9 : vector<1x256xi1> to vector<1x256xi1>
    %631 = vector.broadcast %630 : vector<1x256xi1> to vector<24x256xi1>
    %632 = vector.broadcast %629 : bf16 to vector<24x256xbf16>
    %633 = arith.select %631, %628, %632 : vector<24x256xi1>, vector<24x256xbf16>
    %c8_334 = arith.constant 8 : index
    %c0_335 = arith.constant 0 : index
    %c0_336 = arith.constant 0 : index
    %634 = vector.load %arg18[%c8_334, %c0_335, %c0_336] : memref<9x8x24xbf16, #tpu.memory_space<vmem>>, vector<1x8x24xbf16>
    %635 = vector.shape_cast %634 : vector<1x8x24xbf16> to vector<8x24xbf16>
    %cst_337 = arith.constant dense<0.000000e+00> : vector<8x256xf32>
    %636 = tpu.matmul %635, %633, %cst_337 {dimension_numbers = #tpu.dot_dimension_numbers<[1], [0], [0], [1], [0, 0, 1, 1], [], []>} : vector<8x24xbf16>, vector<24x256xbf16>, vector<8x256xf32> -> vector<8x256xf32>
    %637 = arith.addf %627, %636 : vector<8x256xf32>
    %c0_338 = arith.constant 0 : index
    %c0_339 = arith.constant 0 : index
    %638 = vector.load %arg19[%c0_338, %c0_339] : memref<8x1xf32, #tpu.memory_space<vmem>>, vector<8x1xf32>
    %639 = vector.broadcast %638 : vector<8x1xf32> to vector<8x256xf32>
    %640 = arith.addf %637, %639 : vector<8x256xf32>
    %cst_340 = arith.constant 0.000000e+00 : f32
    %641 = vector.broadcast %cst_340 : f32 to vector<8x256xf32>
    %642 = arith.maximumf %640, %641 : vector<8x256xf32>
    %643 = arith.truncf %642 : vector<8x256xf32> to vector<8x256xbf16>
    %c0_341 = arith.constant 0 : index
    %c0_342 = arith.constant 0 : index
    %644 = vector.load %arg20[%c0_341, %c0_342] : memref<2x8xbf16, #tpu.memory_space<vmem>>, vector<2x8xbf16>
    %cst_343 = arith.constant dense<0.000000e+00> : vector<2x256xf32>
    %645 = tpu.matmul %644, %643, %cst_343 {dimension_numbers = #tpu.dot_dimension_numbers<[1], [0], [0], [1], [0, 0, 1, 1], [], []>} : vector<2x8xbf16>, vector<8x256xbf16>, vector<2x256xf32> -> vector<2x256xf32>
    %c0_344 = arith.constant 0 : index
    %c0_345 = arith.constant 0 : index
    %646 = vector.load %arg21[%c0_344, %c0_345] : memref<2x1xf32, #tpu.memory_space<vmem>>, vector<2x1xf32>
    %647 = vector.broadcast %646 : vector<2x1xf32> to vector<2x256xf32>
    %648 = arith.addf %645, %647 : vector<2x256xf32>
    %c0_346 = arith.constant 0 : index
    %c0_347 = arith.constant 0 : index
    %c0_348 = arith.constant 0 : index
    %649 = vector.load %arg22[%c0_346, %c0_347, %c0_348] : memref<1x2x256xf32, #tpu.memory_space<vmem>>, vector<1x2x256xf32>
    %650 = vector.shape_cast %649 : vector<1x2x256xf32> to vector<2x256xf32>
    %651 = vector.shape_cast %648 : vector<2x256xf32> to vector<1x2x256xf32>
    tpu.vector_store %arg22[%c0_346, %c0_347, %c0_348], %651 {strides = array<i32>} : memref<1x2x256xf32, #tpu.memory_space<vmem>>, vector<1x2x256xf32>,
    return
  }
  func.func @transform_0(%arg0: i32) -> (i32, i32, i32) {
    %c0_i32 = arith.constant 0 : i32
    %c0_i32_0 = arith.constant 0 : i32
    %c0_i32_1 = arith.constant 0 : i32
    return %arg0, %c0_i32, %c0_i32_0 : i32, i32, i32
  }
  func.func @transform_1(%arg0: i32) -> (i32, i32) {
    %c0_i32 = arith.constant 0 : i32
    %c0_i32_0 = arith.constant 0 : i32
    %c0_i32_1 = arith.constant 0 : i32
    return %c0_i32, %c0_i32_0 : i32, i32
  }
  func.func @transform_2(%arg0: i32) -> (i32, i32) {
    %c0_i32 = arith.constant 0 : i32
    %c0_i32_0 = arith.constant 0 : i32
    %c0_i32_1 = arith.constant 0 : i32
    return %c0_i32, %c0_i32_0 : i32, i32
  }
  func.func @transform_3(%arg0: i32) -> (i32, i32) {
    %c0_i32 = arith.constant 0 : i32
    %c0_i32_0 = arith.constant 0 : i32
    %c0_i32_1 = arith.constant 0 : i32
    return %c0_i32, %c0_i32_0 : i32, i32
  }
  func.func @transform_4(%arg0: i32) -> (i32, i32) {
    %c0_i32 = arith.constant 0 : i32
    %c0_i32_0 = arith.constant 0 : i32
    %c0_i32_1 = arith.constant 0 : i32
    return %c0_i32, %c0_i32_0 : i32, i32
  }
  func.func @transform_5(%arg0: i32) -> (i32, i32, i32) {
    %c0_i32 = arith.constant 0 : i32
    %c0_i32_0 = arith.constant 0 : i32
    %c0_i32_1 = arith.constant 0 : i32
    %c0_i32_2 = arith.constant 0 : i32
    return %c0_i32, %c0_i32_0, %c0_i32_1 : i32, i32, i32
  }
  func.func @transform_6(%arg0: i32) -> (i32, i32) {
    %c0_i32 = arith.constant 0 : i32
    %c0_i32_0 = arith.constant 0 : i32
    %c0_i32_1 = arith.constant 0 : i32
    return %c0_i32, %c0_i32_0 : i32, i32
  }
  func.func @transform_7(%arg0: i32) -> (i32, i32, i32) {
    %c0_i32 = arith.constant 0 : i32
    %c0_i32_0 = arith.constant 0 : i32
    %c0_i32_1 = arith.constant 0 : i32
    %c0_i32_2 = arith.constant 0 : i32
    return %c0_i32, %c0_i32_0, %c0_i32_1 : i32, i32, i32
  }
  func.func @transform_8(%arg0: i32) -> (i32, i32) {
    %c0_i32 = arith.constant 0 : i32
    %c0_i32_0 = arith.constant 0 : i32
    %c0_i32_1 = arith.constant 0 : i32
    return %c0_i32, %c0_i32_0 : i32, i32
  }
  func.func @transform_9(%arg0: i32) -> (i32, i32, i32) {
    %c0_i32 = arith.constant 0 : i32
    %c0_i32_0 = arith.constant 0 : i32
    %c0_i32_1 = arith.constant 0 : i32
    %c0_i32_2 = arith.constant 0 : i32
    return %c0_i32, %c0_i32_0, %c0_i32_1 : i32, i32, i32
  }
  func.func @transform_10(%arg0: i32) -> (i32, i32) {
    %c0_i32 = arith.constant 0 : i32
    %c0_i32_0 = arith.constant 0 : i32
    %c0_i32_1 = arith.constant 0 : i32
    return %c0_i32, %c0_i32_0 : i32, i32
  }
  func.func @transform_11(%arg0: i32) -> (i32, i32, i32) {
    %c0_i32 = arith.constant 0 : i32
    %c0_i32_0 = arith.constant 0 : i32
    %c0_i32_1 = arith.constant 0 : i32
    %c0_i32_2 = arith.constant 0 : i32
    return %c0_i32, %c0_i32_0, %c0_i32_1 : i32, i32, i32
  }
  func.func @transform_12(%arg0: i32) -> (i32, i32) {
    %c0_i32 = arith.constant 0 : i32
    %c0_i32_0 = arith.constant 0 : i32
    %c0_i32_1 = arith.constant 0 : i32
    return %c0_i32, %c0_i32_0 : i32, i32
  }
  func.func @transform_13(%arg0: i32) -> (i32, i32, i32) {
    %c0_i32 = arith.constant 0 : i32
    %c0_i32_0 = arith.constant 0 : i32
    %c0_i32_1 = arith.constant 0 : i32
    %c0_i32_2 = arith.constant 0 : i32
    return %c0_i32, %c0_i32_0, %c0_i32_1 : i32, i32, i32
  }
  func.func @transform_14(%arg0: i32) -> (i32, i32) {
    %c0_i32 = arith.constant 0 : i32
    %c0_i32_0 = arith.constant 0 : i32
    %c0_i32_1 = arith.constant 0 : i32
    return %c0_i32, %c0_i32_0 : i32, i32
  }
  func.func @transform_15(%arg0: i32) -> (i32, i32, i32) {
    %c0_i32 = arith.constant 0 : i32
    %c0_i32_0 = arith.constant 0 : i32
    %c0_i32_1 = arith.constant 0 : i32
    %c0_i32_2 = arith.constant 0 : i32
    return %c0_i32, %c0_i32_0, %c0_i32_1 : i32, i32, i32
  }
  func.func @transform_16(%arg0: i32) -> (i32, i32) {
    %c0_i32 = arith.constant 0 : i32
    %c0_i32_0 = arith.constant 0 : i32
    %c0_i32_1 = arith.constant 0 : i32
    return %c0_i32, %c0_i32_0 : i32, i32
  }
  func.func @transform_17(%arg0: i32) -> (i32, i32, i32) {
    %c0_i32 = arith.constant 0 : i32
    %c0_i32_0 = arith.constant 0 : i32
    %c0_i32_1 = arith.constant 0 : i32
    %c0_i32_2 = arith.constant 0 : i32
    return %c0_i32, %c0_i32_0, %c0_i32_1 : i32, i32, i32
  }
  func.func @transform_18(%arg0: i32) -> (i32, i32) {
    %c0_i32 = arith.constant 0 : i32
    %c0_i32_0 = arith.constant 0 : i32
    %c0_i32_1 = arith.constant 0 : i32
    return %c0_i32, %c0_i32_0 : i32, i32
  }
  func.func @transform_19(%arg0: i32) -> (i32, i32) {
    %c0_i32 = arith.constant 0 : i32
    %c0_i32_0 = arith.constant 0 : i32
    %c0_i32_1 = arith.constant 0 : i32
    return %c0_i32, %c0_i32_0 : i32, i32
  }
  func.func @transform_20(%arg0: i32) -> (i32, i32) {
    %c0_i32 = arith.constant 0 : i32
    %c0_i32_0 = arith.constant 0 : i32
    %c0_i32_1 = arith.constant 0 : i32
    return %c0_i32, %c0_i32_0 : i32, i32
  }
  func.func @transform_21(%arg0: i32) -> (i32, i32, i32) {
    %c0_i32 = arith.constant 0 : i32
    %c0_i32_0 = arith.constant 0 : i32
    %c0_i32_1 = arith.constant 0 : i32
    return %arg0, %c0_i32, %c0_i32_0 : i32, i32, i32
  }
}

</mosaic_0001>

<bundles_post_ra>
// kernel: a_call__.1
= control target key start
LH: loop header
LB: loop body
LE: loop exit
PB: predicated region body
PF: predicated region fallthrough
CT: control target
= control target key end

     0   :  { %s9206_s0 = inlined_call_operand.vmem [shape: f32[2,4,256], index: 0, kind: input, shape index: {}]   ;;  %s9207_s1 = inlined_call_operand.vmem [shape: bf16[256,64], index: 1, kind: input, shape index: {}]   ;;  %s9208_s2 = inlined_call_operand.hbm [shape: bf16[64,16], index: 2, kind: input, shape index: {}]   ;;  %s9209_s3 = inlined_call_operand.vmem [shape: bf16[16,64], index: 3, kind: input, shape index: {}]   ;;  %s9210_s4 = inlined_call_operand.vmem [shape: bf16[64,256], index: 4, kind: input, shape index: {}]   ;;  %s9211_s5 = inlined_call_operand.hbm [shape: bf16[9,8,4], index: 5, kind: input, shape index: {}]   ;;  %s9212_s6 = inlined_call_operand.hbm [shape: f32[8,1], index: 6, kind: input, shape index: {}]   ;;  %s9213_s7 = inlined_call_operand.hbm [shape: bf16[9,8,8], index: 7, kind: input, shape index: {}]   ;;  %s9214_s8 = inlined_call_operand.hbm [shape: f32[8,1], index: 8, kind: input, shape index: {}]   ;;  %s9215_s9 = inlined_call_operand.hbm [shape: bf16[9,16,8], index: 9, kind: input, shape index: {}]   ;;  %s9216_s10 = inlined_call_operand.hbm [shape: f32[16,1], index: 10, kind: input, shape index: {}]   ;;  %s9217_s11 = inlined_call_operand.hbm [shape: bf16[9,16,16], index: 11, kind: input, shape index: {}]   ;;  %s9218_s12 = inlined_call_operand.hbm [shape: f32[16,1], index: 12, kind: input, shape index: {}]   ;;  %s9219_s13 = inlined_call_operand.vmem [shape: bf16[9,32,16], index: 13, kind: input, shape index: {}]   ;;  %s9220_s14 = inlined_call_operand.hbm [shape: f32[32,1], index: 14, kind: input, shape index: {}]   ;;  %s9221_s15 = inlined_call_operand.vmem [shape: bf16[9,16,48], index: 15, kind: input, shape index: {}]   ;;  %s9222_s16 = inlined_call_operand.hbm [shape: f32[16,1], index: 16, kind: input, shape index: {}]   ;;  %s9223_s17 = inlined_call_operand.hbm [shape: bf16[9,8,24], index: 17, kind: input, shape index: {}]   ;;  %s9224_s18 = inlined_call_operand.hbm [shape: f32[8,1], index: 18, kind: input, shape index: {}]   ;;  %s9225_s19 = inlined_call_operand.vmem [shape: bf16[2,8], index: 19, kind: input, shape index: {}]   ;;  %s9226_s20 = inlined_call_operand.vmem [shape: f32[2,1], index: 20, kind: input, shape index: {}]   ;;  %s9227_s21 = inlined_call_operand.vmem [shape: f32[2,2,256], index: 21, kind: output, shape index: {}]  }
   0x1   :  { %9285 = sst [smem:[#allocation30_spill]] %s9206_s0 }
   0x2   :  { %9286 = sst [smem:[#allocation31_spill]] %s9207_s1 }
   0x3   :  { %9287 = sst [smem:[#allocation32_spill]] %s9208_s2 }
   0x4   :  { %9288 = sst [smem:[#allocation33_spill]] %s9209_s3 }
   0x5   :  { %9289 = sst [smem:[#allocation34_spill]] %s9210_s4 }
   0x6   :  { %9290 = sst [smem:[#allocation35_spill]] %s9211_s5 }
   0x7   :  { %9291 = sst [smem:[#allocation36_spill]] %s9213_s7 }
   0x8   :  { %9292 = sst [smem:[#allocation37_spill]] %s9219_s13 }
   0x9   :  { %9293 = sst [smem:[#allocation38_spill]] %s9221_s15 }
   0xa   :  { %9294 = sst [smem:[#allocation39_spill]] %s9225_s19 }
   0xb   :  { %9295 = sst [smem:[#allocation40_spill]] %s9226_s20 }
   0xc   :  { %9296 = sst [smem:[#allocation41_spill]] %s9227_s21 }
   0xd   :  { %26 = vsyncpa [#allocation3], 0 }
   0xe   :  { %27 = vsyncpa [#allocation5], 0 }
   0xf   :  { %28 = vsyncpa [#allocation8], 0 }
  0x10   :  { %29 = vsyncpa [#allocation11], 0 }
  0x11   :  { %30 = vsyncpa [#allocation14], 0 }
  0x12   :  { %31 = vsyncpa [#allocation17], 0 }
  0x13   :  { %32 = vsyncpa [#allocation20], 0  ;;  %s7640_s2 = smov 0  }
  0x14 LB: > { %9297 = sst [smem:[#allocation29_spill]] %s7482_s2  ;;  %s7646_s25 = sadd.s32 4294967295, %s7482_s2   ;;  %s7482_s2 = sphi %s7640_s2, %s38_s2  }
  0x15   : > { %p6133_p0 = scmp.ge.s32.totalorder %s7482_s2, 1  ;;  %p515_p1 = scmp.lt.s32.totalorder %s7482_s2, 3 }
  0x16   : > { %p9235_p2 = scmp.eq.s32.totalorder %s7646_s25, 0  ;;  %s7484_s27 = smov [#allocation4]  }
  0x17   : > { %p7651_p3 = pnand %p6133_p0, %p515_p1  ;;  %s549_s3 = sshll.u32 %s7484_s27, 4  ;;  %s7655_s3 = int_to_ptr.vmem [resolvable:$true] %s549_s3 }
  0x18   : > { %s7485_s28 = smov [#allocation7]   ;;  %s7486_s4 = smov [#allocation10]  }
  0x19   : > { %s9298_s26 = scalar_select %p7651_p3, 1, 0 }
  0x1a   : > { %p6883_p4 = pneg %p7651_p3  ;;  %s573_s29 = sshll.u32 %s7485_s28, 4  ;;  %s7659_s29 = int_to_ptr.vmem [resolvable:$true] %s573_s29 }
  0x1b   : > { %s597_s30 = sshll.u32 %s7486_s4, 4  ;;  %s7487_s5 = smov [#allocation13]   ;;  %s7667_s30 = int_to_ptr.vmem [resolvable:$true] %s597_s30 }
  0x1c   : > { %p7663_p5 = pnand %p9235_p2, %p6883_p4  ;;  %s7669_s22 = sshll.u32 %s7487_s5, 4  ;;  %s624_s22 = int_to_ptr.vmem [resolvable:$true] %s7669_s22 }
  0x1d   : > { %s9300_s24 = sld [smem:[#allocation35_spill]] }
  0x1e   : > { %p7679_p7 = pneg %p7663_p5 }
  0x23   : > { %s7084_s27 = scalar_lea.hbm %s9300_s24, 576 }
  0x24   : > { %p7085_p6 = scmp.ne.s32.totalorder %s9300_s24, %s7084_s27  ;;  %p7091_p10 = scmp.lt.u32.totalorder %s7084_s27, %s9300_s24 }
  0x26   : > { %p7087_p8 = pnand %p7679_p7, %p7085_p6 }
  0x28   : > { %p7088_p9 = pneg %p7087_p8 }
  0x2a   : > { %p7093_p11 = pnand %p7091_p10, %p7088_p9 }
  0x2c   : > { %7096 = shalt.err (!%p7093_p11)
}
  0x2d   : > { %s7097_s2 = scalar_lea.vmem %s7655_s3, 576  ;;  %p7105_p1 = scmp.lt.s32.totalorder %s7655_s3, %s7655_s3 }
  0x2e   : > { %p7098_p12 = scmp.ne.s32.totalorder %s7655_s3, %s7097_s2  ;;  %p7106_p4 = scmp.lt.s32.totalorder %s7097_s2, %s7097_s2 }
  0x30   : > { %p7100_p13 = pnand %p7098_p12, %p7679_p7  ;;  %p7107_p6 = por %p7106_p4, %p7105_p1 }
  0x32   : > { %p7101_p0 = pneg %p7100_p13 }
  0x34   : > { %p7108_p8 = pnand %p7107_p6, %p7101_p0 }
  0x36   : > { %7111 = shalt.err (!%p7108_p8)
}
  0x37   : > { %s7488_s23 = smov 64   ;;  %s7489_s1 = smov 4  }
  0x38   : > { %6889 = dma.hbm_to_vmem [thread:$0]  (!%p7663_p5), %s9300_s24, 576, %s7655_s3, [#allocation5], %s7488_s23, %s7488_s23, %s7489_s1  }
  0x39   : > { %s9302_s7 = sld [smem:[#allocation36_spill]] }
  0x3f   : > { %s7112_s2 = scalar_lea.hbm %s9302_s7, 576 }
  0x40   : > { %p7113_p9 = scmp.ne.s32.totalorder %s9302_s7, %s7112_s2  ;;  %p7119_p12 = scmp.lt.u32.totalorder %s7112_s2, %s9302_s7 }
  0x42   : > { %p7115_p10 = pnand %p7113_p9, %p7679_p7 }
  0x44   : > { %p7116_p11 = pneg %p7115_p10 }
  0x46   : > { %p7121_p13 = pnand %p7119_p12, %p7116_p11 }
  0x48   : > { %7124 = shalt.err (!%p7121_p13)
}
  0x49   : > { %s7125_s3 = scalar_lea.vmem %s7659_s29, 576  ;;  %p7133_p6 = scmp.lt.s32.totalorder %s7659_s29, %s7659_s29 }
  0x4a   : > { %p7126_p0 = scmp.ne.s32.totalorder %s7659_s29, %s7125_s3  ;;  %p7134_p8 = scmp.lt.s32.totalorder %s7125_s3, %s7125_s3 }
  0x4c   : > { %p7128_p1 = pnand %p7126_p0, %p7679_p7  ;;  %p7135_p9 = por %p7134_p8, %p7133_p6 }
  0x4e   : > { %p7129_p4 = pneg %p7128_p1 }
  0x50   : > { %p7136_p10 = pnand %p7135_p9, %p7129_p4 }
  0x52   : > { %7139 = shalt.err (!%p7136_p10)
}
  0x53   : > { %6895 = dma.hbm_to_vmem [thread:$0]  (!%p7663_p5), %s9302_s7, 576, %s7659_s29, [#allocation8], %s7488_s23, %s7488_s23, %s7489_s1  }
  0x54   : > { %s7140_s27 = scalar_lea.hbm %s9215_s9, 1152 }
  0x55   : > { %p7141_p11 = scmp.ne.s32.totalorder %s9215_s9, %s7140_s27  ;;  %p7147_p0 = scmp.lt.u32.totalorder %s7140_s27, %s9215_s9 }
  0x57   : > { %p7143_p12 = pnand %p7141_p11, %p7679_p7 }
  0x59   : > { %p7144_p13 = pneg %p7143_p12 }
  0x5b   : > { %p7149_p1 = pnand %p7147_p0, %p7144_p13 }
  0x5d   : > { %7152 = shalt.err (!%p7149_p1)
}
  0x5e   : > { %s7153_s29 = scalar_lea.vmem %s7667_s30, 1152  ;;  %p7161_p9 = scmp.lt.s32.totalorder %s7667_s30, %s7667_s30 }
  0x5f   : > { %p7154_p4 = scmp.ne.s32.totalorder %s7667_s30, %s7153_s29  ;;  %p7162_p10 = scmp.lt.s32.totalorder %s7153_s29, %s7153_s29 }
  0x61   : > { %p7156_p6 = pnand %p7154_p4, %p7679_p7  ;;  %p7163_p11 = por %p7162_p10, %p7161_p9 }
  0x63   : > { %p7157_p8 = pneg %p7156_p6 }
  0x65   : > { %p7164_p12 = pnand %p7163_p11, %p7157_p8 }
  0x67   : > { %7167 = shalt.err (!%p7164_p12)
}
  0x68   : > { %6901 = dma.hbm_to_vmem [thread:$0]  (!%p7663_p5), %s9215_s9, 1152, %s7667_s30, [#allocation11], %s7488_s23, %s7488_s23, %s7489_s1  }
  0x69   : > { %s7168_s20 = scalar_lea.hbm %s9217_s11, 1152 }
  0x6a   : > { %p7169_p13 = scmp.ne.s32.totalorder %s9217_s11, %s7168_s20  ;;  %p7175_p4 = scmp.lt.u32.totalorder %s7168_s20, %s9217_s11 }
  0x6c   : > { %p7171_p0 = pnand %p7169_p13, %p7679_p7 }
  0x6e   : > { %p7172_p1 = pneg %p7171_p0 }
  0x70   : > { %p7177_p6 = pnand %p7175_p4, %p7172_p1 }
  0x72   : > { %7180 = shalt.err (!%p7177_p6)
}
  0x73   : > { %s7181_s2 = scalar_lea.vmem %s624_s22, 1152  ;;  %p7189_p11 = scmp.lt.s32.totalorder %s624_s22, %s624_s22 }
  0x74   : > { %p7182_p8 = scmp.ne.s32.totalorder %s624_s22, %s7181_s2  ;;  %p7190_p12 = scmp.lt.s32.totalorder %s7181_s2, %s7181_s2 }
  0x76   : > { %p7184_p9 = pnand %p7182_p8, %p7679_p7  ;;  %p7191_p2 = por %p7190_p12, %p7189_p11 }
  0x78   : > { %p7185_p10 = pneg %p7184_p9 }
  0x7a   : > { %p7192_p3 = pnand %p7191_p2, %p7185_p10 }
  0x7c   : > { %7195 = shalt.err (!%p7192_p3)
}
  0x7d   : > { %6907 = dma.hbm_to_vmem [thread:$0]  (!%p7663_p5), %s9217_s11, 1152, %s624_s22, [#allocation14], %s7488_s23, %s7488_s23, %s7489_s1  }
  0x7e   : > { %s7490_s3 = smov [#allocation16]   ;;  %s7491_s15 = smov [#allocation19]  }
  0x7f   : > { %s652_s13 = sshll.u32 %s7490_s3, 4  ;;  %s681_s19 = sshll.u32 %s7491_s15, 4  ;;  %s653_s13 = int_to_ptr.vmem [resolvable:$true] %s652_s13  ;;  %s682_s19 = int_to_ptr.vmem [resolvable:$true] %s681_s19 }
  0x80   : > { %s7196_s28 = scalar_lea.hbm %s9220_s14, 512 }
  0x81   : > { %p7197_p2 = scmp.ne.s32.totalorder %s9220_s14, %s7196_s28  ;;  %p7203_p0 = scmp.lt.u32.totalorder %s7196_s28, %s9220_s14 }
  0x83   : > { %p7199_p3 = pnand %p7197_p2, %p7679_p7 }
  0x85   : > { %p7200_p13 = pneg %p7199_p3 }
  0x87   : > { %p7205_p1 = pnand %p7203_p0, %p7200_p13 }
  0x89   : > { %7208 = shalt.err (!%p7205_p1)
}
  0x8a   : > { %s7209_s22 = scalar_lea.vmem %s653_s13, 512  ;;  %p7217_p9 = scmp.lt.s32.totalorder %s653_s13, %s653_s13 }
  0x8b   : > { %p7210_p4 = scmp.ne.s32.totalorder %s653_s13, %s7209_s22  ;;  %p7218_p10 = scmp.lt.s32.totalorder %s7209_s22, %s7209_s22 }
  0x8d   : > { %p7212_p6 = pnand %p7210_p4, %p7679_p7  ;;  %p7219_p11 = por %p7218_p10, %p7217_p9 }
  0x8f   : > { %p7213_p8 = pneg %p7212_p6 }
  0x91   : > { %p7220_p12 = pnand %p7219_p11, %p7213_p8 }
  0x93   : > { %7223 = shalt.err (!%p7220_p12)
}
  0x94   : > { %s9237_s29 = smov 128   ;;  %s9239_s3 = smov 8  }
  0x95   : > { %6913 = dma.hbm_to_vmem [thread:$0]  (!%p7663_p5), %s9220_s14, 512, %s653_s13, [#allocation17], %s9237_s29, %s9237_s29, %s9239_s3  }
  0x96   : > { %s7224_s4 = scalar_lea.hbm %s9223_s17, 576 }
  0x97   : > { %p7225_p2 = scmp.ne.s32.totalorder %s9223_s17, %s7224_s4  ;;  %p7231_p0 = scmp.lt.u32.totalorder %s7224_s4, %s9223_s17 }
  0x99   : > { %p7227_p3 = pnand %p7225_p2, %p7679_p7 }
  0x9b   : > { %p7228_p13 = pneg %p7227_p3 }
  0x9d   : > { %p7233_p1 = pnand %p7231_p0, %p7228_p13 }
  0x9f   : > { %7236 = shalt.err (!%p7233_p1)
}
  0xa0   : > { %s7237_s15 = scalar_lea.vmem %s682_s19, 576  ;;  %p7245_p9 = scmp.lt.s32.totalorder %s682_s19, %s682_s19 }
  0xa1   : > { %p7238_p4 = scmp.ne.s32.totalorder %s682_s19, %s7237_s15  ;;  %p7246_p10 = scmp.lt.s32.totalorder %s7237_s15, %s7237_s15 }
  0xa3   : > { %p7240_p6 = pnand %p7238_p4, %p7679_p7  ;;  %p7247_p11 = por %p7246_p10, %p7245_p9 }
  0xa5   : > { %p7241_p8 = pneg %p7240_p6 }
  0xa7   : > { %p7248_p12 = pnand %p7247_p11, %p7241_p8 }
  0xa9   : > { %7251 = shalt.err (!%p7248_p12)
}
  0xaa   : > { %6919 = dma.hbm_to_vmem [thread:$0]  (!%p7663_p5), %s9223_s17, 576, %s682_s19, [#allocation20], %s7488_s23, %s7488_s23, %s7489_s1  }
  0xab   : > { %s7494_s27 = smov [#allocation2]   ;;  %s7495_s4 = smov [#allocation6]  }
  0xac   : > { %s530_s28 = sshll.u32 %s7494_s27, 4  ;;  %s563_s5 = sshll.u32 %s7495_s4, 4  ;;  %s531_s28 = int_to_ptr.vmem [resolvable:$true] %s530_s28  ;;  %s564_s5 = int_to_ptr.vmem [resolvable:$true] %s563_s5 }
  0xad   : > { %s9303_s22 = sld [smem:[#allocation32_spill]] }
  0xb3   : > { %s7252_s15 = scalar_lea.hbm %s9303_s22, 512 }
  0xb4   : > { %p7253_p2 = scmp.ne.s32.totalorder %s9303_s22, %s7252_s15  ;;  %p7259_p0 = scmp.lt.u32.totalorder %s7252_s15, %s9303_s22 }
  0xb6   : > { %p7255_p3 = pnand %p7253_p2, %p7679_p7 }
  0xb8   : > { %p7256_p13 = pneg %p7255_p3 }
  0xba   : > { %p7261_p1 = pnand %p7259_p0, %p7256_p13 }
  0xbc   : > { %7264 = shalt.err (!%p7261_p1)
}
  0xbd   : > { %s7265_s19 = scalar_lea.vmem %s531_s28, 512  ;;  %p7273_p9 = scmp.lt.s32.totalorder %s531_s28, %s531_s28 }
  0xbe   : > { %p7266_p4 = scmp.ne.s32.totalorder %s531_s28, %s7265_s19  ;;  %p7274_p10 = scmp.lt.s32.totalorder %s7265_s19, %s7265_s19 }
  0xc0   : > { %p7268_p6 = pnand %p7266_p4, %p7679_p7  ;;  %p7275_p11 = por %p7274_p10, %p7273_p9 }
  0xc2   : > { %p7269_p8 = pneg %p7268_p6 }
  0xc4   : > { %p7276_p12 = pnand %p7275_p11, %p7269_p8 }
  0xc6   : > { %7279 = shalt.err (!%p7276_p12)
}
  0xc7   : > { %6886 = dma.hbm_to_vmem [thread:$0]  (!%p7663_p5), %s9303_s22, 512, %s531_s28, [#allocation3], %s7488_s23, %s7488_s23, %s7489_s1  }
  0xc8   : > { %s7280_s27 = scalar_lea.hbm %s9212_s6, 128 }
  0xc9   : > { %p7281_p2 = scmp.ne.s32.totalorder %s9212_s6, %s7280_s27  ;;  %p7287_p0 = scmp.lt.u32.totalorder %s7280_s27, %s9212_s6 }
  0xcb   : > { %p7283_p3 = pnand %p7281_p2, %p7679_p7 }
  0xcd   : > { %p7284_p13 = pneg %p7283_p3 }
  0xcf   : > { %p7289_p1 = pnand %p7287_p0, %p7284_p13 }
  0xd1   : > { %7292 = shalt.err (!%p7289_p1)
}
  0xd2   : > { %s7293_s13 = scalar_lea.vmem %s564_s5, 128  ;;  %p7301_p9 = scmp.lt.s32.totalorder %s564_s5, %s564_s5 }
  0xd3   : > { %p7294_p4 = scmp.ne.s32.totalorder %s564_s5, %s7293_s13  ;;  %p7302_p10 = scmp.lt.s32.totalorder %s7293_s13, %s7293_s13 }
  0xd5   : > { %p7296_p6 = pnand %p7294_p4, %p7679_p7  ;;  %p7303_p11 = por %p7302_p10, %p7301_p9 }
  0xd7   : > { %p7297_p8 = pneg %p7296_p6 }
  0xd9   : > { %p7304_p12 = pnand %p7303_p11, %p7297_p8 }
  0xdb   : > { %7307 = shalt.err (!%p7304_p12)
}
  0xdc   : > { %6892 = dma.hbm_to_vmem [thread:$0]  (!%p7663_p5), %s9212_s6, 128, %s564_s5, [#allocation5]  }
  0xdd   : > { %s7496_s28 = smov [#allocation9]   ;;  %s7497_s7 = smov [#allocation12]  }
  0xde   : > { %s587_s19 = sshll.u32 %s7496_s28, 4  ;;  %s610_s29 = sshll.u32 %s7497_s7, 4  ;;  %s588_s19 = int_to_ptr.vmem [resolvable:$true] %s587_s19  ;;  %s611_s29 = int_to_ptr.vmem [resolvable:$true] %s610_s29 }
  0xdf   : > { %s7308_s27 = scalar_lea.hbm %s9214_s8, 128 }
  0xe0   : > { %p7309_p2 = scmp.ne.s32.totalorder %s9214_s8, %s7308_s27  ;;  %p7315_p0 = scmp.lt.u32.totalorder %s7308_s27, %s9214_s8 }
  0xe2   : > { %p7311_p3 = pnand %p7309_p2, %p7679_p7 }
  0xe4   : > { %p7312_p13 = pneg %p7311_p3 }
  0xe6   : > { %p7317_p1 = pnand %p7315_p0, %p7312_p13 }
  0xe8   : > { %7320 = shalt.err (!%p7317_p1)
}
  0xe9   : > { %s7321_s5 = scalar_lea.vmem %s588_s19, 128  ;;  %p7329_p9 = scmp.lt.s32.totalorder %s588_s19, %s588_s19 }
  0xea   : > { %p7322_p4 = scmp.ne.s32.totalorder %s588_s19, %s7321_s5  ;;  %p7330_p10 = scmp.lt.s32.totalorder %s7321_s5, %s7321_s5 }
  0xec   : > { %p7324_p6 = pnand %p7322_p4, %p7679_p7  ;;  %p7331_p11 = por %p7330_p10, %p7329_p9 }
  0xee   : > { %p7325_p8 = pneg %p7324_p6 }
  0xf0   : > { %p7332_p12 = pnand %p7331_p11, %p7325_p8 }
  0xf2   : > { %7335 = shalt.err (!%p7332_p12)
}
  0xf3   : > { %6898 = dma.hbm_to_vmem [thread:$0]  (!%p7663_p5), %s9214_s8, 128, %s588_s19, [#allocation8]  }
  0xf4   : > { %s7336_s7 = scalar_lea.hbm %s9216_s10, 256 }
  0xf5   : > { %p7337_p2 = scmp.ne.s32.totalorder %s9216_s10, %s7336_s7  ;;  %p7343_p0 = scmp.lt.u32.totalorder %s7336_s7, %s9216_s10 }
  0xf7   : > { %p7339_p3 = pnand %p7337_p2, %p7679_p7 }
  0xf9   : > { %p7340_p13 = pneg %p7339_p3 }
  0xfb   : > { %p7345_p1 = pnand %p7343_p0, %p7340_p13 }
  0xfd   : > { %7348 = shalt.err (!%p7345_p1)
}
  0xfe   : > { %s7349_s2 = scalar_lea.vmem %s611_s29, 256  ;;  %p7357_p9 = scmp.lt.s32.totalorder %s611_s29, %s611_s29 }
  0xff   : > { %p7350_p4 = scmp.ne.s32.totalorder %s611_s29, %s7349_s2  ;;  %p7358_p10 = scmp.lt.s32.totalorder %s7349_s2, %s7349_s2 }
 0x101   : > { %p7352_p6 = pnand %p7350_p4, %p7679_p7  ;;  %p7359_p11 = por %p7358_p10, %p7357_p9 }
 0x103   : > { %p7353_p8 = pneg %p7352_p6 }
 0x105   : > { %p7360_p12 = pnand %p7359_p11, %p7353_p8 }
 0x107   : > { %7363 = shalt.err (!%p7360_p12)
}
 0x108   : > { %s9304_s19 = smov 8   ;;  %s9305_s30 = smov 128  }
 0x109   : > { %6904 = dma.hbm_to_vmem [thread:$0]  (!%p7663_p5), %s9216_s10, 256, %s611_s29, [#allocation11], %s9305_s30, %s9305_s30, %s9304_s19  }
 0x10a   : > { %s7498_s13 = smov [#allocation15]   ;;  %s7499_s1 = smov [#allocation18]  }
 0x10b   : > { %s636_s23 = sshll.u32 %s7498_s13, 4  ;;  %s668_s28 = sshll.u32 %s7499_s1, 4  ;;  %s637_s23 = int_to_ptr.vmem [resolvable:$true] %s636_s23  ;;  %s669_s28 = int_to_ptr.vmem [resolvable:$true] %s668_s28 }
 0x10c   : > { %s7364_s20 = scalar_lea.hbm %s9218_s12, 256 }
 0x10d   : > { %p7365_p2 = scmp.ne.s32.totalorder %s9218_s12, %s7364_s20  ;;  %p7371_p0 = scmp.lt.u32.totalorder %s7364_s20, %s9218_s12 }
 0x10f   : > { %p7367_p3 = pnand %p7365_p2, %p7679_p7 }
 0x111   : > { %p7368_p13 = pneg %p7367_p3 }
 0x113   : > { %p7373_p1 = pnand %p7371_p0, %p7368_p13 }
 0x115   : > { %7376 = shalt.err (!%p7373_p1)
}
 0x116   : > { %s7377_s29 = scalar_lea.vmem %s637_s23, 256  ;;  %p7385_p9 = scmp.lt.s32.totalorder %s637_s23, %s637_s23 }
 0x117   : > { %p7378_p4 = scmp.ne.s32.totalorder %s637_s23, %s7377_s29  ;;  %p7386_p10 = scmp.lt.s32.totalorder %s7377_s29, %s7377_s29 }
 0x119   : > { %p7380_p6 = pnand %p7378_p4, %p7679_p7  ;;  %p7387_p11 = por %p7386_p10, %p7385_p9 }
 0x11b   : > { %p7381_p8 = pneg %p7380_p6 }
 0x11d   : > { %p7388_p12 = pnand %p7387_p11, %p7381_p8 }
 0x11f   : > { %7391 = shalt.err (!%p7388_p12)
}
 0x120   : > { %6910 = dma.hbm_to_vmem [thread:$0]  (!%p7663_p5), %s9218_s12, 256, %s637_s23, [#allocation14], %s9305_s30, %s9305_s30, %s9304_s19  }
 0x121   : > { %s7392_s3 = scalar_lea.hbm %s9222_s16, 256 }
 0x122   : > { %p7393_p2 = scmp.ne.s32.totalorder %s9222_s16, %s7392_s3  ;;  %p7399_p0 = scmp.lt.u32.totalorder %s7392_s3, %s9222_s16 }
 0x124   : > { %p7395_p3 = pnand %p7393_p2, %p7679_p7 }
 0x126   : > { %p7396_p13 = pneg %p7395_p3 }
 0x128   : > { %p7401_p1 = pnand %p7399_p0, %p7396_p13 }
 0x12a   : > { %7404 = shalt.err (!%p7401_p1)
}
 0x12b   : > { %s7405_s15 = scalar_lea.vmem %s669_s28, 256  ;;  %p7413_p9 = scmp.lt.s32.totalorder %s669_s28, %s669_s28 }
 0x12c   : > { %p7406_p4 = scmp.ne.s32.totalorder %s669_s28, %s7405_s15  ;;  %p7414_p10 = scmp.lt.s32.totalorder %s7405_s15, %s7405_s15 }
 0x12e   : > { %p7408_p6 = pnand %p7406_p4, %p7679_p7  ;;  %p7415_p11 = por %p7414_p10, %p7413_p9 }
 0x130   : > { %p7409_p8 = pneg %p7408_p6 }
 0x132   : > { %p7416_p12 = pnand %p7415_p11, %p7409_p8 }
 0x134   : > { %7419 = shalt.err (!%p7416_p12)
}
 0x135   : > { %6916 = dma.hbm_to_vmem [thread:$0]  (!%p7663_p5), %s9222_s16, 256, %s669_s28, [#allocation17], %s9305_s30, %s9305_s30, %s9304_s19  }
 0x136   : > { %s7500_s5 = smov [#allocation21]   ;;  %s7420_s3 = scalar_lea.hbm %s9224_s18, 128 }
 0x137   : > { %s695_s13 = sshll.u32 %s7500_s5, 4  ;;  %p7421_p2 = scmp.ne.s32.totalorder %s9224_s18, %s7420_s3  ;;  %s696_s13 = int_to_ptr.vmem [resolvable:$true] %s695_s13 }
 0x138   : > { %p7427_p0 = scmp.lt.u32.totalorder %s7420_s3, %s9224_s18 }
 0x139   : > { %p7423_p3 = pnand %p7421_p2, %p7679_p7 }
 0x13b   : > { %p7424_p13 = pneg %p7423_p3 }
 0x13d   : > { %p7429_p1 = pnand %p7427_p0, %p7424_p13 }
 0x13f   : > { %7432 = shalt.err (!%p7429_p1)
}
 0x140   : > { %s7433_s19 = scalar_lea.vmem %s696_s13, 128  ;;  %p7441_p9 = scmp.lt.s32.totalorder %s696_s13, %s696_s13 }
 0x141   : > { %p7434_p4 = scmp.ne.s32.totalorder %s696_s13, %s7433_s19  ;;  %p7442_p10 = scmp.lt.s32.totalorder %s7433_s19, %s7433_s19 }
 0x143   : > { %p7436_p6 = pnand %p7434_p4, %p7679_p7  ;;  %p7443_p11 = por %p7442_p10, %p7441_p9 }
 0x145   : > { %p7437_p8 = pneg %p7436_p6 }
 0x147   : > { %p7444_p12 = pnand %p7443_p11, %p7437_p8 }
 0x149   : > { %7447 = shalt.err (!%p7444_p12)
}
 0x14a   : > { %6922 = dma.hbm_to_vmem [thread:$0]  (!%p7663_p5), %s9224_s18, 128, %s696_s13, [#allocation20]  }
 0x14b   : > { %p9306_p2 = scmp.ne.s32.totalorder %s9298_s26, 0 }
 0x14c   : > { %p9307_p3 = scmp.eq.s32.totalorder (!%p9306_p2), %s7646_s25, 0 }
 0x14d   : > { %722 = sbr.rel (%p9306_p2) target bundleno = 5580 (0x15cc), region = 104 }
 0x154   : > { %7453 = dma.done.wait (%p9307_p3), [#allocation3], 512   ;;  %p9308_p7 = pmov %p9307_p3 }
 0x155   : > { %p9309_p13 = pmov %p9307_p3 }
 0x156   : > { %7455 = vsyncadd (%p9308_p7), [#allocation3], 4294966784 }
 0x157   : > { %7457 = dma.done.wait (%p9309_p13), [#allocation5], 704   ;;  %p9310_p0 = pmov %p9307_p3 }
 0x159   : > { %7459 = vsyncadd (%p9310_p0), [#allocation5], 4294966592  ;;  %p9311_p1 = pmov %p9310_p0 }
 0x15a   : > { %p9312_p5 = pmov %p9310_p0 }
 0x15b   : > { %7461 = dma.done.wait (%p9311_p1), [#allocation8], 704  }
 0x15c   : > { %7463 = vsyncadd (%p9312_p5), [#allocation8], 4294966592  ;;  %p9313_p4 = pmov %p9310_p0 }
 0x15d   : > { %p9314_p6 = pmov %p9310_p0 }
 0x15e   : > { %7465 = dma.done.wait (%p9313_p4), [#allocation11], 1408  }
 0x15f   : > { %7467 = vsyncadd (%p9314_p6), [#allocation11], 4294965888  ;;  %p9315_p8 = pmov %p9310_p0 }
 0x160   : > { %p9316_p9 = pmov %p9310_p0 }
 0x161   : > { %7469 = dma.done.wait (%p9315_p8), [#allocation14], 1408  }
 0x162   : > { %7471 = vsyncadd (%p9316_p9), [#allocation14], 4294965888  ;;  %p9317_p10 = pmov %p9310_p0 }
 0x163   : > { %p9318_p11 = pmov %p9310_p0 }
 0x164   : > { %7473 = dma.done.wait (%p9317_p10), [#allocation17], 768  }
 0x165   : > { %7475 = vsyncadd (%p9318_p11), [#allocation17], 4294966528  ;;  %p9319_p12 = pmov %p9310_p0 }
 0x166   : > { %p9320_p2 = pmov %p9310_p0 }
 0x167   : > { %7477 = dma.done.wait (%p9319_p12), [#allocation20], 704  }
 0x168   : > { %7479 = vsyncadd (%p9320_p2), [#allocation20], 4294966592  ;;  %p830_p3 = scmp.lt.s32.totalorder %s7646_s25, 1  ;;  %v849_v0 = vlaneseq  ;;  %v7501_v1 = vmov 0   ;;  %s9321_s15 = sld [smem:[#allocation30_spill]]  ;;  %vm870_vm6 = vcmask 138240  }
 0x169   : > { %956 = vmatprep.mubr.bf16.mxu0 %v7501_v1  ;;  %1006 = vmatprep.mubr.bf16.mxu1 %v7501_v1  ;;  %s9266_s29 = smov 17   ;;  %s7503_s5 = smov 2   ;;  %vm917_vm9 = vcmask 1041408   ;;  %v899_v30 = vld [vmem:[#allocation4] sm:$0xf]  ;;  %vm913_vm12 = vcmask 31744  }
 0x16a   : > { %s9473_s25 = smov (!%p830_p3, %s7646_s25), 1  ;;  %v7993_v2 = vand.u32 127, %v849_v0  ;;  %v888_v3 = vshrl.u32 %v849_v0, 7  ;;  %7003 = vset.pattern.permute.xlu0 %v7501_v1  ;;  %7004 = vset.pattern.permute.xlu1 %v7501_v1  ;;  %s7504_s13 = smov 16   ;;  %vm1033_vm13 = vcmask 15360   ;;  %v1545_v58 = vld [vmem:[#allocation6] sm:$0xff] }
 0x16b   : > { %s6397_s21 = sshll.u32 %s9473_s25, 3  ;;  %s7505_s1 = smov 18  }
 0x16c   : > { %v851_v4 = vadd.s32 128, %v7993_v2  ;;  %v852_v5 = vand.u32 15, %v7993_v2  ;;  %v8003_v7 = vsub.s32 0, %v888_v3  ;;  %v893_v11 = vsub.s32 4, %v888_v3  ;;  %s7506_s7 = smov 32   ;;  %s7507_s3 = smov 34  }
 0x16d   : > { %s9279_s20 = smov 111   ;;  %s7509_s27 = smov 127  }
 0x16e   : > { %s834_s23 = scalar_lea.vmem %s9321_s15, %s6397_s21  ;;  %v853_v6 = vand.u32 15, %v851_v4  ;;  %vm856_vm0 = vcmp.ne.s32.totalorder %v852_v5, 15  ;;  %vm854_vm1 = vcmp.ne.s32.totalorder %v852_v5, 0  ;;  %s9283_s4 = smov 126   ;;  %v901_v4 = vld [vmem:[#allocation4 + $0x4] sm:$0xf] }
 0x16f   : > { %v843_v8 = vld [vmem:[%s834_s23] sm:$0xff]  ;;  %s9281_s2 = smov 112   ;;  %s9264_s19 = smov 96  }
 0x170   : > { %v847_v9 = vpack.c.bf16 %v843_v8, %v843_v8  ;;  %v845_v10 = vcombine.high %v843_v8, %v843_v8  ;;  %vm857_vm2 = vcmp.ne.s32.totalorder %v853_v6, 15  ;;  %vm855_vm3 = vcmp.ne.s32.totalorder %v853_v6, 0  ;;  %s9268_s30 = smov 110   ;;  %s9262_s28 = smov 95  }
 0x171   : > { %vm1019_vm4 = vmpackc.low %vm857_vm2, %vm856_vm0  ;;  %vm9241_vm0 = vcmask 130048   ;;  %s9260_s21 = smov 94   ;;  %s9339_s15 = sld [smem:[#allocation31_spill]] }
 0x172   : > { %866 = vrot.lane.b32.xlu0 %v847_v9, %s9266_s29  ;;  %v1020_v12 = vsel %vm1019_vm4, 65537, %v7501_v1  ;;  %v848_v13 = vpack.c.bf16 %v845_v10, %v845_v10  ;;  %vm885_vm5 = vmpackc.low %vm855_vm3, %vm854_vm1  ;;  %s9346_s26 = smov 110   ;;  %s7524_s0 = smov 5  }
 0x173   : > { %v1024_v14 = vrot.slane %v1020_v12, %v8003_v7  ;;  %v886_v15 = vsel %vm885_vm5, 65537, %v7501_v1  ;;  %v1028_v16 = vrot.slane %v1020_v12, %v893_v11  ;;  %vm1252_vm5 = vcmask 146432   ;;  %s7526_s23 = smov 6  }
 0x174   : > { %v8012_v17 = vrot.slane %v886_v15, %v8003_v7  ;;  %v8015_v18 = vrot.slane %v886_v15, %v893_v11 }
 0x175   : > { %1029 = vrot.lane.b32.xlu1 %v1024_v14, %s7503_s5 }
 0x176   : > { %868 = vrot.lane.b32.xlu0 %v848_v13, %s9266_s29  ;;  %vm9255_vm7 = vcmp.ne.s16.totalorder %v8012_v17, 0  ;;  %vm9254_vm8 = vcmp.ne.s16.totalorder %v8015_v18, 0 }
 0x179   : > { %1031 = vrot.lane.b32.xlu1 %v1028_v16, %s7503_s5 }
 0x17a   : > { %1107 = vrot.lane.b32.xlu0 %v8012_v17, %s7504_s13 }
 0x17d   : > { %1109 = vrot.lane.b32.xlu1 %v8015_v18, %s7504_s13 }
 0x17e   : > { %1248 = vrot.lane.b32.xlu0 %v1024_v14, %s7505_s1 }
 0x181   : > { %1250 = vrot.lane.b32.xlu1 %v1028_v16, %s7505_s1 }
 0x182   : > { %1326 = vrot.lane.b32.xlu0 %v8012_v17, %s7506_s7 }
 0x185   : > { %1328 = vrot.lane.b32.xlu1 %v8015_v18, %s7506_s7  ;;  %s7522_s7 = smov 119  }
 0x186   : > { %1467 = vrot.lane.b32.xlu0 %v1024_v14, %s7507_s3 }
 0x189   : > { %1469 = vrot.lane.b32.xlu1 %v1028_v16, %s7507_s3  ;;  %s7523_s3 = smov 118  }
 0x1e4   : > { %v867_v19 = vpop.permute.xlu0 %866 }
 0x1e5   : > { %v8026_v20 = vsel %vm870_vm6, 0, %v867_v19 }
 0x1e6   : > { %1187 = vrot.lane.b32.xlu1 %v8026_v20, %s9279_s20  ;;  %904 = vrot.lane.b32.xlu0 %v8026_v20, %s7509_s27  ;;  %v897_v23 = vsel %vm9255_vm7, %v8026_v20, 0 }
 0x1e7   : > { %v8033_v21 = vpop.permute.xlu1 %1029  ;;  %v969_v28 = vsel %vm917_vm9, %v897_v23, 0 }
 0x1e8   : > { %v869_v22 = vpop.permute.xlu0 %868  ;;  %vm9276_vm10 = vcmp.ne.s16.totalorder %v8033_v21, 0 }
 0x1e9   : > { %v8040_v24 = vsel %vm870_vm6, %v867_v19, %v869_v22  ;;  %v8043_v25 = vsel %vm870_vm6, %v869_v22, 0  ;;  %v1038_v33 = vsel %vm9276_vm10, %v8026_v20, 0  ;;  %v1042_v22 = vld [vmem:[#allocation4 + $0x8] sm:$0xf] }
 0x1ea   : > { %908 = vrot.lane.b32.xlu0 %v8043_v25, %s7509_s27  ;;  %906 = vrot.lane.b32.xlu1 %v8040_v24, %s7509_s27  ;;  %v898_v26 = vsel %vm9254_vm8, %v8040_v24, 0 }
 0x1eb   : > { %v8052_v27 = vpop.permute.xlu1 %1031  ;;  %6168 = vmatprep.subr.msk.bf16.mxu1 %vm917_vm9, %v898_v26 }
 0x1ec   : > { %975 = vmatpush1.bf16.msra.mxu1 %v969_v28  ;;  %v8056_v29 = vpop.permute.xlu0 %1107  ;;  %vm9273_vm14 = vcmp.ne.s16.totalorder %v8052_v27, 0  ;;  %v8082_v35 = vsel %vm1033_vm13, %v8033_v21, %v8052_v27 }
 0x1ed   : > { %vm9277_vm11 = vcmp.ne.s16.totalorder %v8056_v29, 0  ;;  %v1040_v38 = vsel %vm9273_vm14, %v8043_v25, 0  ;;  %vm9278_vm1 = vcmp.ne.s16.totalorder %v8082_v35, 0 }
 0x1ee   : > { %1189 = vrot.lane.b32.xlu0 %v8040_v24, %s9279_s20  ;;  %1191 = vrot.lane.b32.xlu1 %v8043_v25, %s9279_s20  ;;  %v1116_v34 = vsel %vm9277_vm11, %v8026_v20, 0  ;;  %v1039_v41 = vsel %vm9278_vm1, %v8040_v24, 0 }
 0x1ef   : > { %v8064_v31 = vpop.permute.xlu1 %1109  ;;  %6169 = vmatmul.mubr.msk.bf16.vlgmr.msra.gmra.mrb[0].mxu1 %vm913_vm12, %v899_v30 }
 0x1f0   : > { %v8067_v32 = vpop.permute.xlu0 %1248  ;;  %1174 = vmatprep.mubr.bf16.mxu1 %v7501_v1  ;;  %vm9242_vm15 = vcmp.ne.s16.totalorder %v8064_v31, 0  ;;  %v8101_v40 = vsel %vm9241_vm0, %v8056_v29, %v8064_v31 }
 0x1f1   : > { %v1118_v39 = vsel %vm9242_vm15, %v8043_v25, 0  ;;  %vm9243_vm3 = vcmp.ne.s16.totalorder %v8101_v40, 0  ;;  %vm9257_vm4 = vcmp.ne.s16.totalorder %v8067_v32, 0  ;;  %vm1330_vm15 = vcmask 261120  }
 0x1f2   : > { %1046 = vrot.lane.b32.xlu1 %v1038_v33, %s9283_s4  ;;  %1124 = vrot.lane.b32.xlu0 %v1116_v34, %s9281_s2  ;;  %v1257_v44 = vsel %vm9257_vm4, %v8026_v20, 0  ;;  %v1117_v45 = vsel %vm9243_vm3, %v8040_v24, 0  ;;  %v1120_v33 = vld [vmem:[#allocation4 + $0xc] sm:$0xf] }
 0x1f3   : > { %v8086_v37 = vpop.permute.xlu1 %1250 }
 0x1f4   : > { %v8084_v36 = vpop.permute.xlu0 %1326  ;;  %vm9245_vm13 = vcmp.ne.s16.totalorder %v8086_v37, 0  ;;  %v8127_v46 = vsel %vm1252_vm5, %v8067_v32, %v8086_v37 }
 0x1f5   : > { %vm9256_vm2 = vcmp.ne.s16.totalorder %v8084_v36, 0  ;;  %v1259_v47 = vsel %vm9245_vm13, %v8043_v25, 0  ;;  %vm9246_vm3 = vcmp.ne.s16.totalorder %v8127_v46, 0 }
 0x1f6   : > { %1050 = vrot.lane.b32.xlu1 %v1040_v38, %s9283_s4  ;;  %1128 = vrot.lane.b32.xlu0 %v1118_v39, %s9281_s2  ;;  %v1335_v42 = vsel %vm9256_vm2, %v8026_v20, 0  ;;  %v1258_v50 = vsel %vm9246_vm3, %v8040_v24, 0  ;;  %v1186_v39 = vld [vmem:[#allocation4 + $0x10] sm:$0xf] }
 0x1f7   : > { %v8113_v43 = vpop.permute.xlu1 %1328 }
 0x1f8   : > { %vm9244_vm0 = vcmp.ne.s16.totalorder %v8113_v43, 0  ;;  %v8140_v49 = vsel %vm1330_vm15, %v8084_v36, %v8113_v43  ;;  %v8149_v51 = vpop.permute.xlu0 %1467 }
 0x1f9   : > { %v1337_v48 = vsel %vm9244_vm0, %v8043_v25, 0  ;;  %vm9259_vm5 = vcmp.ne.s16.totalorder %v8140_v49, 0  ;;  %vm1471_vm0 = vcmask 277504   ;;  %vm9258_vm15 = vcmp.ne.s16.totalorder %v8149_v51, 0 }
 0x1fa   : > { %1048 = vrot.lane.b32.xlu0 %v1039_v41, %s9283_s4  ;;  %1343 = vrot.lane.b32.xlu1 %v1335_v42, %s9264_s19  ;;  %v1336_v53 = vsel %vm9259_vm5, %v8040_v24, 0  ;;  %v1476_v55 = vsel %vm9258_vm15, %v8026_v20, 0 }
 0x1fb   : > { %v8151_v52 = vpop.permute.xlu1 %1469 }
 0x1fc   : > { %v8162_v54 = vsel %vm1471_vm0, %v8149_v51, %v8151_v52  ;;  %vm9248_vm3 = vcmp.ne.s16.totalorder %v8151_v52, 0  ;;  %vm9249_vm0 = vcmask 1039360  }
 0x1fd   : > { %vm9247_vm13 = vcmp.ne.s16.totalorder %v8162_v54, 0  ;;  %v1478_v56 = vsel %vm9248_vm3, %v8043_v25, 0  ;;  %vm9250_vm3 = vcmask 908288  }
 0x1fe   : > { %1265 = vrot.lane.b32.xlu0 %v1257_v44, %s9268_s30  ;;  %1126 = vrot.lane.b32.xlu1 %v1117_v45, %s9281_s2  ;;  %v1477_v57 = vsel %vm9247_vm13, %v8040_v24, 0  ;;  %vm9252_vm13 = vcmask 1031168  }
 0x202   : > { %1269 = vrot.lane.b32.xlu0 %v1259_v47, %s9268_s30  ;;  %1347 = vrot.lane.b32.xlu1 %v1337_v48, %s9264_s19  ;;  %v1261_v48 = vld [vmem:[#allocation4 + $0x14] sm:$0xf] }
 0x206   : > { %1406 = vrot.lane.b32.xlu0 %v8026_v20, %s9262_s28  ;;  %1267 = vrot.lane.b32.xlu1 %v1258_v50, %s9268_s30 }
 0x20a   : > { %1408 = vrot.lane.b32.xlu1 %v8040_v24, %s9262_s28  ;;  %1345 = vrot.lane.b32.xlu0 %v1336_v53, %s9264_s19 }
 0x20e   : > { %1410 = vrot.lane.b32.xlu0 %v8043_v25, %s9262_s28  ;;  %1484 = vrot.lane.b32.xlu1 %v1476_v55, %s9260_s21 }
 0x212   : > { %1488 = vrot.lane.b32.xlu1 %v1478_v56, %s9260_s21  ;;  %1486 = vrot.lane.b32.xlu0 %v1477_v57, %s9260_s21 }
 0x216   : > { %1548 = vperm.xlu0 %7003, %v1545_v58  }
 0x258   : > { %v1188_v59 = vpop.permute.xlu1 %1187  ;;  %v905_v60 = vpop.permute.xlu0 %904 }
 0x25c   : > { %v907_v61 = vpop.permute.xlu1 %906  ;;  %v909_v62 = vpop.permute.xlu0 %908 }
 0x25d   : > { %v912_v63 = vsel %vm9249_vm0, %v907_v61, %v909_v62  ;;  %v911_v0 = vsel %vm9249_vm0, %v905_v60, %v907_v61  ;;  %vm9251_vm0 = vcmask 916480  }
 0x25e   : > { %6166 = vmatprep.subr.msk.bf16.mxu0 %vm917_vm9, %v912_v63  ;;  %v919_v3 = vsel %vm917_vm9, %v911_v0, 0  ;;  %v1405_v0 = vld [vmem:[#allocation4 + $0x1c] sm:$0xf] }
 0x25f   : > { %925 = vmatpush1.bf16.msra.mxu0 %v919_v3 }
 0x260   : > { %v1192_v5 = vpop.permute.xlu1 %1191  ;;  %v1190_v6 = vpop.permute.xlu0 %1189 }
 0x261   : > { %v1194_v19 = vsel %vm9250_vm3, %v1188_v59, %v1190_v6  ;;  %v1195_v20 = vsel %vm9250_vm3, %v1190_v6, %v1192_v5  ;;  %vm9272_vm3 = vcmask 900096   ;;  %v1339_v59 = vld [vmem:[#allocation4 + $0x18] sm:$0xf] }
 0x262   : > { %6167 = vmatmul.mubr.msk.bf16.vlgmr.msra.gmra.mrb[0].mxu0 %vm913_vm12, %v901_v4  ;;  %v1200_v30 = vsel %vm917_vm9, %v1194_v19, 0 }
 0x263   : > { %1096 = vmatprep.mubr.bf16.mxu0 %v7501_v1 }
 0x264   : > { %v1047_v8 = vpop.permute.xlu1 %1046  ;;  %v1125_v9 = vpop.permute.xlu0 %1124 }
 0x268   : > { %v1051_v10 = vpop.permute.xlu1 %1050  ;;  %v1129_v11 = vpop.permute.xlu0 %1128 }
 0x26c   : > { %v1344_v12 = vpop.permute.xlu1 %1343  ;;  %v1049_v13 = vpop.permute.xlu0 %1048 }
 0x26d   : > { %v1053_v14 = vsel %vm9252_vm13, %v1047_v8, %v1049_v13  ;;  %v1054_v15 = vsel %vm9252_vm13, %v1049_v13, %v1051_v10  ;;  %vm9271_vm13 = vcmask 777216  }
 0x26e   : > { %6170 = vmatprep.subr.msk.bf16.mxu0 %vm917_vm9, %v1054_v15  ;;  %v1059_v16 = vsel %vm917_vm9, %v1053_v14, 0 }
 0x26f   : > { %1065 = vmatpush1.bf16.msra.mxu0 %v1059_v16 }
 0x270   : > { %v1127_v23 = vpop.permute.xlu1 %1126  ;;  %6174 = vmatprep.subr.msk.bf16.mxu0 %vm917_vm9, %v1195_v20  ;;  %v1266_v24 = vpop.permute.xlu0 %1265 }
 0x271   : > { %v1131_v25 = vsel %vm9251_vm0, %v1125_v9, %v1127_v23  ;;  %v1132_v26 = vsel %vm9251_vm0, %v1127_v23, %v1129_v11  ;;  %vm9253_vm0 = vcmask 785408   ;;  %v1480_v9 = vld [vmem:[#allocation4 + $0x20] sm:$0xf] }
 0x272   : > { %6171 = vmatmul.mubr.msk.bf16.vlgmr.msra.gmra.mrb[4].mxu0 %vm913_vm12, %v1042_v22  ;;  %6172 = vmatprep.subr.msk.bf16.mxu1 %vm917_vm9, %v1132_v26  ;;  %v1137_v28 = vsel %vm917_vm9, %v1131_v25, 0 }
 0x273   : > { %1143 = vmatpush1.bf16.msra.mxu1 %v1137_v28  ;;  %1206 = vmatpush1.bf16.msra.mxu0 %v1200_v30 }
 0x274   : > { %v1348_v34 = vpop.permute.xlu1 %1347  ;;  %v1270_v38 = vpop.permute.xlu0 %1269  ;;  %1237 = vmatprep.mubr.bf16.mxu0 %v7501_v1 }
 0x276   : > { %6173 = vmatmul.mubr.msk.bf16.vlgmr.msra.gmra.mrb[4].mxu1 %vm913_vm12, %v1120_v33 }
 0x277   : > { %1315 = vmatprep.mubr.bf16.mxu1 %v7501_v1 }
 0x278   : > { %v1268_v41 = vpop.permute.xlu1 %1267  ;;  %v1407_v42 = vpop.permute.xlu0 %1406 }
 0x279   : > { %v1272_v44 = vsel %vm9272_vm3, %v1266_v24, %v1268_v41  ;;  %v1273_v45 = vsel %vm9272_vm3, %v1268_v41, %v1270_v38 }
 0x27a   : > { %6175 = vmatmul.mubr.msk.bf16.vlgmr.msra.gmra.mrb[8].mxu0 %vm913_vm12, %v1186_v39  ;;  %6176 = vmatprep.subr.msk.bf16.mxu1 %vm917_vm9, %v1273_v45  ;;  %v1278_v47 = vsel %vm917_vm9, %v1272_v44, 0 }
 0x27b   : > { %1284 = vmatpush1.bf16.msra.mxu1 %v1278_v47  ;;  %1393 = vmatprep.mubr.bf16.mxu0 %v7501_v1 }
 0x27c   : > { %v1409_v50 = vpop.permute.xlu1 %1408  ;;  %v1346_v53 = vpop.permute.xlu0 %1345 }
 0x27d   : > { %v1350_v55 = vsel %vm9253_vm0, %v1344_v12, %v1346_v53  ;;  %v1351_v56 = vsel %vm9253_vm0, %v1346_v53, %v1348_v34  ;;  %v1413_v58 = vsel %vm9271_vm13, %v1407_v42, %v1409_v50  ;;  %vm9270_vm0 = vcmask 769024  }
 0x27e   : > { %6177 = vmatmul.mubr.msk.bf16.vlgmr.msra.gmra.mrb[8].mxu1 %vm913_vm12, %v1261_v48  ;;  %6178 = vmatprep.subr.msk.bf16.mxu0 %vm917_vm9, %v1351_v56  ;;  %v1356_v57 = vsel %vm917_vm9, %v1350_v55, 0  ;;  %v1419_v63 = vsel %vm917_vm9, %v1413_v58, 0 }
 0x27f   : > { %1362 = vmatpush1.bf16.msra.mxu0 %v1356_v57  ;;  %1456 = vmatprep.mubr.bf16.mxu1 %v7501_v1 }
 0x280   : > { %v1485_v60 = vpop.permute.xlu1 %1484  ;;  %v1411_v61 = vpop.permute.xlu0 %1410 }
 0x281   : > { %v1414_v62 = vsel %vm9271_vm13, %v1409_v50, %v1411_v61 }
 0x282   : > { %6179 = vmatmul.mubr.msk.bf16.vlgmr.msra.gmra.mrb[12].mxu0 %vm913_vm12, %v1339_v59  ;;  %6180 = vmatprep.subr.msk.bf16.mxu1 %vm917_vm9, %v1414_v62 }
 0x283   : > { %1425 = vmatpush1.bf16.msra.mxu1 %v1419_v63  ;;  %1534 = vmatprep.mubr.bf16.mxu0 %v7501_v1 }
 0x284   : > { %v1489_v3 = vpop.permute.xlu1 %1488  ;;  %v1487_v4 = vpop.permute.xlu0 %1486 }
 0x285   : > { %v1491_v5 = vsel %vm9270_vm0, %v1485_v60, %v1487_v4  ;;  %v1492_v6 = vsel %vm9270_vm0, %v1487_v4, %v1489_v3 }
 0x286   : > { %6181 = vmatmul.mubr.msk.bf16.vlgmr.msra.gmra.mrb[12].mxu1 %vm913_vm12, %v1405_v0  ;;  %6182 = vmatprep.subr.msk.bf16.mxu0 %vm917_vm9, %v1492_v6  ;;  %v1497_v8 = vsel %vm917_vm9, %v1491_v5, 0  ;;  %vm9275_vm9 = vcmask 1043456  }
 0x287   : > { %1503 = vmatpush1.bf16.msra.mxu0 %v1497_v8  ;;  %1629 = vmatprep.mubr.bf16.mxu1 %v7501_v1 }
 0x28a   : > { %6183 = vmatmul.mubr.msk.bf16.vlgmr.msra.gmra.mrb[16].mxu0 %vm913_vm12, %v1480_v9  ;;  %vm9274_vm12 = vcmask 64512  }
 0x28b   : > { %1679 = vmatprep.mubr.bf16.mxu0 %v7501_v1 }
 0x2c2   : > { %v1008_v10 = vpop.f32.mrb[0].mxu1 }
 0x2c3   : > { %v1010_v11 = vpop.f32.mrb[1].mxu1 }
 0x2c4   : > { %v1012_v12 = vpop.f32.mrb[2].mxu1 }
 0x2c5   : > { %v1013_v13 = vpop.f32.mrb[3].mxu1 }
 0x2c6   : > { %v1549_v13 = vpop.permute.xlu0 %1548 }
 0x335   : > { %v958_v14 = vpop.f32.mrb[0].mxu0 }
 0x336   : > { %v960_v15 = vpop.f32.mrb[1].mxu0  ;;  %v1009_v16 = vadd.f32 %v1008_v10, %v958_v14 }
 0x337   : > { %v962_v19 = vpop.f32.mrb[2].mxu0  ;;  %v1011_v20 = vadd.f32 %v1010_v11, %v960_v15 }
 0x338   : > { %v963_v22 = vpop.f32.mrb[3].mxu0 }
 0x345   : > { %v1098_v23 = vpop.f32.mrb[4].mxu0 }
 0x346   : > { %v1105_v24 = vadd.f32 %v1098_v23, %v1009_v16  ;;  %v1100_v25 = vpop.f32.mrb[5].mxu0 }
 0x347   : > { %v1106_v26 = vadd.f32 %v1100_v25, %v1011_v20  ;;  %v1102_v28 = vpop.f32.mrb[6].mxu0 }
 0x348   : > { %v1103_v30 = vpop.f32.mrb[7].mxu0 }
 0x349   : > { %v1176_v33 = vpop.f32.mrb[4].mxu1 }
 0x34a   : > { %v1183_v34 = vadd.f32 %v1176_v33, %v1105_v24  ;;  %v1178_v38 = vpop.f32.mrb[5].mxu1 }
 0x34b   : > { %v1184_v39 = vadd.f32 %v1178_v38, %v1106_v26  ;;  %v1180_v41 = vpop.f32.mrb[6].mxu1 }
 0x34c   : > { %v1181_v42 = vpop.f32.mrb[7].mxu1 }
 0x34d   : > { %v1239_v44 = vpop.f32.mrb[8].mxu0 }
 0x34e   : > { %v1246_v45 = vadd.f32 %v1239_v44, %v1183_v34  ;;  %v1241_v47 = vpop.f32.mrb[9].mxu0 }
 0x34f   : > { %v1247_v48 = vadd.f32 %v1241_v47, %v1184_v39  ;;  %v1243_v50 = vpop.f32.mrb[10].mxu0 }
 0x350   : > { %v1244_v53 = vpop.f32.mrb[11].mxu0 }
 0x351   : > { %v1317_v55 = vpop.f32.mrb[8].mxu1 }
 0x352   : > { %v1324_v56 = vadd.f32 %v1317_v55, %v1246_v45  ;;  %v1319_v57 = vpop.f32.mrb[9].mxu1  ;;  %v1573_v45 = vld [vmem:[#allocation7] sm:$0xf] }
 0x353   : > { %v1325_v58 = vadd.f32 %v1319_v57, %v1247_v48  ;;  %v1321_v59 = vpop.f32.mrb[10].mxu1 }
 0x354   : > { %v1322_v60 = vpop.f32.mrb[11].mxu1 }
 0x355   : > { %v1395_v61 = vpop.f32.mrb[12].mxu0 }
 0x356   : > { %v1402_v62 = vadd.f32 %v1395_v61, %v1324_v56  ;;  %v1397_v63 = vpop.f32.mrb[13].mxu0 }
 0x357   : > { %v1403_v0 = vadd.f32 %v1397_v63, %v1325_v58  ;;  %v1399_v3 = vpop.f32.mrb[14].mxu0 }
 0x358   : > { %v1400_v4 = vpop.f32.mrb[15].mxu0 }
 0x359   : > { %v1458_v5 = vpop.f32.mrb[12].mxu1  ;;  %v2152_v4 = vld [vmem:[#allocation9] sm:$0xff] }
 0x35a   : > { %v1465_v6 = vadd.f32 %v1458_v5, %v1402_v62  ;;  %v1460_v8 = vpop.f32.mrb[13].mxu1 }
 0x35b   : > { %v1466_v9 = vadd.f32 %v1460_v8, %v1403_v0  ;;  %v1462_v10 = vpop.f32.mrb[14].mxu1 }
 0x35c   : > { %v1463_v11 = vpop.f32.mrb[15].mxu1 }
 0x35d   : > { %v1536_v12 = vpop.f32.mrb[16].mxu0 }
 0x35e   : > { %v1543_v14 = vadd.f32 %v1536_v12, %v1465_v6  ;;  %v1538_v15 = vpop.f32.mrb[17].mxu0 }
 0x35f   : > { %v1544_v16 = vadd.f32 %v1538_v15, %v1466_v9  ;;  %v1540_v19 = vpop.f32.mrb[18].mxu0 }
 0x360   : > { %v1551_v20 = vadd.f32 %v1549_v13, %v1543_v14  ;;  %v1541_v22 = vpop.f32.mrb[19].mxu0 }
 0x361   : > { %v1552_v23 = vadd.f32 %v1549_v13, %v1544_v16  ;;  %v1575_v13 = vld [vmem:[#allocation7 + $0x4] sm:$0xf] }
 0x362   : > { %v1553_v24 = vmax.f32 %v1551_v20, 0.0 }
 0x363   : > { %v1554_v25 = vmax.f32 %v1552_v23, 0.0 }
 0x364   : > { %v1555_v26 = vpack.c.bf16 %v1553_v24, %v1553_v24 }
 0x365   : > { %v1556_v28 = vpack.c.bf16 %v1554_v25, %v1554_v25 }
 0x366   : > { %1559 = vrot.lane.b32.xlu1 %v1555_v26, %s9266_s29 }
 0x36a   : > { %1561 = vrot.lane.b32.xlu1 %v1556_v28, %s9266_s29  ;;  %s7516_s29 = smov 10  }
 0x3d8   : > { %v1560_v30 = vpop.permute.xlu1 %1559 }
 0x3d9   : > { %v1566_v33 = vsel %vm870_vm6, 0, %v1560_v30 }
 0x3da   : > { %1826 = vrot.lane.b32.xlu1 %v1566_v33, %s9279_s20  ;;  %1578 = vrot.lane.b32.xlu0 %v1566_v33, %s7509_s27  ;;  %v1571_v38 = vsel %vm9255_vm7, %v1566_v33, 0  ;;  %v1756_v47 = vsel %vm9277_vm11, %v1566_v33, 0  ;;  %v1688_v48 = vsel %vm9276_vm10, %v1566_v33, 0  ;;  %v1886_v50 = vsel %vm9257_vm4, %v1566_v33, 0 }
 0x3db   : > { %v1642_v44 = vsel %vm9275_vm9, %v1571_v38, 0  ;;  %v1954_v53 = vsel %vm9256_vm2, %v1566_v33, 0  ;;  %vm9323_vm7 = vcmp.ne.s16.totalorder %v8064_v31, 0  ;;  %vm9324_vm2 = vcmp.ne.s16.totalorder %v8127_v46, 0 }
 0x3dc   : > { %v1562_v34 = vpop.permute.xlu1 %1561  ;;  %vm9325_vm4 = vcmp.ne.s16.totalorder %v8086_v37, 0  ;;  %v2084_v63 = vsel %vm9258_vm15, %v1566_v33, 0  ;;  %vm9335_vm15 = vcmask 916480  }
 0x3dd   : > { %v1563_v39 = vsel %vm870_vm6, %v1560_v30, %v1562_v34  ;;  %v1569_v41 = vsel %vm870_vm6, %v1562_v34, 0  ;;  %v1692_v34 = vld [vmem:[#allocation7 + $0x8] sm:$0xf] }
 0x3de   : > { %1582 = vrot.lane.b32.xlu0 %v1569_v41, %s7509_s27  ;;  %1580 = vrot.lane.b32.xlu1 %v1563_v39, %s7509_s27  ;;  %v1572_v42 = vsel %vm9254_vm8, %v1563_v39, 0  ;;  %v1690_v55 = vsel %vm9273_vm14, %v1569_v41, 0  ;;  %v1689_v56 = vsel %vm9278_vm1, %v1563_v39, 0  ;;  %vm9322_vm8 = vcmp.ne.s16.totalorder %v8101_v40, 0 }
 0x3df   : > { %6186 = vmatprep.subr.msk.bf16.mxu0 %vm9275_vm9, %v1572_v42  ;;  %v1757_v57 = vsel %vm9322_vm8, %v1563_v39, 0  ;;  %v1758_v58 = vsel %vm9323_vm7, %v1569_v41, 0  ;;  %v1887_v59 = vsel %vm9324_vm2, %v1563_v39, 0  ;;  %v1888_v60 = vsel %vm9325_vm4, %v1569_v41, 0 }
 0x3e0   : > { %1648 = vmatpush1.bf16.msra.mxu0 %v1642_v44  ;;  %vm9326_vm7 = vcmp.ne.s16.totalorder %v8113_v43, 0  ;;  %v1955_v62 = vsel %vm9259_vm5, %v1563_v39, 0  ;;  %vm9327_vm8 = vcmp.ne.s16.totalorder %v8151_v52, 0  ;;  %vm9328_vm2 = vcmp.ne.s16.totalorder %v8162_v54, 0  ;;  %vm9336_vm5 = vmmov %vm9335_vm15 }
 0x3e1   : > { %v1956_v61 = vsel %vm9326_vm7, %v1569_v41, 0  ;;  %v2086_v0 = vsel %vm9327_vm8, %v1569_v41, 0  ;;  %v2085_v3 = vsel %vm9328_vm2, %v1563_v39, 0  ;;  %vm9329_vm4 = vcmask 1039360  }
 0x3e2   : > { %1764 = vrot.lane.b32.xlu0 %v1756_v47, %s9281_s2  ;;  %1696 = vrot.lane.b32.xlu1 %v1688_v48, %s9283_s4  ;;  %vm9330_vm7 = vmmov %vm9329_vm4  ;;  %vm9331_vm8 = vcmask 1031168   ;;  %v1760_v47 = vld [vmem:[#allocation7 + $0xc] sm:$0xf] }
 0x3e3   : > { %6187 = vmatmul.mubr.msk.bf16.vlgmr.msra.gmra.mrb[20].mxu0 %vm9274_vm12, %v1573_v45  ;;  %vm9332_vm2 = vmmov %vm9331_vm8 }
 0x3e4   : > { %1813 = vmatprep.mubr.bf16.mxu0 %v7501_v1 }
 0x3e6   : > { %1828 = vrot.lane.b32.xlu0 %v1563_v39, %s9279_s20  ;;  %1830 = vrot.lane.b32.xlu1 %v1569_v41, %s9279_s20 }
 0x3ea   : > { %1894 = vrot.lane.b32.xlu0 %v1886_v50, %s9268_s30  ;;  %1962 = vrot.lane.b32.xlu1 %v1954_v53, %s9264_s19  ;;  %v1825_v53 = vld [vmem:[#allocation7 + $0x10] sm:$0xf] }
 0x3ee   : > { %1700 = vrot.lane.b32.xlu1 %v1690_v55, %s9283_s4  ;;  %1698 = vrot.lane.b32.xlu0 %v1689_v56, %s9283_s4 }
 0x3f2   : > { %1766 = vrot.lane.b32.xlu1 %v1757_v57, %s9281_s2  ;;  %1768 = vrot.lane.b32.xlu0 %v1758_v58, %s9281_s2 }
 0x3f6   : > { %2026 = vrot.lane.b32.xlu1 %v1563_v39, %s9262_s28  ;;  %2024 = vrot.lane.b32.xlu0 %v1566_v33, %s9262_s28 }
 0x3fa   : > { %1896 = vrot.lane.b32.xlu1 %v1887_v59, %s9268_s30  ;;  %1898 = vrot.lane.b32.xlu0 %v1888_v60, %s9268_s30  ;;  %v1890_v60 = vld [vmem:[#allocation7 + $0x14] sm:$0xf]  ;;  %s7518_s30 = smov 8  }
 0x3fe   : > { %1966 = vrot.lane.b32.xlu1 %v1956_v61, %s9264_s19  ;;  %1964 = vrot.lane.b32.xlu0 %v1955_v62, %s9264_s19 }
 0x402   : > { %2092 = vrot.lane.b32.xlu1 %v2084_v63, %s9260_s21  ;;  %2028 = vrot.lane.b32.xlu0 %v1569_v41, %s9262_s28 }
 0x406   : > { %2096 = vrot.lane.b32.xlu1 %v2086_v0, %s9260_s21  ;;  %2094 = vrot.lane.b32.xlu0 %v2085_v3, %s9260_s21  ;;  %s7525_s21 = smov 4  }
 0x40a   : > { %2155 = vperm.xlu0 %7003, %v2152_v4  }
 0x40e   : > { %2171 = vrot.lane.b32.xlu0 %v7501_v1, %s7509_s27 }
 0x44c   : > { %v1579_v5 = vpop.permute.xlu0 %1578  ;;  %v1827_v6 = vpop.permute.xlu1 %1826 }
 0x450   : > { %v1583_v8 = vpop.permute.xlu0 %1582  ;;  %v1581_v9 = vpop.permute.xlu1 %1580 }
 0x451   : > { %v1584_v10 = vsel %vm9329_vm4, %v1579_v5, %v1581_v9  ;;  %v1585_v11 = vsel %vm9330_vm7, %v1581_v9, %v1583_v8  ;;  %vm9333_vm4 = vcmask 908288   ;;  %v1958_v5 = vld [vmem:[#allocation7 + $0x18] sm:$0xf] }
 0x452   : > { %6184 = vmatprep.subr.msk.bf16.mxu1 %vm9275_vm9, %v1585_v11  ;;  %v1592_v12 = vsel %vm9275_vm9, %v1584_v10, 0  ;;  %vm9334_vm7 = vmmov %vm9333_vm4  ;;  %v2023_v11 = vld [vmem:[#allocation7 + $0x1c] sm:$0xf] }
 0x453   : > { %1598 = vmatpush1.bf16.msra.mxu1 %v1592_v12 }
 0x454   : > { %v1765_v14 = vpop.permute.xlu0 %1764  ;;  %v1697_v15 = vpop.permute.xlu1 %1696 }
 0x456   : > { %6185 = vmatmul.mubr.msk.bf16.vlgmr.msra.gmra.mrb[16].mxu1 %vm9274_vm12, %v1575_v13 }
 0x457   : > { %1745 = vmatprep.mubr.bf16.mxu1 %v7501_v1 }
 0x458   : > { %v1829_v16 = vpop.permute.xlu0 %1828  ;;  %v1831_v19 = vpop.permute.xlu1 %1830 }
 0x459   : > { %v1832_v30 = vsel %vm9333_vm4, %v1827_v6, %v1829_v16  ;;  %v1833_v33 = vsel %vm9334_vm7, %v1829_v16, %v1831_v19  ;;  %v2088_v19 = vld [vmem:[#allocation7 + $0x20] sm:$0xf] }
 0x45a   : > { %v1838_v45 = vsel %vm9275_vm9, %v1832_v30, 0 }
 0x45c   : > { %v1895_v20 = vpop.permute.xlu0 %1894  ;;  %v1963_v22 = vpop.permute.xlu1 %1962 }
 0x460   : > { %v1699_v23 = vpop.permute.xlu0 %1698  ;;  %v1701_v24 = vpop.permute.xlu1 %1700 }
 0x461   : > { %v1702_v25 = vsel %vm9331_vm8, %v1697_v15, %v1699_v23  ;;  %v1703_v26 = vsel %vm9332_vm2, %v1699_v23, %v1701_v24  ;;  %vm9340_vm2 = vcmask 1039360  }
 0x462   : > { %6188 = vmatprep.subr.msk.bf16.mxu1 %vm9275_vm9, %v1703_v26  ;;  %v1708_v28 = vsel %vm9275_vm9, %v1702_v25, 0  ;;  %vm9341_vm7 = vmmov %vm9340_vm2 }
 0x463   : > { %1714 = vmatpush1.bf16.msra.mxu1 %v1708_v28 }
 0x464   : > { %v1769_v38 = vpop.permute.xlu0 %1768  ;;  %6192 = vmatprep.subr.msk.bf16.mxu1 %vm9275_vm9, %v1833_v33  ;;  %v1767_v39 = vpop.permute.xlu1 %1766 }
 0x465   : > { %v1770_v41 = vsel %vm9335_vm15, %v1765_v14, %v1767_v39  ;;  %v1771_v42 = vsel %vm9336_vm5, %v1767_v39, %v1769_v38  ;;  %vm9337_vm5 = vcmask 785408  }
 0x466   : > { %6189 = vmatmul.mubr.msk.bf16.vlgmr.msra.gmra.mrb[20].mxu1 %vm9274_vm12, %v1692_v34  ;;  %6190 = vmatprep.subr.msk.bf16.mxu0 %vm9275_vm9, %v1771_v42  ;;  %v1776_v44 = vsel %vm9275_vm9, %v1770_v41, 0  ;;  %vm9338_vm15 = vmmov %vm9337_vm5 }
 0x467   : > { %1782 = vmatpush1.bf16.msra.mxu0 %v1776_v44  ;;  %1844 = vmatpush1.bf16.msra.mxu1 %v1838_v45 }
 0x468   : > { %v2025_v48 = vpop.permute.xlu0 %2024  ;;  %v2027_v50 = vpop.permute.xlu1 %2026  ;;  %1875 = vmatprep.mubr.bf16.mxu1 %v7501_v1 }
 0x469   : > { %v2030_v4 = vsel %vm9271_vm13, %v2025_v48, %v2027_v50 }
 0x46a   : > { %6191 = vmatmul.mubr.msk.bf16.vlgmr.msra.gmra.mrb[24].mxu0 %vm9274_vm12, %v1760_v47  ;;  %v2036_v10 = vsel %vm9275_vm9, %v2030_v4, 0 }
 0x46b   : > { %1943 = vmatprep.mubr.bf16.mxu0 %v7501_v1 }
 0x46c   : > { %v1899_v55 = vpop.permute.xlu0 %1898  ;;  %v1897_v56 = vpop.permute.xlu1 %1896 }
 0x46d   : > { %v1900_v57 = vsel %vm9272_vm3, %v1895_v20, %v1897_v56  ;;  %v1901_v58 = vsel %vm9272_vm3, %v1897_v56, %v1899_v55 }
 0x46e   : > { %6193 = vmatmul.mubr.msk.bf16.vlgmr.msra.gmra.mrb[24].mxu1 %vm9274_vm12, %v1825_v53  ;;  %6194 = vmatprep.subr.msk.bf16.mxu0 %vm9275_vm9, %v1901_v58  ;;  %v1906_v59 = vsel %vm9275_vm9, %v1900_v57, 0 }
 0x46f   : > { %1912 = vmatpush1.bf16.msra.mxu0 %v1906_v59  ;;  %2011 = vmatprep.mubr.bf16.mxu1 %v7501_v1 }
 0x470   : > { %v1965_v61 = vpop.permute.xlu0 %1964  ;;  %v1967_v62 = vpop.permute.xlu1 %1966 }
 0x471   : > { %v1968_v63 = vsel %vm9337_vm5, %v1963_v22, %v1965_v61  ;;  %v1969_v0 = vsel %vm9338_vm15, %v1965_v61, %v1967_v62  ;;  %vm9342_vm5 = vcmask 916480  }
 0x472   : > { %6195 = vmatmul.mubr.msk.bf16.vlgmr.msra.gmra.mrb[28].mxu0 %vm9274_vm12, %v1890_v60  ;;  %6196 = vmatprep.subr.msk.bf16.mxu1 %vm9275_vm9, %v1969_v0  ;;  %v1974_v3 = vsel %vm9275_vm9, %v1968_v63, 0  ;;  %vm9343_vm15 = vmmov %vm9342_vm5 }
 0x473   : > { %1980 = vmatpush1.bf16.msra.mxu1 %v1974_v3  ;;  %2073 = vmatprep.mubr.bf16.mxu0 %v7501_v1 }
 0x474   : > { %v2029_v6 = vpop.permute.xlu0 %2028  ;;  %v2093_v8 = vpop.permute.xlu1 %2092 }
 0x475   : > { %v2031_v9 = vsel %vm9271_vm13, %v2027_v50, %v2029_v6 }
 0x476   : > { %6197 = vmatmul.mubr.msk.bf16.vlgmr.msra.gmra.mrb[28].mxu1 %vm9274_vm12, %v1958_v5  ;;  %6198 = vmatprep.subr.msk.bf16.mxu0 %vm9275_vm9, %v2031_v9 }
 0x477   : > { %2042 = vmatpush1.bf16.msra.mxu0 %v2036_v10  ;;  %2141 = vmatprep.mubr.bf16.mxu1 %v7501_v1 }
 0x478   : > { %v2095_v12 = vpop.permute.xlu0 %2094  ;;  %v2097_v13 = vpop.permute.xlu1 %2096 }
 0x479   : > { %v2098_v14 = vsel %vm9270_vm0, %v2093_v8, %v2095_v12  ;;  %v2099_v15 = vsel %vm9270_vm0, %v2095_v12, %v2097_v13 }
 0x47a   : > { %6199 = vmatmul.mubr.msk.bf16.vlgmr.msra.gmra.mrb[32].mxu0 %vm9274_vm12, %v2023_v11  ;;  %6200 = vmatprep.subr.msk.bf16.mxu1 %vm9275_vm9, %v2099_v15  ;;  %v2104_v16 = vsel %vm9275_vm9, %v2098_v14, 0 }
 0x47b   : > { %2110 = vmatpush1.bf16.msra.mxu1 %v2104_v16 }
 0x47e   : > { %6201 = vmatmul.mubr.msk.bf16.vlgmr.msra.gmra.mrb[32].mxu1 %vm9274_vm12, %v2088_v19 }
 0x4b6   : > { %v1681_v20 = vpop.f32.mrb[20].mxu0 }
 0x4b7   : > { %v1683_v22 = vpop.f32.mrb[21].mxu0 }
 0x4b8   : > { %v1685_v23 = vpop.f32.mrb[22].mxu0 }
 0x4b9   : > { %v1686_v24 = vpop.f32.mrb[23].mxu0 }
 0x529   : > { %v1631_v25 = vpop.f32.mrb[16].mxu1 }
 0x52a   : > { %v1633_v26 = vpop.f32.mrb[17].mxu1  ;;  %v1682_v28 = vadd.f32 %v1681_v20, %v1631_v25 }
 0x52b   : > { %v1635_v30 = vpop.f32.mrb[18].mxu1  ;;  %v1684_v33 = vadd.f32 %v1683_v22, %v1633_v26 }
 0x52c   : > { %v1636_v34 = vpop.f32.mrb[19].mxu1  ;;  %v2156_v30 = vpop.permute.xlu0 %2155 }
 0x539   : > { %v1747_v38 = vpop.f32.mrb[20].mxu1 }
 0x53a   : > { %v1754_v39 = vadd.f32 %v1747_v38, %v1682_v28  ;;  %v1749_v41 = vpop.f32.mrb[21].mxu1 }
 0x53b   : > { %v1755_v42 = vadd.f32 %v1749_v41, %v1684_v33  ;;  %v1751_v44 = vpop.f32.mrb[22].mxu1  ;;  %v7007_v41 = vld [vmem:[%s9339_s15] sm:$0xff]  }
 0x53c   : > { %v1752_v45 = vpop.f32.mrb[23].mxu1 }
 0x53d   : > { %v1815_v47 = vpop.f32.mrb[24].mxu0  ;;  %v7009_v45 = vld [vmem:[%s9339_s15 + $0x8] sm:$0xff]  }
 0x53e   : > { %v1822_v48 = vadd.f32 %v1815_v47, %v1754_v39  ;;  %v1817_v50 = vpop.f32.mrb[25].mxu0  ;;  %v7006_v39 = vld [vmem:[%s9339_s15 + $0x40] sm:$0xff]  }
 0x53f   : > { %v1823_v53 = vadd.f32 %v1817_v50, %v1755_v42  ;;  %v1819_v55 = vpop.f32.mrb[26].mxu0  ;;  %v7008_v42 = vld [vmem:[%s9339_s15 + $0x48] sm:$0xff]   ;;  %6399 = vmatprep.subr.bf16.mxu0 %v7006_v39  ;;  %v7010_v50 = vld [vmem:[%s9339_s15 + $0x50] sm:$0xff]  }
 0x540   : > { %v1820_v56 = vpop.f32.mrb[27].mxu0  ;;  %6400 = vmatpush3.bf16.msra.mxu0 %v7007_v41  ;;  %v7011_v55 = vld [vmem:[%s9339_s15 + $0x10] sm:$0xff]  }
 0x541   : > { %v1877_v57 = vpop.f32.mrb[24].mxu1  ;;  %6401 = vmatprep.subr.bf16.mxu0 %v7008_v42 }
 0x542   : > { %v1884_v58 = vadd.f32 %v1877_v57, %v1822_v48  ;;  %v1879_v59 = vpop.f32.mrb[25].mxu1  ;;  %v7012_v57 = vld [vmem:[%s9339_s15 + $0x58] sm:$0xff]  }
 0x543   : > { %v1885_v60 = vadd.f32 %v1879_v59, %v1823_v53  ;;  %v1881_v61 = vpop.f32.mrb[26].mxu1  ;;  %v2172_v53 = vpop.permute.xlu0 %2171  ;;  %v7013_v59 = vld [vmem:[%s9339_s15 + $0x18] sm:$0xff]  }
 0x544   : > { %v1882_v62 = vpop.f32.mrb[27].mxu1  ;;  %6402 = vmatpush3.bf16.msra.mxu0 %v7009_v45  ;;  %v7015_v61 = vld [vmem:[%s9339_s15 + $0x20] sm:$0xff]  }
 0x545   : > { %v1945_v63 = vpop.f32.mrb[28].mxu0  ;;  %6403 = vmatprep.subr.bf16.mxu0 %v7010_v50  ;;  %v7016_v62 = vld [vmem:[%s9339_s15 + $0x68] sm:$0xff]  }
 0x546   : > { %v1952_v0 = vadd.f32 %v1945_v63, %v1884_v58  ;;  %v1947_v3 = vpop.f32.mrb[29].mxu0  ;;  %v2180_v58 = vmax.bf16 %v7501_v1, %v2172_v53  ;;  %v7017_v63 = vld [vmem:[%s9339_s15 + $0x28] sm:$0xff]  }
 0x547   : > { %v1953_v4 = vadd.f32 %v1947_v3, %v1885_v60  ;;  %v1949_v5 = vpop.f32.mrb[30].mxu0  ;;  %v7014_v60 = vld [vmem:[%s9339_s15 + $0x60] sm:$0xff]   ;;  %v7019_v3 = vld [vmem:[%s9339_s15 + $0x30] sm:$0xff]  }
 0x548   : > { %v1950_v6 = vpop.f32.mrb[31].mxu0  ;;  %6404 = vmatpush3.bf16.msra.mxu0 %v7011_v55  ;;  %v7021_v5 = vld [vmem:[%s9339_s15 + $0x38] sm:$0xff]  }
 0x549   : > { %v2013_v8 = vpop.f32.mrb[28].mxu1  ;;  %6405 = vmatprep.subr.bf16.mxu0 %v7012_v57  ;;  %v858_v6 = vand.u32 7, %v7993_v2 }
 0x54a   : > { %v2020_v9 = vadd.f32 %v2013_v8, %v1952_v0  ;;  %v2015_v10 = vpop.f32.mrb[29].mxu1  ;;  %v7018_v0 = vld [vmem:[%s9339_s15 + $0x70] sm:$0xff]  }
 0x54b   : > { %v2021_v11 = vadd.f32 %v2015_v10, %v1953_v4  ;;  %v2017_v12 = vpop.f32.mrb[30].mxu1  ;;  %v7020_v4 = vld [vmem:[%s9339_s15 + $0x78] sm:$0xff]   ;;  %vm860_vm8 = vcmp.ne.s32.totalorder %v858_v6, 7 }
 0x54c   : > { %v2018_v13 = vpop.f32.mrb[31].mxu1  ;;  %6406 = vmatpush3.bf16.msra.mxu0 %v7013_v59  ;;  %vm2492_vm4 = vmpackc.low %vm860_vm8, %vm860_vm8  ;;  %vm8415_vm8 = vcmp.ne.s32.totalorder %v858_v6, 0 }
 0x54d   : > { %v2075_v14 = vpop.f32.mrb[32].mxu0  ;;  %6407 = vmatprep.subr.bf16.mxu0 %v7014_v60  ;;  %v2493_v13 = vsel %vm2492_vm4, 65537, %v7501_v1  ;;  %vm7520_vm4 = vmmov 0  }
 0x54e   : > { %v2082_v15 = vadd.f32 %v2075_v14, %v2020_v9  ;;  %v2077_v16 = vpop.f32.mrb[33].mxu0 }
 0x54f   : > { %v2083_v19 = vadd.f32 %v2077_v16, %v2021_v11  ;;  %v2079_v20 = vpop.f32.mrb[34].mxu0 }
 0x550   : > { %v2080_v22 = vpop.f32.mrb[35].mxu0  ;;  %6408 = vmatpush3.bf16.msra.mxu0 %v7015_v61 }
 0x551   : > { %v2143_v23 = vpop.f32.mrb[32].mxu1  ;;  %6409 = vmatprep.subr.bf16.mxu0 %v7016_v62 }
 0x552   : > { %v2150_v24 = vadd.f32 %v2143_v23, %v2082_v15  ;;  %v2145_v25 = vpop.f32.mrb[33].mxu1  ;;  %v2497_v15 = vrot.slane %v2493_v13, %v8003_v7 }
 0x553   : > { %v2151_v26 = vadd.f32 %v2145_v25, %v2083_v19  ;;  %v2147_v28 = vpop.f32.mrb[34].mxu1 }
 0x554   : > { %v2148_v33 = vpop.f32.mrb[35].mxu1  ;;  %v2158_v34 = vadd.f32 %v2156_v30, %v2150_v24  ;;  %6410 = vmatpush3.bf16.msra.mxu0 %v7017_v63 }
 0x555   : > { %v2159_v38 = vadd.f32 %v2156_v30, %v2151_v26  ;;  %6411 = vmatprep.subr.bf16.mxu0 %v7018_v0 }
 0x556   : > { %v2160_v47 = vmax.f32 %v2158_v34, 0.0 }
 0x557   : > { %v2161_v44 = vmax.f32 %v2159_v38, 0.0 }
 0x558   : > { %v8365_v56 = vpack.c.bf16 %v2160_v47, %v2160_v47  ;;  %6412 = vmatpush3.bf16.msra.mxu0 %v7019_v3  ;;  %v2942_v3 = vld [vmem:[#allocation12 + $0x8] sm:$0xff] }
 0x559   : > { %v8355_v48 = vpack.c.bf16 %v2161_v44, %v2161_v44  ;;  %6413 = vmatprep.subr.bf16.mxu0 %v7020_v4  ;;  %v7519_v44 = vmov 0.0   ;;  %v2941_v4 = vld [vmem:[#allocation12] sm:$0xff] }
 0x55a   : > { %6528 = vmatprep.subr.bf16.mxu1 %v7519_v44  ;;  %6530 = vmatprep.mubr.msk.bf16.mxu1 %vm7520_vm4, %v7519_v44 }
 0x55b   : > { %2169 = vrot.lane.b32.xlu1 %v8355_v48, %s7509_s27 }
 0x55c   : > { %6414 = vmatpush3.bf16.msra.mxu0 %v7021_v5 }
 0x55d   : > { %6552 = vmatprep.subr.bf16.mxu0 %v7519_v44 }
 0x55f   : > { %2167 = vrot.lane.b32.xlu1 %v8365_v56, %s7509_s27 }
 0x563   : > { %2188 = vrot.lane.b32.xlu1 %v2180_v58, %s9281_s2 }
 0x5cd   : > { %v2170_v8 = vpop.permute.xlu1 %2169 }
 0x5ce   : > { %v2174_v9 = vsel %vm9340_vm2, %v2170_v8, %v2172_v53  ;;  %vm2376_vm2 = vmpackc.low %vm8415_vm8, %vm8415_vm8 }
 0x5cf   : > { %v2178_v10 = vmax.bf16 %v2174_v9, %v8355_v48  ;;  %v2562_v39 = vsel %vm2376_vm2, 65537, %v7501_v1  ;;  %v7022_v9 = vld [vmem:[#allocation10 + $0x8] sm:$0xff]  }
 0x5d0   : > { %v8430_v42 = vrot.slane %v2562_v39, %v8003_v7  ;;  %v7028_v39 = vld [vmem:[#allocation10 + $0x28] sm:$0xff]  }
 0x5d1   : > { %2186 = vrot.lane.b32.xlu0 %v2178_v10, %s9281_s2  ;;  %v2168_v11 = vpop.permute.xlu1 %2167 }
 0x5d2   : > { %v2173_v12 = vsel %vm9341_vm7, %v2168_v11, %v2170_v8  ;;  %vm2368_vm7 = vcmask 72704   ;;  %vm2965_vm8 = vcmp.ne.s16.totalorder %v8430_v42, 0 }
 0x5d3   : > { %v2177_v14 = vmax.bf16 %v2173_v12, %v8365_v56 }
 0x5d5   : > { %2184 = vrot.lane.b32.xlu0 %v2177_v14, %s9281_s2  ;;  %v2189_v16 = vpop.permute.xlu1 %2188 }
 0x5d9   : > { %2498 = vrot.lane.b32.xlu0 %v2497_v15, %s7503_s5 }
 0x5dd   : > { %2690 = vrot.lane.b32.xlu0 %v2497_v15, %s7516_s29 }
 0x5e1   : > { %2877 = vrot.lane.b32.xlu0 %v2497_v15, %s7505_s1  ;;  %s7517_s1 = smov 9  }
 0x643   : > { %v2187_v19 = vpop.permute.xlu0 %2186 }
 0x644   : > { %v2191_v20 = vsel %vm9342_vm5, %v2187_v19, %v2189_v16  ;;  %vm2371_vm5 = vcmask 596992   ;;  %v7024_v16 = vld [vmem:[#allocation10] sm:$0xff]  }
 0x645   : > { %v2195_v22 = vmax.bf16 %v2191_v20, %v2178_v10 }
 0x647   : > { %v2185_v23 = vpop.permute.xlu0 %2184  ;;  %2356 = vmatprep.mubr.bf16.mxu0 %v2195_v22  ;;  %v7025_v22 = vld [vmem:[#allocation10 + $0x30] sm:$0xff]  }
 0x648   : > { %v2190_v24 = vsel %vm9343_vm15, %v2185_v23, %v2187_v19 }
 0x649   : > { %v2194_v25 = vmax.bf16 %v2190_v24, %v2177_v14  ;;  %v7023_v14 = vld [vmem:[#allocation10 + $0x20] sm:$0xff]   ;;  %v7026_v24 = vld [vmem:[#allocation10 + $0x10] sm:$0xff]  }
 0x64b   : > { %2357 = vmatmul.mubr.bf16.vlgmr.msra.gmra.mrb[36].mxu0 %v2194_v25  ;;  %v8442_v45 = vpop.permute.xlu0 %2498 }
 0x64c   : > { %6554 = vmatprep.mubr.msk.bf16.mxu0 %vm7520_vm4, %v7519_v44  ;;  %vm2500_vm15 = vcmp.ne.s16.totalorder %v8442_v45, 0 }
 0x64f   : > { %v8447_v55 = vpop.permute.xlu0 %2690 }
 0x650   : > { %vm2692_vm13 = vcmp.ne.s16.totalorder %v8447_v55, 0 }
 0x653   : > { %v8463_v61 = vpop.permute.xlu0 %2877 }
 0x654   : > { %vm2879_vm14 = vcmp.ne.s16.totalorder %v8463_v61, 0 }
 0x71e   : > { %v6415_v28 = vpop.f32.mrb[36].mxu0 }
 0x71f   : > { %v6416_v30 = vpop.f32.mrb[37].mxu0 }
 0x720   : > { %v6417_v33 = vadd.f32 %v6416_v30, %v6415_v28  ;;  %v6418_v34 = vpop.f32.mrb[38].mxu0  ;;  %v7029_v30 = vld [vmem:[#allocation10 + $0x40] sm:$0xff]  }
 0x721   : > { %v6419_v38 = vpop.f32.mrb[39].mxu0 }
 0x722   : > { %v2364_v41 = vpack.c.bf16 %v6417_v33, %v6417_v33  ;;  %v7027_v33 = vld [vmem:[#allocation10 + $0x18] sm:$0xff]  }
 0x724   : > { %2366 = vrot.lane.b32.xlu1 %v2364_v41, %s7517_s1 }
 0x728   : > { %2567 = vrot.lane.b32.xlu1 %v8430_v42, %s7518_s30 }
 0x72c   : > { %2754 = vrot.lane.b32.xlu1 %v8430_v42, %s7504_s13  ;;  %s7521_s13 = smov 120  }
 0x796   : > { %v2367_v47 = vpop.permute.xlu1 %2366 }
 0x797   : > { %v2370_v50 = vsel %vm2368_vm7, 0, %v2367_v47 }
 0x798   : > { %v2372_v53 = vsel %vm2371_vm5, %v2370_v50, 0  ;;  %v7030_v50 = vld [vmem:[#allocation10 + $0x38] sm:$0xff]  }
 0x799   : > { %2389 = vrot.lane.b32.xlu1 %v2372_v53, %s7509_s27  ;;  %v2501_v57 = vsel %vm2500_vm15, %v2372_v53, 0  ;;  %v2693_v62 = vsel %vm2692_vm13, %v2372_v53, 0  ;;  %v2880_v0 = vsel %vm2879_vm14, %v2372_v53, 0  ;;  %v2377_v10 = vsel %vm2376_vm2, %v2372_v53, 0 }
 0x79a   : > { %2511 = vrot.lane.b32.xlu0 %v2501_v57, %s9283_s4  ;;  %v8453_v58 = vpop.permute.xlu1 %2567  ;;  %v2447_v12 = vsel %vm9275_vm9, %v2377_v10, 0  ;;  %vm9347_vm2 = vcmask 130048  }
 0x79b   : > { %vm2569_vm0 = vcmp.ne.s16.totalorder %v8453_v58, 0 }
 0x79c   : > { %v2570_v59 = vsel %vm2569_vm0, %v2372_v53, 0 }
 0x79d   : > { %2580 = vrot.lane.b32.xlu1 %v2570_v59, %s7521_s13 }
 0x79e   : > { %2639 = vrot.lane.b32.xlu0 %v2372_v53, %s7522_s7  ;;  %v8461_v60 = vpop.permute.xlu1 %2754 }
 0x79f   : > { %vm2756_vm3 = vcmp.ne.s16.totalorder %v8461_v60, 0 }
 0x7a0   : > { %v2757_v63 = vsel %vm2756_vm3, %v2372_v53, 0 }
 0x7a1   : > { %2703 = vrot.lane.b32.xlu1 %v2693_v62, %s7523_s3 }
 0x7a2   : > { %2767 = vrot.lane.b32.xlu0 %v2757_v63, %s9281_s2 }
 0x7a5   : > { %2826 = vrot.lane.b32.xlu1 %v2372_v53, %s9279_s20 }
 0x7a6   : > { %2890 = vrot.lane.b32.xlu0 %v2880_v0, %s9346_s26 }
 0x7a9   : > { %2945 = vperm.xlu1 %7004, %v2941_v4  }
 0x7aa   : > { %2950 = vperm.xlu0 %7003, %v2942_v3  }
 0x80b   : > { %v2390_v5 = vpop.permute.xlu1 %2389 }
 0x80c   : > { %v2395_v6 = vsel %vm9275_vm9, %v2390_v5, 0  ;;  %v2512_v8 = vpop.permute.xlu0 %2511 }
 0x80d   : > { %6529 = vmatpush3.bf16.msra.mxu1 %v2395_v6  ;;  %v2517_v20 = vsel %vm9275_vm9, %v2512_v8, 0 }
 0x80e   : > { %6534 = vmatprep.subr.bf16.mxu1 %v7519_v44 }
 0x80f   : > { %v2581_v25 = vpop.permute.xlu1 %2580 }
 0x810   : > { %v2640_v11 = vpop.permute.xlu0 %2639  ;;  %6531 = vmatmul.mubr.msk.bf16.vlgmr.msra.gmra.mrb[36].mxu1 %vm9274_vm12, %v7022_v9  ;;  %v2586_v28 = vsel %vm9275_vm9, %v2581_v25, 0 }
 0x811   : > { %v2645_v13 = vsel %vm9275_vm9, %v2640_v11, 0  ;;  %6535 = vmatpush3.bf16.msra.mxu1 %v2447_v12  ;;  %6536 = vmatprep.mubr.msk.bf16.mxu1 %vm7520_vm4, %v7519_v44 }
 0x812   : > { %6553 = vmatpush3.bf16.msra.mxu0 %v2645_v13  ;;  %6540 = vmatprep.subr.bf16.mxu1 %v7519_v44 }
 0x813   : > { %6564 = vmatprep.subr.bf16.mxu0 %v7519_v44  ;;  %v2704_v34 = vpop.permute.xlu1 %2703 }
 0x814   : > { %v2768_v15 = vpop.permute.xlu0 %2767  ;;  %v2709_v38 = vsel %vm9275_vm9, %v2704_v34, 0 }
 0x815   : > { %v2773_v19 = vsel %vm9275_vm9, %v2768_v15, 0  ;;  %6555 = vmatmul.mubr.msk.bf16.vlgmr.msra.gmra.mrb[40].mxu0 %vm9274_vm12, %v7023_v14 }
 0x816   : > { %6565 = vmatpush3.bf16.msra.mxu0 %v2773_v19  ;;  %6566 = vmatprep.mubr.msk.bf16.mxu0 %vm7520_vm4, %v7519_v44 }
 0x817   : > { %6576 = vmatprep.subr.bf16.mxu0 %v7519_v44  ;;  %v2827_v41 = vpop.permute.xlu1 %2826 }
 0x818   : > { %6537 = vmatmul.mubr.msk.bf16.vlgmr.msra.gmra.mrb[40].mxu1 %vm9274_vm12, %v7024_v16  ;;  %v2891_v23 = vpop.permute.xlu0 %2890  ;;  %v2832_v47 = vsel %vm9275_vm9, %v2827_v41, 0 }
 0x819   : > { %6541 = vmatpush3.bf16.msra.mxu1 %v2517_v20  ;;  %6542 = vmatprep.mubr.msk.bf16.mxu1 %vm7520_vm4, %v7519_v44  ;;  %v2896_v26 = vsel %vm9275_vm9, %v2891_v23, 0  ;;  %vm9349_vm9 = vmmov %vm9347_vm2 }
 0x81a   : > { %6546 = vmatprep.subr.bf16.mxu1 %v7519_v44 }
 0x81d   : > { %6567 = vmatmul.mubr.msk.bf16.vlgmr.msra.gmra.mrb[44].mxu0 %vm9274_vm12, %v7025_v22 }
 0x81e   : > { %6577 = vmatpush3.bf16.msra.mxu0 %v2896_v26  ;;  %6578 = vmatprep.mubr.msk.bf16.mxu0 %vm7520_vm4, %v7519_v44 }
 0x81f   : > { %6588 = vmatprep.subr.bf16.mxu0 %v7519_v44 }
 0x820   : > { %6543 = vmatmul.mubr.msk.bf16.vlgmr.msra.gmra.mrb[44].mxu1 %vm9274_vm12, %v7026_v24 }
 0x821   : > { %6547 = vmatpush3.bf16.msra.mxu1 %v2586_v28  ;;  %6548 = vmatprep.mubr.msk.bf16.mxu1 %vm7520_vm4, %v7519_v44 }
 0x822   : > { %6558 = vmatprep.subr.bf16.mxu1 %v7519_v44 }
 0x825   : > { %6579 = vmatmul.mubr.msk.bf16.vlgmr.msra.gmra.mrb[48].mxu0 %vm9274_vm12, %v7029_v30 }
 0x826   : > { %6590 = vmatprep.mubr.msk.bf16.mxu0 %vm7520_vm4, %v7519_v44 }
 0x828   : > { %6549 = vmatmul.mubr.msk.bf16.vlgmr.msra.gmra.mrb[48].mxu1 %vm9274_vm12, %v7027_v33 }
 0x829   : > { %6559 = vmatpush3.bf16.msra.mxu1 %v2709_v38  ;;  %6560 = vmatprep.mubr.msk.bf16.mxu1 %vm7520_vm4, %v7519_v44 }
 0x82a   : > { %6570 = vmatprep.subr.bf16.mxu1 %v7519_v44 }
 0x830   : > { %6561 = vmatmul.mubr.msk.bf16.vlgmr.msra.gmra.mrb[52].mxu1 %vm9274_vm12, %v7028_v39 }
 0x831   : > { %6571 = vmatpush3.bf16.msra.mxu1 %v2832_v47  ;;  %6572 = vmatprep.mubr.msk.bf16.mxu1 %vm7520_vm4, %v7519_v44 }
 0x832   : > { %6582 = vmatprep.subr.bf16.mxu1 %v7519_v44 }
 0x838   : > { %6573 = vmatmul.mubr.msk.bf16.vlgmr.msra.gmra.mrb[56].mxu1 %vm9274_vm12, %v7030_v50  ;;  %vm9348_vm12 = vmmov %vm9347_vm2 }
 0x839   : > { %6584 = vmatprep.mubr.msk.bf16.mxu1 %vm7520_vm4, %v7519_v44 }
 0x8e3   : > { %v2431_v53 = vpop.f32.mrb[36].mxu1 }
 0x8e4   : > { %v6532_v57 = vpop.f32.mrb[37].mxu1 }
 0x8e5   : > { %v2434_v59 = vpop.f32.mrb[38].mxu1 }
 0x8e6   : > { %v6533_v62 = vpop.f32.mrb[39].mxu1 }
 0x8e8   : > { %v2681_v63 = vpop.f32.mrb[40].mxu0 }
 0x8e9   : > { %v6556_v0 = vpop.f32.mrb[41].mxu0 }
 0x8ea   : > { %v2684_v3 = vpop.f32.mrb[42].mxu0 }
 0x8eb   : > { %v2483_v4 = vpop.f32.mrb[40].mxu1  ;;  %v6557_v5 = vpop.f32.mrb[43].mxu0 }
 0x8ec   : > { %v2484_v6 = vadd.f32 %v2483_v4, %v2431_v53  ;;  %v6538_v8 = vpop.f32.mrb[41].mxu1 }
 0x8ed   : > { %v2486_v9 = vpop.f32.mrb[42].mxu1 }
 0x8ee   : > { %v2487_v10 = vadd.f32 %v2486_v9, %v2434_v59  ;;  %v6539_v11 = vpop.f32.mrb[43].mxu1 }
 0x8f0   : > { %v2809_v12 = vpop.f32.mrb[44].mxu0 }
 0x8f1   : > { %v6568_v13 = vpop.f32.mrb[45].mxu0 }
 0x8f2   : > { %v2812_v14 = vpop.f32.mrb[46].mxu0 }
 0x8f3   : > { %v2553_v15 = vpop.f32.mrb[44].mxu1  ;;  %v6569_v16 = vpop.f32.mrb[47].mxu0 }
 0x8f4   : > { %v2560_v19 = vadd.f32 %v2553_v15, %v2484_v6  ;;  %v6544_v20 = vpop.f32.mrb[45].mxu1  ;;  %v2946_v15 = vpop.permute.xlu1 %2945 }
 0x8f5   : > { %v2556_v22 = vpop.f32.mrb[46].mxu1 }
 0x8f6   : > { %v2561_v23 = vadd.f32 %v2556_v22, %v2487_v10  ;;  %v6545_v24 = vpop.f32.mrb[47].mxu1 }
 0x8f8   : > { %v2932_v25 = vpop.f32.mrb[48].mxu0 }
 0x8f9   : > { %v6580_v26 = vpop.f32.mrb[49].mxu0 }
 0x8fa   : > { %v2935_v28 = vpop.f32.mrb[50].mxu0 }
 0x8fb   : > { %v2622_v30 = vpop.f32.mrb[48].mxu1  ;;  %v6581_v33 = vpop.f32.mrb[51].mxu0 }
 0x8fc   : > { %v2629_v34 = vadd.f32 %v2622_v30, %v2560_v19  ;;  %v6550_v38 = vpop.f32.mrb[49].mxu1 }
 0x8fd   : > { %v2625_v39 = vpop.f32.mrb[50].mxu1 }
 0x8fe   : > { %v2630_v41 = vadd.f32 %v2625_v39, %v2561_v23  ;;  %v6551_v47 = vpop.f32.mrb[51].mxu1  ;;  %v2688_v50 = vadd.f32 %v2681_v63, %v2629_v34  ;;  %v2951_v63 = vpop.permute.xlu0 %2950  ;;  %v7031_v34 = vld [vmem:[#allocation13] sm:$0xff]  }
 0x900   : > { %v2689_v53 = vadd.f32 %v2684_v3, %v2630_v41 }
 0x903   : > { %v2745_v57 = vpop.f32.mrb[52].mxu1 }
 0x904   : > { %v2752_v59 = vadd.f32 %v2745_v57, %v2688_v50  ;;  %v6562_v62 = vpop.f32.mrb[53].mxu1  ;;  %v3484_v50 = vld [vmem:[#allocation15] sm:$0xff] }
 0x905   : > { %v2748_v0 = vpop.f32.mrb[54].mxu1 }
 0x906   : > { %v2753_v4 = vadd.f32 %v2748_v0, %v2689_v53  ;;  %v6563_v5 = vpop.f32.mrb[55].mxu1  ;;  %v2816_v6 = vadd.f32 %v2809_v12, %v2752_v59  ;;  %v3485_v53 = vld [vmem:[#allocation15 + $0x8] sm:$0xff]  ;;  %v7032_v59 = vld [vmem:[#allocation13 + $0x8] sm:$0xff]  }
 0x908   : > { %v2817_v8 = vadd.f32 %v2812_v14, %v2753_v4  ;;  %v7033_v4 = vld [vmem:[#allocation13 + $0x18] sm:$0xff]  }
 0x90b   : > { %v2868_v9 = vpop.f32.mrb[56].mxu1 }
 0x90c   : > { %v2875_v10 = vadd.f32 %v2868_v9, %v2816_v6  ;;  %v6574_v11 = vpop.f32.mrb[57].mxu1  ;;  %v7034_v6 = vld [vmem:[#allocation13 + $0x10] sm:$0xff]   ;;  %v7035_v9 = vld [vmem:[#allocation13 + $0x28] sm:$0xff]  }
 0x90d   : > { %v2871_v13 = vpop.f32.mrb[58].mxu1  ;;  %v7036_v11 = vld [vmem:[#allocation13 + $0x20] sm:$0xff]  }
 0x90e   : > { %v2939_v16 = vadd.f32 %v2932_v25, %v2875_v10  ;;  %v2876_v19 = vadd.f32 %v2871_v13, %v2817_v8  ;;  %v6575_v20 = vpop.f32.mrb[59].mxu1 }
 0x90f   : > { %v7039_v20 = vld [vmem:[#allocation13 + $0x40] sm:$0xff]  }
 0x910   : > { %v2940_v22 = vadd.f32 %v2935_v28, %v2876_v19  ;;  %v2953_v23 = vadd.f32 %v2946_v15, %v2939_v16  ;;  %v7038_v15 = vld [vmem:[#allocation13 + $0x38] sm:$0xff]   ;;  %v7037_v16 = vld [vmem:[#allocation13 + $0x30] sm:$0xff]  }
 0x912   : > { %v2954_v3 = vadd.f32 %v2951_v63, %v2940_v22  ;;  %v2955_v26 = vmax.f32 %v2953_v23, 0.0 }
 0x914   : > { %v2956_v24 = vmax.f32 %v2954_v3, 0.0 }
 0x916   : > { %v2957_v30 = vpack.c.bf16 %v2956_v24, %v2955_v26 }
 0x918   : > { %2959 = vrot.lane.b32.xlu1 %v2957_v30, %s7517_s1 }
 0x98a   : > { %v2960_v33 = vpop.permute.xlu1 %2959 }
 0x98b   : > { %v2962_v12 = vsel %vm2368_vm7, 0, %v2960_v33 }
 0x98c   : > { %v2963_v14 = vsel %vm2371_vm5, %v2962_v12, 0 }
 0x98d   : > { %2978 = vrot.lane.b32.xlu0 %v2963_v14, %s7509_s27  ;;  %v3075_v25 = vsel %vm2500_vm15, %v2963_v14, 0  ;;  %v2966_v28 = vsel %vm2965_vm8, %v2963_v14, 0  ;;  %v3134_v38 = vsel %vm2569_vm0, %v2963_v14, 0  ;;  %v3250_v39 = vsel %vm2692_vm13, %v2963_v14, 0 }
 0x98e   : > { %3085 = vrot.lane.b32.xlu1 %v3075_v25, %s9283_s4  ;;  %6589 = vmatpush3.bf16.msra.mxu0 %v2966_v28  ;;  %v3309_v41 = vsel %vm2756_vm3, %v2963_v14, 0  ;;  %v3425_v47 = vsel %vm2879_vm14, %v2963_v14, 0 }
 0x98f   : > { %6600 = vmatprep.subr.bf16.mxu0 %v7519_v44 }
 0x991   : > { %3144 = vrot.lane.b32.xlu0 %v3134_v38, %s7521_s13  ;;  %6591 = vmatmul.mubr.msk.bf16.vlgmr.msra.gmra.mrb[52].mxu0 %vm9347_vm2, %v7031_v34 }
 0x992   : > { %3201 = vrot.lane.b32.xlu1 %v2963_v14, %s7522_s7  ;;  %6602 = vmatprep.mubr.msk.bf16.mxu0 %vm7520_vm4, %v7519_v44 }
 0x995   : > { %3260 = vrot.lane.b32.xlu0 %v3250_v39, %s7523_s3 }
 0x996   : > { %3319 = vrot.lane.b32.xlu1 %v3309_v41, %s9281_s2 }
 0x999   : > { %3376 = vrot.lane.b32.xlu0 %v2963_v14, %s9279_s20  ;;  %s9370_s20 = sld [smem:[#allocation33_spill]] }
 0x99a   : > { %3435 = vrot.lane.b32.xlu1 %v3425_v47, %s9346_s26 }
 0x99d   : > { %3488 = vperm.xlu0 %7003, %v3484_v50  }
 0x99e   : > { %3493 = vperm.xlu1 %7004, %v3485_v53  }
 0x9ff   : > { %v2979_v57 = vpop.permute.xlu0 %2978 }
 0xa00   : > { %6583 = vmatpush3.bf16.msra.mxu1 %v2979_v57  ;;  %v3086_v62 = vpop.permute.xlu1 %3085 }
 0xa01   : > { %6594 = vmatprep.subr.bf16.mxu1 %v7519_v44 }
 0xa03   : > { %6585 = vmatmul.mubr.msk.bf16.vlgmr.msra.gmra.mrb[60].mxu1 %vm9347_vm2, %v7032_v59  ;;  %v3145_v0 = vpop.permute.xlu0 %3144 }
 0xa04   : > { %6595 = vmatpush3.bf16.msra.mxu1 %v3086_v62  ;;  %6601 = vmatpush3.bf16.msra.mxu0 %v3145_v0  ;;  %v3202_v8 = vpop.permute.xlu1 %3201 }
 0xa05   : > { %6612 = vmatprep.subr.bf16.mxu0 %v7519_v44  ;;  %6596 = vmatprep.mubr.msk.bf16.mxu1 %vm7520_vm4, %v7519_v44 }
 0xa06   : > { %6606 = vmatprep.subr.bf16.mxu1 %v7519_v44 }
 0xa07   : > { %v3261_v5 = vpop.permute.xlu0 %3260  ;;  %6603 = vmatmul.mubr.msk.bf16.vlgmr.msra.gmra.mrb[56].mxu0 %vm9348_vm12, %v7033_v4  ;;  %vm9350_vm12 = vmmov %vm9347_vm2 }
 0xa08   : > { %6613 = vmatpush3.bf16.msra.mxu0 %v3261_v5  ;;  %6614 = vmatprep.mubr.msk.bf16.mxu0 %vm7520_vm4, %v7519_v44  ;;  %v3320_v13 = vpop.permute.xlu1 %3319 }
 0xa09   : > { %6624 = vmatprep.subr.bf16.mxu0 %v7519_v44 }
 0xa0b   : > { %6597 = vmatmul.mubr.msk.bf16.vlgmr.msra.gmra.mrb[64].mxu1 %vm9347_vm2, %v7034_v6  ;;  %v3377_v10 = vpop.permute.xlu0 %3376 }
 0xa0c   : > { %6607 = vmatpush3.bf16.msra.mxu1 %v3202_v8  ;;  %6608 = vmatprep.mubr.msk.bf16.mxu1 %vm7520_vm4, %v7519_v44  ;;  %v3436_v19 = vpop.permute.xlu1 %3435 }
 0xa0d   : > { %6618 = vmatprep.subr.bf16.mxu1 %v7519_v44 }
 0xa0f   : > { %6615 = vmatmul.mubr.msk.bf16.vlgmr.msra.gmra.mrb[60].mxu0 %vm9349_vm9, %v7035_v9  ;;  %vm9351_vm9 = vmmov %vm9347_vm2 }
 0xa10   : > { %6625 = vmatpush3.bf16.msra.mxu0 %v3377_v10  ;;  %6626 = vmatprep.mubr.msk.bf16.mxu0 %vm7520_vm4, %v7519_v44 }
 0xa11   : > { %6636 = vmatprep.subr.bf16.mxu0 %v7519_v44 }
 0xa13   : > { %6609 = vmatmul.mubr.msk.bf16.vlgmr.msra.gmra.mrb[68].mxu1 %vm9350_vm12, %v7036_v11  ;;  %vm9352_vm12 = vmmov %vm9347_vm2 }
 0xa14   : > { %6619 = vmatpush3.bf16.msra.mxu1 %v3320_v13  ;;  %6620 = vmatprep.mubr.msk.bf16.mxu1 %vm7520_vm4, %v7519_v44 }
 0xa15   : > { %6630 = vmatprep.subr.bf16.mxu1 %v7519_v44 }
 0xa17   : > { %6627 = vmatmul.mubr.msk.bf16.vlgmr.msra.gmra.mrb[64].mxu0 %vm9347_vm2, %v7038_v15  ;;  %vm3501_vm2 = vcmask 523264  }
 0xa18   : > { %6644 = vmatprep.mubr.msk.bf16.mxu0 %vm7520_vm4, %v7519_v44 }
 0xa1b   : > { %6621 = vmatmul.mubr.msk.bf16.vlgmr.msra.gmra.mrb[72].mxu1 %vm9351_vm9, %v7037_v16 }
 0xa1c   : > { %6631 = vmatpush3.bf16.msra.mxu1 %v3436_v19  ;;  %6632 = vmatprep.mubr.msk.bf16.mxu1 %vm7520_vm4, %v7519_v44 }
 0xa23   : > { %6633 = vmatmul.mubr.msk.bf16.vlgmr.msra.gmra.mrb[76].mxu1 %vm9352_vm12, %v7039_v20 }
 0xa64   : > { %v3068_v22 = vpop.f32.mrb[52].mxu0 }
 0xa65   : > { %v6592_v23 = vpop.f32.mrb[53].mxu0 }
 0xa66   : > { %v3071_v63 = vpop.f32.mrb[54].mxu0 }
 0xa67   : > { %v6593_v3 = vpop.f32.mrb[55].mxu0 }
 0xad6   : > { %v3019_v24 = vpop.f32.mrb[60].mxu1 }
 0xad7   : > { %v3069_v26 = vadd.f32 %v3068_v22, %v3019_v24  ;;  %v6586_v30 = vpop.f32.mrb[61].mxu1 }
 0xad8   : > { %v3022_v33 = vpop.f32.mrb[62].mxu1 }
 0xad9   : > { %v3072_v12 = vadd.f32 %v3071_v63, %v3022_v33  ;;  %v6587_v14 = vpop.f32.mrb[63].mxu1 }
 0xada   : > { %v3184_v25 = vpop.f32.mrb[56].mxu0 }
 0xadb   : > { %v6604_v28 = vpop.f32.mrb[57].mxu0 }
 0xadc   : > { %v3187_v34 = vpop.f32.mrb[58].mxu0 }
 0xadd   : > { %v6605_v38 = vpop.f32.mrb[59].mxu0 }
 0xade   : > { %v3125_v39 = vpop.f32.mrb[64].mxu1 }
 0xadf   : > { %v3132_v41 = vadd.f32 %v3125_v39, %v3069_v26  ;;  %v6598_v47 = vpop.f32.mrb[65].mxu1  ;;  %v7040_v39 = vld [vmem:[#allocation2] sm:$0xff]  }
 0xae0   : > { %v3128_v50 = vpop.f32.mrb[66].mxu1  ;;  %6637 = vmatpush3.bf16.msra.mxu0 %v7040_v39 }
 0xae1   : > { %v3133_v53 = vadd.f32 %v3128_v50, %v3072_v12  ;;  %v3191_v57 = vadd.f32 %v3184_v25, %v3132_v41  ;;  %v6599_v59 = vpop.f32.mrb[67].mxu1  ;;  %v3489_v41 = vpop.permute.xlu0 %3488  ;;  %6638 = vmatprep.subr.bf16.mxu0 %v7519_v44 }
 0xae2   : > { %v3300_v62 = vpop.f32.mrb[60].mxu0  ;;  %v7041_v59 = vld [vmem:[#allocation2 + $0x8] sm:$0xff]  }
 0xae3   : > { %v3192_v0 = vadd.f32 %v3187_v34, %v3133_v53  ;;  %v6616_v4 = vpop.f32.mrb[61].mxu0 }
 0xae4   : > { %v3303_v5 = vpop.f32.mrb[62].mxu0  ;;  %6639 = vmatpush3.bf16.msra.mxu0 %v7041_v59 }
 0xae5   : > { %v6617_v6 = vpop.f32.mrb[63].mxu0  ;;  %6640 = vmatprep.subr.bf16.mxu0 %v7519_v44 }
 0xae6   : > { %v3241_v8 = vpop.f32.mrb[68].mxu1  ;;  %v7042_v6 = vld [vmem:[#allocation2 + $0x10] sm:$0xff]  }
 0xae7   : > { %v3248_v9 = vadd.f32 %v3241_v8, %v3191_v57  ;;  %v6610_v10 = vpop.f32.mrb[69].mxu1 }
 0xae8   : > { %v3244_v11 = vpop.f32.mrb[70].mxu1  ;;  %6641 = vmatpush3.bf16.msra.mxu0 %v7042_v6  ;;  %v7043_v10 = vld [vmem:[#allocation2 + $0x18] sm:$0xff]  }
 0xae9   : > { %v3249_v13 = vadd.f32 %v3244_v11, %v3192_v0  ;;  %v3307_v15 = vadd.f32 %v3300_v62, %v3248_v9  ;;  %v6611_v16 = vpop.f32.mrb[71].mxu1  ;;  %v3494_v62 = vpop.permute.xlu1 %3493  ;;  %6642 = vmatprep.subr.bf16.mxu0 %v7519_v44 }
 0xaea   : > { %v3416_v19 = vpop.f32.mrb[64].mxu0 }
 0xaeb   : > { %v3308_v20 = vadd.f32 %v3303_v5, %v3249_v13  ;;  %v6628_v22 = vpop.f32.mrb[65].mxu0 }
 0xaec   : > { %v3419_v23 = vpop.f32.mrb[66].mxu0  ;;  %6643 = vmatpush3.bf16.msra.mxu0 %v7043_v10  ;;  %v4327_v10 = vld [vmem:[#allocation16 + $0x8] sm:$0xff] }
 0xaed   : > { %v6629_v63 = vpop.f32.mrb[67].mxu0 }
 0xaee   : > { %v3359_v3 = vpop.f32.mrb[72].mxu1 }
 0xaef   : > { %v3366_v24 = vadd.f32 %v3359_v3, %v3307_v15  ;;  %v6622_v26 = vpop.f32.mrb[73].mxu1 }
 0xaf0   : > { %v3362_v30 = vpop.f32.mrb[74].mxu1 }
 0xaf1   : > { %v3367_v33 = vadd.f32 %v3362_v30, %v3308_v20  ;;  %v3423_v12 = vadd.f32 %v3416_v19, %v3366_v24  ;;  %v6623_v14 = vpop.f32.mrb[75].mxu1  ;;  %v861_v19 = vand.u32 3, %v7993_v2 }
 0xaf3   : > { %v3424_v25 = vadd.f32 %v3419_v23, %v3367_v33  ;;  %vm863_vm9 = vcmp.ne.s32.totalorder %v861_v19, 3  ;;  %vm862_vm10 = vcmp.ne.s32.totalorder %v861_v19, 0 }
 0xaf4   : > { %vm3756_vm12 = vmpackc.low %vm863_vm9, %vm863_vm9  ;;  %vm3595_vm9 = vcmask 39936  }
 0xaf5   : > { %v3757_v20 = vsel %vm3756_vm12, 65537, %v7501_v1  ;;  %vm3603_vm11 = vmpackc.low %vm862_vm10, %vm862_vm10  ;;  %vm9354_vm10 = vcmask 130048   ;;  %vm3598_vm12 = vcmask 171008  }
 0xaf6   : > { %v3475_v28 = vpop.f32.mrb[76].mxu1  ;;  %v3761_v22 = vrot.slane %v3757_v20, %v8003_v7  ;;  %v3604_v24 = vsel %vm3603_vm11, 65537, %v7501_v1 }
 0xaf7   : > { %v3482_v34 = vadd.f32 %v3475_v28, %v3423_v12  ;;  %v6634_v38 = vpop.f32.mrb[77].mxu1  ;;  %v3608_v2 = vrot.slane %v3604_v24, %v8003_v7 }
 0xaf8   : > { %v3478_v47 = vpop.f32.mrb[78].mxu1 }
 0xaf9   : > { %v3496_v50 = vadd.f32 %v3489_v41, %v3482_v34  ;;  %v3483_v53 = vadd.f32 %v3478_v47, %v3424_v25  ;;  %v6635_v57 = vpop.f32.mrb[79].mxu1  ;;  %v4326_v47 = vld [vmem:[#allocation16] sm:$0xff] }
 0xafb   : > { %v3497_v0 = vadd.f32 %v3494_v62, %v3483_v53  ;;  %v3498_v4 = vmax.f32 %v3496_v50, 0.0  ;;  %v4328_v50 = vld [vmem:[#allocation16 + $0x10] sm:$0xff] }
 0xafd   : > { %v3499_v5 = vmax.f32 %v3497_v0, 0.0 }
 0xaff   : > { %v8586_v8 = vpack.c.bf16 %v3499_v5, %v3498_v4 }
 0xb01   : > { %v3503_v9 = vsel %vm3501_vm2, %v8586_v8, 0 }
 0xb02   : > { %3506 = vrot.lane.b32.xlu0 %v3503_v9, %s7509_s27 }
 0xb74   : > { %v3507_v11 = vpop.permute.xlu0 %3506 }
 0xb75   : > { %v3509_v13 = vmax.bf16 %v3507_v11, %v3503_v9 }
 0xb77   : > { %3511 = vrot.lane.b32.xlu1 %v3509_v13, %s7521_s13 }
 0xb7b   : > { %3762 = vrot.lane.b32.xlu1 %v3761_v22, %s7503_s5  ;;  %s9353_s5 = sld [smem:[#allocation37_spill]] }
 0xb81   : > { %v7044_v33 = vld [vmem:[%s9353_s5 + $0x10] sm:$0xff]   ;;  %v7045_v59 = vld [vmem:[%s9353_s5 + $0x18] sm:$0xff]   ;;  %v7046_v62 = vld [vmem:[%s9353_s5] sm:$0xff]  }
 0xb82   : > { %6650 = vmatprep.mubr.msk.bf16.mxu1 %vm9354_vm10, %v7044_v33  ;;  %v7047_v11 = vld [vmem:[%s9353_s5 + $0x8] sm:$0xff]   ;;  %v7050_v20 = vld [vmem:[%s9353_s5 + $0x30] sm:$0xff]  }
 0xb83   : > { %v7049_v19 = vld [vmem:[%s9353_s5 + $0x28] sm:$0xff]  }
 0xb84   : > { %v7053_v24 = vld [vmem:[%s9353_s5 + $0x48] sm:$0xff]  }
 0xbe9   : > { %v3512_v15 = vpop.permute.xlu1 %3511 }
 0xbea   : > { %v3514_v16 = vmax.bf16 %v3512_v15, %v3509_v13  ;;  %v7048_v13 = vld [vmem:[%s9353_s5 + $0x20] sm:$0xff]  }
 0xbeb   : > { %v4329_v15 = vld [vmem:[#allocation16 + $0x18] sm:$0xff] }
 0xbec   : > { %6645 = vmatmul.mubr.msk.bf16.vlgmr.msra.gmra.mrb[68].mxu0 %vm3501_vm2, %v3514_v16 }
 0xbed   : > { %v3763_v12 = vpop.permute.xlu1 %3762 }
 0xbee   : > { %vm3764_vm11 = vcmp.ne.s16.totalorder %v3763_v12, 0  ;;  %v7057_v12 = vld [vmem:[%s9353_s5 + $0x68] sm:$0xff]  }
 0xcbf   : > { %v3584_v23 = vpop.f32.mrb[68].mxu0 }
 0xcc0   : > { %v6646_v63 = vpop.f32.mrb[69].mxu0 }
 0xcc1   : > { %v3587_v3 = vpop.f32.mrb[70].mxu0  ;;  %v7052_v63 = vld [vmem:[%s9353_s5 + $0x40] sm:$0xff]  }
 0xcc2   : > { %v3591_v26 = vpack.c.bf16 %v3587_v3, %v3584_v23  ;;  %v6647_v30 = vpop.f32.mrb[71].mxu0  ;;  %v7051_v23 = vld [vmem:[%s9353_s5 + $0x38] sm:$0xff]  }
 0xcc3   : > { %v7055_v30 = vld [vmem:[%s9353_s5 + $0x58] sm:$0xff]  }
 0xcc4   : > { %3593 = vrot.lane.b32.xlu0 %v3591_v26, %s7524_s0  ;;  %s7527_s0 = smov 124   ;;  %v7054_v26 = vld [vmem:[%s9353_s5 + $0x50] sm:$0xff]  }
 0xcc8   : > { %3844 = vrot.lane.b32.xlu0 %v3608_v2, %s7525_s21  ;;  %s7528_s21 = smov 122  }
 0xccc   : > { %4003 = vrot.lane.b32.xlu0 %v3761_v22, %s7526_s23  ;;  %s7529_s23 = smov 123  }
 0xd36   : > { %v3594_v14 = vpop.permute.xlu0 %3593 }
 0xd37   : > { %v3597_v25 = vsel %vm3595_vm9, 0, %v3594_v14 }
 0xd38   : > { %v3599_v28 = vsel %vm3598_vm12, %v3597_v25, 0  ;;  %vm9355_vm12 = vcmask 130048   ;;  %v7058_v25 = vld [vmem:[%s9353_s5 + $0x70] sm:$0xff]  }
 0xd39   : > { %v3765_v34 = vsel %vm3764_vm11, %v3599_v28, 0  ;;  %3631 = vrot.lane.b32.xlu1 %v3599_v28, %s7509_s27  ;;  %vm9356_vm11 = vmmov %vm9355_vm12 }
 0xd3a   : > { %v3845_v7 = vpop.permute.xlu0 %3844  ;;  %3782 = vrot.lane.b32.xlu0 %v3765_v34, %s9283_s4  ;;  %v7059_v34 = vld [vmem:[%s9353_s5 + $0x78] sm:$0xff]  }
 0xd3b   : > { %vm3846_vm1 = vcmp.ne.s16.totalorder %v3845_v7, 0  ;;  %v7060_v7 = vld [vmem:[%s9353_s5 + $0x80] sm:$0xff]  }
 0xd3c   : > { %v3847_v39 = vsel %vm3846_vm1, %v3599_v28, 0  ;;  %vm3609_vm1 = vcmp.ne.s16.totalorder %v3608_v2, 0 }
 0xd3d   : > { %4085 = vrot.lane.b32.xlu1 %v3608_v2, %s7518_s30  ;;  %v3610_v5 = vsel %vm3609_vm1, %v3599_v28, 0  ;;  %v7056_v2 = vld [vmem:[%s9353_s5 + $0x60] sm:$0xff]   ;;  %s9468_s30 = sld [smem:[#allocation39_spill]] }
 0xd3e   : > { %v4004_v38 = vpop.permute.xlu0 %4003  ;;  %4244 = vrot.lane.b32.xlu0 %v3761_v22, %s7516_s29  ;;  %s6398_s29 = sshll.u32 %s9473_s25, 2 }
 0xd3f   : > { %vm4005_vm10 = vcmp.ne.s16.totalorder %v4004_v38, 0  ;;  %v7061_v38 = vld [vmem:[%s9353_s5 + $0x88] sm:$0xff]  }
 0xd40   : > { %v4006_v41 = vsel %vm4005_vm10, %v3599_v28, 0 }
 0xd41   : > { %3864 = vrot.lane.b32.xlu1 %v3847_v39, %s7527_s0  ;;  %v7062_v39 = vld [vmem:[%s9370_s20] sm:$0xff]   ;;  %s9396_s0 = smov 95   ;;  %s9416_s20 = sld [smem:[#allocation40_spill]] }
 0xd42   : > { %4023 = vrot.lane.b32.xlu0 %v4006_v41, %s7528_s21  ;;  %6702 = vmatprep.subr.bf16.mxu0 %v7062_v39  ;;  %s9374_s21 = sld [smem:[#allocation38_spill]] }
 0xd43   : > { %6703 = vmatpush3.bf16.msra.mxu0 %v7062_v39 }
 0xd44   : > { %6708 = vmatprep.subr.bf16.mxu0 %v7519_v44 }
 0xd45   : > { %3941 = vrot.lane.b32.xlu1 %v3599_v28, %s7529_s23  ;;  %s9375_s23 = sld [smem:[#allocation34_spill]] }
 0xd46   : > { %4182 = vrot.lane.b32.xlu0 %v3599_v28, %s7522_s7 }
 0xd4a   : > { %4332 = vperm.xlu0 %7003, %v4326_v47  }
 0xd4e   : > { %4342 = vperm.xlu0 %7003, %v4328_v50  }
 0xdab   : > { %v3632_v53 = vpop.permute.xlu1 %3631 }
 0xdac   : > { %v3783_v57 = vpop.permute.xlu0 %3782  ;;  %6648 = vmatprep.subr.bf16.mxu1 %v3632_v53 }
 0xdad   : > { %6649 = vmatpush3.bf16.msra.mxu1 %v3632_v53 }
 0xdae   : > { %6830 = vmatprep.subr.msk.bf16.mxu1 %vm3609_vm1, %v3599_v28  ;;  %vm9357_vm1 = vmmov %vm9356_vm11 }
 0xdaf   : > { %v4086_v0 = vpop.permute.xlu1 %4085 }
 0xdb0   : > { %vm4087_vm9 = vcmp.ne.s16.totalorder %v4086_v0, 0  ;;  %v4245_v4 = vpop.permute.xlu0 %4244  ;;  %6651 = vmatmul.mubr.msk.bf16.vlgmr.msra.gmra.mrb[80].mxu1 %vm9355_vm12, %v7045_v59  ;;  %vm9359_vm12 = vmmov %vm9357_vm1 }
 0xdb1   : > { %v4088_v6 = vsel %vm4087_vm9, %v3599_v28, 0  ;;  %6655 = vmatpush3.bf16.msra.mxu1 %v3610_v5  ;;  %6656 = vmatprep.mubr.msk.bf16.mxu1 %vm9356_vm11, %v7046_v62  ;;  %vm4246_vm10 = vcmp.ne.s16.totalorder %v4245_v4, 0  ;;  %vm9358_vm9 = vmmov %vm9357_vm1 }
 0xdb2   : > { %6660 = vmatprep.subr.bf16.mxu1 %v3783_v57  ;;  %4105 = vrot.lane.b32.xlu1 %v4088_v6, %s7521_s13  ;;  %v4247_v9 = vsel %vm4246_vm10, %v3599_v28, 0  ;;  %vm9360_vm11 = vmmov %vm9357_vm1 }
 0xdb3   : > { %v3865_v16 = vpop.permute.xlu1 %3864  ;;  %vm9361_vm10 = vmmov %vm9357_vm1 }
 0xdb4   : > { %v4024_v3 = vpop.permute.xlu0 %4023 }
 0xdb6   : > { %4264 = vrot.lane.b32.xlu1 %v4247_v9, %s7523_s3 }
 0xdb7   : > { %v3942_v22 = vpop.permute.xlu1 %3941 }
 0xdb8   : > { %v4183_v14 = vpop.permute.xlu0 %4182 }
 0xdba   : > { %4337 = vperm.xlu1 %7004, %v4327_v10  }
 0xdbc   : > { %6657 = vmatmul.mubr.msk.bf16.vlgmr.msra.gmra.mrb[80].mxu1 %vm9357_vm1, %v7047_v11 }
 0xdbd   : > { %6661 = vmatpush3.bf16.msra.mxu1 %v3783_v57  ;;  %6662 = vmatprep.mubr.msk.bf16.mxu1 %vm9358_vm9, %v7048_v13  ;;  %vm9362_vm9 = vmmov %vm9357_vm1 }
 0xdbe   : > { %6666 = vmatprep.subr.bf16.mxu1 %v3865_v16  ;;  %4347 = vperm.xlu1 %7004, %v4329_v15  }
 0xdc8   : > { %6663 = vmatmul.mubr.msk.bf16.vlgmr.msra.gmra.mrb[80].mxu1 %vm9359_vm12, %v7049_v19  ;;  %vm9363_vm12 = vmmov %vm9357_vm1 }
 0xdc9   : > { %6667 = vmatpush3.bf16.msra.mxu1 %v3865_v16  ;;  %6668 = vmatprep.mubr.msk.bf16.mxu1 %vm9360_vm11, %v7050_v20  ;;  %vm9364_vm11 = vmmov %vm9357_vm1  ;;  %v4333_v41 = vpop.permute.xlu0 %4332 }
 0xdca   : > { %6672 = vmatprep.subr.bf16.mxu1 %v3942_v22 }
 0xdcd   : > { %v4343_v50 = vpop.permute.xlu0 %4342 }
 0xdd4   : > { %6669 = vmatmul.mubr.msk.bf16.vlgmr.msra.gmra.mrb[80].mxu1 %vm9361_vm10, %v7051_v23  ;;  %vm9365_vm10 = vmmov %vm9357_vm1 }
 0xdd5   : > { %6673 = vmatpush3.bf16.msra.mxu1 %v3942_v22  ;;  %6674 = vmatprep.mubr.msk.bf16.mxu1 %vm9357_vm1, %v7052_v63 }
 0xdd6   : > { %6678 = vmatprep.subr.bf16.mxu1 %v4024_v3 }
 0xde0   : > { %6675 = vmatmul.mubr.msk.bf16.vlgmr.msra.gmra.mrb[80].mxu1 %vm9362_vm9, %v7053_v24  ;;  %vm9366_vm9 = vmmov %vm9357_vm1 }
 0xde1   : > { %6679 = vmatpush3.bf16.msra.mxu1 %v4024_v3  ;;  %6680 = vmatprep.mubr.msk.bf16.mxu1 %vm9363_vm12, %v7054_v26  ;;  %vm9367_vm12 = vmmov %vm9357_vm1 }
 0xdec   : > { %6681 = vmatmul.mubr.msk.bf16.vlgmr.msra.gmra.mrb[80].mxu1 %vm9364_vm11, %v7055_v30  ;;  %vm9368_vm11 = vmmov %vm9357_vm1 }
 0xded   : > { %6686 = vmatprep.mubr.msk.bf16.mxu1 %vm9365_vm10, %v7056_v2  ;;  %vm9369_vm10 = vmmov %vm9357_vm1 }
 0xe24   : > { %v4106_v33 = vpop.permute.xlu1 %4105 }
 0xe25   : > { %6684 = vmatprep.subr.bf16.mxu1 %v4106_v33 }
 0xe26   : > { %6685 = vmatpush3.bf16.msra.mxu1 %v4106_v33 }
 0xe27   : > { %6690 = vmatprep.subr.bf16.mxu1 %v4183_v14 }
 0xe28   : > { %v4265_v28 = vpop.permute.xlu1 %4264 }
 0xe29   : > { %6687 = vmatmul.mubr.msk.bf16.vlgmr.msra.gmra.mrb[80].mxu1 %vm9357_vm1, %v7057_v12 }
 0xe2a   : > { %6691 = vmatpush3.bf16.msra.mxu1 %v4183_v14  ;;  %6692 = vmatprep.mubr.msk.bf16.mxu1 %vm9366_vm9, %v7058_v25  ;;  %vm9371_vm9 = vmmov %vm9357_vm1 }
 0xe2b   : > { %6696 = vmatprep.subr.bf16.mxu1 %v4265_v28 }
 0xe35   : > { %6693 = vmatmul.mubr.msk.bf16.vlgmr.msra.gmra.mrb[80].mxu1 %vm9367_vm12, %v7059_v34  ;;  %vm9388_vm12 = vcmp.ne.s16.totalorder %v8127_v46, 0 }
 0xe36   : > { %6697 = vmatpush3.bf16.msra.mxu1 %v4265_v28  ;;  %6698 = vmatprep.mubr.msk.bf16.mxu1 %vm9368_vm11, %v7060_v7  ;;  %vm9389_vm11 = vcmp.ne.s16.totalorder %v8084_v36, 0 }
 0xe37   : > { %6758 = vmatprep.subr.bf16.mxu1 %v7519_v44 }
 0xe39   : > { %v4338_v47 = vpop.permute.xlu1 %4337 }
 0xe3d   : > { %v4348_v62 = vpop.permute.xlu1 %4347 }
 0xe41   : > { %6699 = vmatmul.mubr.msk.bf16.vlgmr.msra.gmra.mrb[80].mxu1 %vm9369_vm10, %v7061_v38  ;;  %vm9390_vm10 = vcmp.ne.s16.totalorder %v8113_v43, 0 }
 0xe42   : > { %6764 = vmatprep.mubr.msk.bf16.mxu1 %vm7520_vm4, %v7519_v44 }
 0xf14   : > { %v6700_v53 = vpop.f32.mrb[80].mxu1 }
 0xf15   : > { %v4352_v57 = vadd.f32 %v6700_v53, %v4343_v50  ;;  %v4307_v59 = vpop.f32.mrb[81].mxu1 }
 0xf16   : > { %v4350_v0 = vadd.f32 %v4333_v41, %v4307_v59  ;;  %v6701_v4 = vpop.f32.mrb[82].mxu1 }
 0xf17   : > { %v4353_v5 = vadd.f32 %v6701_v4, %v4348_v62  ;;  %v4310_v6 = vpop.f32.mrb[83].mxu1  ;;  %v4356_v10 = vmax.f32 %v4352_v57, 0.0  ;;  %v5036_v4 = vld [vmem:[#allocation18] sm:$0xff] }
 0xf18   : > { %v4351_v9 = vadd.f32 %v4338_v47, %v4310_v6  ;;  %v4354_v13 = vmax.f32 %v4350_v0, 0.0  ;;  %v5037_v0 = vld [vmem:[#allocation18 + $0x8] sm:$0xff] }
 0xf19   : > { %v4357_v11 = vmax.f32 %v4353_v5, 0.0 }
 0xf1a   : > { %v4355_v15 = vmax.f32 %v4351_v9, 0.0 }
 0xf1b   : > { %v4359_v16 = vpack.c.bf16 %v4357_v11, %v4356_v10  ;;  %v7063_v10 = vld [vmem:[%s9374_s21 + $0x8] sm:$0xff]  }
 0xf1c   : > { %v4358_v19 = vpack.c.bf16 %v4355_v15, %v4354_v13 }
 0xf1e   : > { %6704 = vmatprep.mubr.msk.bf16.mxu0 %vm9357_vm1, %v4358_v19  ;;  %vm9391_vm1 = vcmp.ne.s16.totalorder %v8012_v17, 0 }
 0xf1f   : > { %6705 = vmatmul.mubr.msk.bf16.vlgmr.msra.gmra.mrb[72].mxu0 %vm9371_vm9, %v4359_v16  ;;  %vm9392_vm9 = vcmp.ne.s16.totalorder %v8015_v18, 0 }
 0xf20   : > { %6714 = vmatprep.mubr.msk.bf16.mxu0 %vm7520_vm4, %v7519_v44 }
 0xff2   : > { %v6706_v20 = vpop.f32.mrb[72].mxu0 }
 0xff3   : > { %v4408_v22 = vpop.f32.mrb[73].mxu0 }
 0xff4   : > { %v6707_v23 = vpop.f32.mrb[74].mxu0 }
 0xff5   : > { %v4424_v63 = vpack.c.bf16 %v6707_v23, %v6706_v20  ;;  %v4411_v3 = vpop.f32.mrb[75].mxu0  ;;  %v7064_v20 = vld [vmem:[%s9374_s21] sm:$0xff]  }
 0xff6   : > { %v4423_v24 = vpack.c.bf16 %v4411_v3, %v4408_v22 }
 0xff7   : > { %4430 = vrot.lane.b32.xlu1 %v4424_v63, %s7517_s1 }
 0xff8   : > { %4428 = vrot.lane.b32.xlu0 %v4423_v24, %s7517_s1  ;;  %v7065_v24 = vld [vmem:[%s9374_s21 + $0x10] sm:$0xff]  }
 0xffc   : > { %4432 = vrot.lane.b32.xlu0 %v8586_v8, %s7517_s1  ;;  %s9372_s1 = smov 111  }
0x1069   : > { %v4431_v26 = vpop.permute.xlu1 %4430 }
0x106a   : > { %v4437_v30 = vsel %vm2368_vm7, 0, %v4431_v26  ;;  %v4429_v2 = vpop.permute.xlu0 %4428  ;;  %v7066_v26 = vld [vmem:[%s9374_s21 + $0x28] sm:$0xff]  }
0x106b   : > { %v8696_v33 = vsel %vm2371_vm5, %v4437_v30, 0  ;;  %v4435_v12 = vsel %vm2368_vm7, 0, %v4429_v2 }
0x106c   : > { %v8700_v14 = vsel %vm2371_vm5, %v4435_v12, 0  ;;  %4464 = vrot.lane.b32.xlu0 %v8696_v33, %s7509_s27  ;;  %v4566_v38 = vsel %vm2500_vm15, %v8696_v33, 0  ;;  %v4635_v39 = vsel %vm2569_vm0, %v8696_v33, 0  ;;  %v4836_v58 = vsel %vm2756_vm3, %v8696_v33, 0 }
0x106d   : > { %4462 = vrot.lane.b32.xlu1 %v8700_v14, %s7509_s27  ;;  %v4565_v28 = vsel %vm2500_vm15, %v8700_v14, 0  ;;  %v4634_v41 = vsel %vm2569_vm0, %v8700_v14, 0  ;;  %v4835_v47 = vsel %vm2756_vm3, %v8700_v14, 0  ;;  %v4766_v50 = vsel %vm2692_vm13, %v8700_v14, 0 }
0x106e   : > { %v4433_v25 = vpop.permute.xlu0 %4432  ;;  %v4767_v53 = vsel %vm2692_vm13, %v8696_v33, 0  ;;  %v4967_v62 = vsel %vm2879_vm14, %v8700_v14, 0  ;;  %v4968_v60 = vsel %vm2879_vm14, %v8696_v33, 0  ;;  %v4447_v13 = vsel %vm2965_vm8, %v8696_v33, 0 }
0x106f   : > { %v4439_v8 = vsel %vm2368_vm7, 0, %v4433_v25  ;;  %v7067_v25 = vld [vmem:[%s9374_s21 + $0x18] sm:$0xff]   ;;  %vm9382_vm7 = vcmp.ne.s16.totalorder %v8052_v27, 0 }
0x1070   : > { %v8711_v34 = vsel %vm2371_vm5, %v4439_v8, 0  ;;  %4579 = vrot.lane.b32.xlu0 %v4565_v28, %s9283_s4  ;;  %v7070_v8 = vld [vmem:[%s9374_s21 + $0x38] sm:$0xff]   ;;  %vm9383_vm5 = vcmp.ne.s16.totalorder %v8101_v40, 0 }
0x1071   : > { %4466 = vrot.lane.b32.xlu1 %v8711_v34, %s7509_s27  ;;  %v4567_v7 = vsel %vm2500_vm15, %v8711_v34, 0  ;;  %v4636_v45 = vsel %vm2569_vm0, %v8711_v34, 0  ;;  %v4837_v57 = vsel %vm2756_vm3, %v8711_v34, 0  ;;  %v4768_v59 = vsel %vm2692_vm13, %v8711_v34, 0 }
0x1072   : > { %v4969_v55 = vsel %vm2879_vm14, %v8711_v34, 0  ;;  %vm4471_vm14 = vcmask 392192   ;;  %v4448_v19 = vsel %vm2965_vm8, %v8711_v34, 0  ;;  %vm9376_vm3 = vcmp.ne.s16.totalorder %v8082_v35, 0 }
0x1073   : > { %vm9378_vm13 = vcmp.ne.s16.totalorder %v8056_v29, 0  ;;  %vm9380_vm0 = vcmp.ne.s16.totalorder %v8033_v21, 0  ;;  %vm9384_vm15 = vcmp.ne.s16.totalorder %v8067_v32, 0 }
0x1074   : > { %4583 = vrot.lane.b32.xlu0 %v4567_v7, %s9283_s4  ;;  %v7068_v7 = vld [vmem:[%s9374_s21 + $0x20] sm:$0xff]  }
0x1075   : > { %4581 = vrot.lane.b32.xlu1 %v4566_v38, %s9283_s4  ;;  %s9377_s4 = smov 126  }
0x1078   : > { %4650 = vrot.lane.b32.xlu0 %v4635_v39, %s7521_s13 }
0x1079   : > { %4648 = vrot.lane.b32.xlu1 %v4634_v41, %s7521_s13  ;;  %v7069_v41 = vld [vmem:[%s9374_s21 + $0x30] sm:$0xff]  }
0x107c   : > { %4711 = vrot.lane.b32.xlu0 %v8700_v14, %s7522_s7 }
0x107d   : > { %4652 = vrot.lane.b32.xlu1 %v4636_v45, %s7521_s13  ;;  %s9373_s13 = smov 17  }
0x1080   : > { %4715 = vrot.lane.b32.xlu0 %v8711_v34, %s7522_s7 }
0x1081   : > { %4713 = vrot.lane.b32.xlu1 %v8696_v33, %s7522_s7 }
0x1084   : > { %4849 = vrot.lane.b32.xlu0 %v4835_v47, %s9281_s2 }
0x1085   : > { %4780 = vrot.lane.b32.xlu1 %v4766_v50, %s7523_s3  ;;  %v7071_v50 = vld [vmem:[%s9374_s21 + $0x40] sm:$0xff]  }
0x1088   : > { %4851 = vrot.lane.b32.xlu0 %v4836_v58, %s9281_s2  ;;  %v7072_v58 = vld [vmem:[%s9375_s23] ss:$8 sps:$4 sm:$0xff]  }
0x1089   : > { %4782 = vrot.lane.b32.xlu1 %v4767_v53, %s7523_s3  ;;  %v7074_v53 = vld [vmem:[%s9375_s23 + $0x4] ss:$8 sps:$4 sm:$0xff]  }
0x108c   : > { %4853 = vrot.lane.b32.xlu0 %v4837_v57, %s9281_s2  ;;  %v7075_v57 = vld [vmem:[%s9375_s23 + $0x10] ss:$8 sps:$4 sm:$0xff]   ;;  %s9379_s2 = smov 112  }
0x108d   : > { %4784 = vrot.lane.b32.xlu1 %v4768_v59, %s7523_s3  ;;  %v7080_v59 = vld [vmem:[%s9375_s23 + $0x24] ss:$8 sps:$4 sm:$0xff]  }
0x1090   : > { %4981 = vrot.lane.b32.xlu0 %v4967_v62, %s9346_s26  ;;  %v7078_v62 = vld [vmem:[%s9375_s23 + $0x20] ss:$8 sps:$4 sm:$0xff]  }
0x1091   : > { %4912 = vrot.lane.b32.xlu1 %v8700_v14, %s9372_s1 }
0x1094   : > { %4983 = vrot.lane.b32.xlu0 %v4968_v60, %s9346_s26  ;;  %v7083_v60 = vld [vmem:[%s9375_s23 + $0x34] ss:$8 sps:$4 sm:$0xff]  }
0x1095   : > { %4914 = vrot.lane.b32.xlu1 %v8696_v33, %s9372_s1 }
0x1098   : > { %4985 = vrot.lane.b32.xlu0 %v4969_v55, %s9346_s26  ;;  %v7081_v55 = vld [vmem:[%s9375_s23 + $0x30] ss:$8 sps:$4 sm:$0xff]  }
0x1099   : > { %4916 = vrot.lane.b32.xlu1 %v8711_v34, %s9372_s1 }
0x109c   : > { %5045 = vperm.xlu0 %7003, %v5037_v0  }
0x109d   : > { %5040 = vperm.xlu1 %7004, %v5036_v4  }
0x10a0   : > { %5157 = vrot.lane.b32.xlu0 %v8355_v48, %s9373_s13 }
0x10a1   : > { %5155 = vrot.lane.b32.xlu1 %v8365_v56, %s9373_s13  ;;  %v4446_v56 = vsel %vm2965_vm8, %v8700_v14, 0  ;;  %vm9385_vm8 = vcmp.ne.s16.totalorder %v8086_v37, 0 }
0x10de   : > { %v4465_v61 = vpop.permute.xlu0 %4464 }
0x10df   : > { %v4463_v5 = vpop.permute.xlu1 %4462 }
0x10e0   : > { %6709 = vmatpush3.bf16.msra.mxu0 %v4463_v5 }
0x10e1   : > { %6710 = vmatprep.subr.bf16.mxu0 %v7519_v44 }
0x10e2   : > { %v4580_v15 = vpop.permute.xlu0 %4579 }
0x10e3   : > { %v4467_v6 = vpop.permute.xlu1 %4466 }
0x10e4   : > { %6711 = vmatpush3.bf16.msra.mxu0 %v4465_v61 }
0x10e5   : > { %6712 = vmatprep.subr.bf16.mxu0 %v7519_v44 }
0x10e6   : > { %v4584_v23 = vpop.permute.xlu0 %4583 }
0x10e7   : > { %v4582_v9 = vpop.permute.xlu1 %4581 }
0x10e8   : > { %6713 = vmatpush3.bf16.msra.mxu0 %v4467_v6 }
0x10e9   : > { %6718 = vmatprep.subr.bf16.mxu0 %v7519_v44 }
0x10ea   : > { %v4651_v63 = vpop.permute.xlu0 %4650 }
0x10eb   : > { %v4649_v48 = vpop.permute.xlu1 %4648  ;;  %6715 = vmatmul.mubr.msk.bf16.vlgmr.msra.gmra.mrb[76].mxu0 %vm4471_vm14, %v7063_v10 }
0x10ec   : > { %6719 = vmatpush3.bf16.msra.mxu0 %v4446_v56  ;;  %6724 = vmatprep.mubr.msk.bf16.mxu0 %vm7520_vm4, %v7519_v44 }
0x10ed   : > { %6720 = vmatprep.subr.bf16.mxu0 %v7519_v44 }
0x10ee   : > { %v4712_v2 = vpop.permute.xlu0 %4711 }
0x10ef   : > { %v4653_v11 = vpop.permute.xlu1 %4652 }
0x10f0   : > { %6721 = vmatpush3.bf16.msra.mxu0 %v4447_v13 }
0x10f1   : > { %6722 = vmatprep.subr.bf16.mxu0 %v7519_v44 }
0x10f2   : > { %v4716_v12 = vpop.permute.xlu0 %4715 }
0x10f3   : > { %v4714_v16 = vpop.permute.xlu1 %4713 }
0x10f4   : > { %6723 = vmatpush3.bf16.msra.mxu0 %v4448_v19 }
0x10f5   : > { %6728 = vmatprep.subr.bf16.mxu0 %v7519_v44 }
0x10f6   : > { %v4850_v28 = vpop.permute.xlu0 %4849 }
0x10f7   : > { %v4781_v22 = vpop.permute.xlu1 %4780  ;;  %6725 = vmatmul.mubr.msk.bf16.vlgmr.msra.gmra.mrb[80].mxu0 %vm4471_vm14, %v7064_v20 }
0x10f8   : > { %6729 = vmatpush3.bf16.msra.mxu0 %v4580_v15  ;;  %6759 = vmatpush3.bf16.msra.mxu1 %v4781_v22 }
0x10f9   : > { %6760 = vmatprep.subr.bf16.mxu1 %v7519_v44  ;;  %6730 = vmatprep.subr.bf16.mxu0 %v7519_v44 }
0x10fa   : > { %6734 = vmatprep.mubr.msk.bf16.mxu0 %vm7520_vm4, %v7519_v44  ;;  %v4852_v34 = vpop.permute.xlu0 %4851 }
0x10fb   : > { %v4783_v42 = vpop.permute.xlu1 %4782 }
0x10fc   : > { %6731 = vmatpush3.bf16.msra.mxu0 %v4582_v9  ;;  %6761 = vmatpush3.bf16.msra.mxu1 %v4783_v42 }
0x10fd   : > { %6762 = vmatprep.subr.bf16.mxu1 %v7519_v44  ;;  %6732 = vmatprep.subr.bf16.mxu0 %v7519_v44 }
0x10fe   : > { %v4854_v38 = vpop.permute.xlu0 %4853 }
0x10ff   : > { %v4785_v3 = vpop.permute.xlu1 %4784 }
0x1100   : > { %6733 = vmatpush3.bf16.msra.mxu0 %v4584_v23  ;;  %6763 = vmatpush3.bf16.msra.mxu1 %v4785_v3 }
0x1101   : > { %6778 = vmatprep.subr.bf16.mxu1 %v7519_v44  ;;  %6738 = vmatprep.subr.bf16.mxu0 %v7519_v44 }
0x1102   : > { %v4982_v39 = vpop.permute.xlu0 %4981 }
0x1103   : > { %v4913_v30 = vpop.permute.xlu1 %4912  ;;  %6735 = vmatmul.mubr.msk.bf16.vlgmr.msra.gmra.mrb[84].mxu0 %vm4471_vm14, %v7065_v24  ;;  %6765 = vmatmul.mubr.msk.bf16.vlgmr.msra.gmra.mrb[84].mxu1 %vm4471_vm14, %v7066_v26 }
0x1104   : > { %6739 = vmatpush3.bf16.msra.mxu0 %v4649_v48  ;;  %6779 = vmatpush3.bf16.msra.mxu1 %v4913_v30 }
0x1105   : > { %6780 = vmatprep.subr.bf16.mxu1 %v7519_v44  ;;  %6740 = vmatprep.subr.bf16.mxu0 %v7519_v44 }
0x1106   : > { %6744 = vmatprep.mubr.msk.bf16.mxu0 %vm7520_vm4, %v7519_v44  ;;  %6784 = vmatprep.mubr.msk.bf16.mxu1 %vm7520_vm4, %v7519_v44  ;;  %v4984_v45 = vpop.permute.xlu0 %4983 }
0x1107   : > { %v4915_v33 = vpop.permute.xlu1 %4914 }
0x1108   : > { %6741 = vmatpush3.bf16.msra.mxu0 %v4651_v63  ;;  %6781 = vmatpush3.bf16.msra.mxu1 %v4915_v33 }
0x1109   : > { %6782 = vmatprep.subr.bf16.mxu1 %v7519_v44  ;;  %6742 = vmatprep.subr.bf16.mxu0 %v7519_v44 }
0x110a   : > { %v4986_v47 = vpop.permute.xlu0 %4985 }
0x110b   : > { %v4917_v14 = vpop.permute.xlu1 %4916 }
0x110c   : > { %6743 = vmatpush3.bf16.msra.mxu0 %v4653_v11  ;;  %6783 = vmatpush3.bf16.msra.mxu1 %v4917_v14 }
0x110d   : > { %6748 = vmatprep.subr.bf16.mxu0 %v7519_v44  ;;  %5104 = vmatprep.subr.bf16.mxu1 %v7074_v53 }
0x110f   : > { %6745 = vmatmul.mubr.msk.bf16.vlgmr.msra.gmra.mrb[88].mxu0 %vm4471_vm14, %v7067_v25  ;;  %6785 = vmatmul.mubr.msk.bf16.vlgmr.msra.gmra.mrb[88].mxu1 %vm4471_vm14, %v7070_v8 }
0x1110   : > { %6749 = vmatpush3.bf16.msra.mxu0 %v4712_v2  ;;  %6754 = vmatprep.mubr.msk.bf16.mxu0 %vm7520_vm4, %v7519_v44 }
0x1111   : > { %6750 = vmatprep.subr.bf16.mxu0 %v7519_v44  ;;  %5136 = vmatprep.mubr.bf16.mxu1 %v7501_v1 }
0x1112   : > { %5105 = vmatpush1.bf16.msra.mxu1 %v7072_v58 }
0x1114   : > { %6751 = vmatpush3.bf16.msra.mxu0 %v4714_v16 }
0x1115   : > { %6752 = vmatprep.subr.bf16.mxu0 %v7519_v44 }
0x1118   : > { %6753 = vmatpush3.bf16.msra.mxu0 %v4716_v12 }
0x1119   : > { %6768 = vmatprep.subr.bf16.mxu0 %v7519_v44 }
0x111b   : > { %6755 = vmatmul.mubr.msk.bf16.vlgmr.msra.gmra.mrb[92].mxu0 %vm4471_vm14, %v7068_v7 }
0x111c   : > { %6769 = vmatpush3.bf16.msra.mxu0 %v4850_v28  ;;  %6774 = vmatprep.mubr.msk.bf16.mxu0 %vm7520_vm4, %v7519_v44 }
0x111d   : > { %6770 = vmatprep.subr.bf16.mxu0 %v7519_v44 }
0x1120   : > { %6771 = vmatpush3.bf16.msra.mxu0 %v4852_v34 }
0x1121   : > { %6772 = vmatprep.subr.bf16.mxu0 %v7519_v44 }
0x1124   : > { %6773 = vmatpush3.bf16.msra.mxu0 %v4854_v38 }
0x1125   : > { %6788 = vmatprep.subr.bf16.mxu0 %v7519_v44 }
0x1127   : > { %6775 = vmatmul.mubr.msk.bf16.vlgmr.msra.gmra.mrb[96].mxu0 %vm4471_vm14, %v7069_v41 }
0x1128   : > { %6789 = vmatpush3.bf16.msra.mxu0 %v4982_v39  ;;  %6794 = vmatprep.mubr.msk.bf16.mxu0 %vm7520_vm4, %v7519_v44  ;;  %vm9381_vm4 = vcmp.ne.s16.totalorder %v8064_v31, 0 }
0x1129   : > { %6790 = vmatprep.subr.bf16.mxu0 %v7519_v44 }
0x112c   : > { %6791 = vmatpush3.bf16.msra.mxu0 %v4984_v45 }
0x112d   : > { %6792 = vmatprep.subr.bf16.mxu0 %v7519_v44  ;;  %v7077_v44 = vld [vmem:[%s9375_s23 + $0x14] ss:$8 sps:$4 sm:$0xff]  }
0x112e   : > { %5106 = vmatprep.subr.bf16.mxu1 %v7077_v44 }
0x112f   : > { %5107 = vmatpush1.bf16.msra.mxu1 %v7075_v57 }
0x1130   : > { %6793 = vmatpush3.bf16.msra.mxu0 %v4986_v47  ;;  %5108 = vmatprep.subr.bf16.mxu1 %v7080_v59 }
0x1133   : > { %6795 = vmatmul.mubr.msk.bf16.vlgmr.msra.gmra.mrb[100].mxu0 %vm4471_vm14, %v7071_v50  ;;  %5109 = vmatpush1.bf16.msra.mxu1 %v7078_v62  ;;  %vm9393_vm14 = vmmov %vm9392_vm9 }
0x1134   : > { %5246 = vmatprep.mubr.bf16.mxu0 %v7501_v1  ;;  %5110 = vmatprep.subr.bf16.mxu1 %v7083_v60 }
0x1137   : > { %5111 = vmatpush1.bf16.msra.mxu1 %v7081_v55 }
0x11be   : > { %v4509_v0 = vpop.f32.mrb[76].mxu0 }
0x11bf   : > { %v6716_v4 = vpop.f32.mrb[77].mxu0 }
0x11c0   : > { %v4512_v5 = vpop.f32.mrb[78].mxu0 }
0x11c1   : > { %v6717_v61 = vpop.f32.mrb[79].mxu0 }
0x11c2   : > { %v5041_v61 = vpop.permute.xlu1 %5040 }
0x11ca   : > { %v4558_v6 = vpop.f32.mrb[80].mxu0 }
0x11cb   : > { %v4559_v9 = vadd.f32 %v4558_v6, %v4509_v0  ;;  %v6726_v10 = vpop.f32.mrb[81].mxu0 }
0x11cc   : > { %v4561_v48 = vpop.f32.mrb[82].mxu0 }
0x11cd   : > { %v4562_v56 = vadd.f32 %v4561_v48, %v4512_v5  ;;  %v6727_v11 = vpop.f32.mrb[83].mxu0 }
0x11d6   : > { %v4625_v13 = vpop.f32.mrb[84].mxu0  ;;  %v4826_v15 = vpop.f32.mrb[84].mxu1 }
0x11d7   : > { %v4632_v16 = vadd.f32 %v4625_v13, %v4559_v9  ;;  %v6736_v19 = vpop.f32.mrb[85].mxu0  ;;  %v6766_v20 = vpop.f32.mrb[85].mxu1 }
0x11d8   : > { %v4628_v22 = vpop.f32.mrb[86].mxu0  ;;  %v4829_v23 = vpop.f32.mrb[86].mxu1 }
0x11d9   : > { %v4633_v42 = vadd.f32 %v4628_v22, %v4562_v56  ;;  %v6737_v63 = vpop.f32.mrb[87].mxu0  ;;  %v6767_v3 = vpop.f32.mrb[87].mxu1 }
0x11da   : > { %v5046_v56 = vpop.permute.xlu0 %5045 }
0x11de   : > { %v5158_v3 = vpop.permute.xlu0 %5157 }
0x11e2   : > { %v4694_v24 = vpop.f32.mrb[88].mxu0  ;;  %v4958_v26 = vpop.f32.mrb[88].mxu1 }
0x11e3   : > { %v4701_v30 = vadd.f32 %v4694_v24, %v4632_v16  ;;  %v6746_v2 = vpop.f32.mrb[89].mxu0  ;;  %v6786_v33 = vpop.f32.mrb[89].mxu1 }
0x11e4   : > { %v4697_v12 = vpop.f32.mrb[90].mxu0  ;;  %v4961_v14 = vpop.f32.mrb[90].mxu1  ;;  %v8916_v33 = vsel %vm870_vm6, %v5158_v3, 0 }
0x11e5   : > { %v4702_v25 = vadd.f32 %v4697_v12, %v4633_v42  ;;  %v6747_v8 = vpop.f32.mrb[91].mxu0  ;;  %v6787_v28 = vpop.f32.mrb[91].mxu1 }
0x11e6   : > { %v5156_v24 = vpop.permute.xlu1 %5155  ;;  %v5310_v8 = vsel %vm9382_vm7, %v8916_v33, 0  ;;  %vm9400_vm7 = vcmask 1031168  }
0x11ee   : > { %v4757_v34 = vpop.f32.mrb[92].mxu0 }
0x11ef   : > { %v4764_v7 = vadd.f32 %v4757_v34, %v4701_v30  ;;  %v6756_v38 = vpop.f32.mrb[93].mxu0  ;;  %v8906_v30 = vsel %vm870_vm6, 0, %v5156_v24 }
0x11f0   : > { %v4760_v39 = vpop.f32.mrb[94].mxu0  ;;  %v5392_v12 = vsel %vm9378_vm13, %v8906_v30, 0  ;;  %v5548_v34 = vsel %vm9384_vm15, %v8906_v30, 0  ;;  %vm9395_vm13 = vcmask 1043456   ;;  %vm9402_vm15 = vcmp.ne.s16.totalorder %v8149_v51, 0 }
0x11f1   : > { %v4765_v41 = vadd.f32 %v4760_v39, %v4702_v25  ;;  %v4833_v45 = vadd.f32 %v4826_v15, %v4764_v7  ;;  %v6757_v47 = vpop.f32.mrb[95].mxu0  ;;  %v5394_v25 = vsel %vm9381_vm4, %v8916_v33, 0  ;;  %v5550_v7 = vsel %vm9385_vm8, %v8916_v33, 0 }
0x11f2   : > { %vm9399_vm4 = vcmp.ne.s16.totalorder %v8033_v21, 0  ;;  %vm5204_vm8 = vcmask 195584   ;;  %v5179_v21 = vld [vmem:[#allocation19] sm:$0xf] }
0x11f3   : > { %v4834_v50 = vadd.f32 %v4829_v23, %v4765_v41  ;;  %v5632_v41 = vsel %vm9389_vm11, %v8906_v30, 0 }
0x11fa   : > { %v4895_v58 = vpop.f32.mrb[96].mxu0 }
0x11fb   : > { %v4902_v53 = vadd.f32 %v4895_v58, %v4833_v45  ;;  %v6776_v44 = vpop.f32.mrb[97].mxu0  ;;  %v5634_v45 = vsel %vm9390_vm10, %v8916_v33, 0  ;;  %vm9407_vm10 = vcmp.ne.s16.totalorder %v8082_v35, 0 }
0x11fc   : > { %v4898_v57 = vpop.f32.mrb[98].mxu0 }
0x11fd   : > { %v4903_v59 = vadd.f32 %v4898_v57, %v4834_v50  ;;  %v4965_v62 = vadd.f32 %v4958_v26, %v4902_v53  ;;  %v6777_v60 = vpop.f32.mrb[99].mxu0  ;;  %v8903_v26 = vsel %vm870_vm6, %v5156_v24, %v5158_v3 }
0x11fe   : > { %v5309_v2 = vsel %vm9376_vm3, %v8903_v26, 0  ;;  %v5393_v28 = vsel %vm9383_vm5, %v8903_v26, 0  ;;  %v5549_v39 = vsel %vm9388_vm12, %v8903_v26, 0  ;;  %v5178_v57 = vsel %vm9393_vm14, %v8903_v26, 0  ;;  %vm9394_vm3 = vmmov %vm9391_vm1 }
0x11ff   : > { %v4966_v55 = vadd.f32 %v4961_v14, %v4903_v59  ;;  %v5308_v14 = vsel %vm9380_vm0, %v8906_v30, 0  ;;  %v5177_v59 = vsel %vm9394_vm3, %v8906_v30, 0  ;;  %vm9397_vm0 = vmmov %vm9395_vm13  ;;  %vm9401_vm5 = vcmp.ne.s16.totalorder %v8056_v29, 0 }
0x1200   : > { %vm9405_vm12 = vcmp.ne.s16.totalorder %v8067_v32, 0  ;;  %vm9410_vm14 = vcmp.ne.s16.totalorder %v8140_v49, 0  ;;  %vm9411_vm3 = vmmov %vm9402_vm15 }
0x1201   : > { %v5788_v35 = vsel %vm9411_vm3, %v8906_v30, 0 }
0x1206   : > { %v5027_v0 = vpop.f32.mrb[100].mxu0 }
0x1207   : > { %v5034_v4 = vadd.f32 %v5027_v0, %v4965_v62  ;;  %v6796_v5 = vpop.f32.mrb[101].mxu0  ;;  %v5259_v0 = vsel %vm9397_vm0, %v5177_v59, 0  ;;  %vm9413_vm0 = vcmp.ne.s16.totalorder %v8162_v54, 0 }
0x1208   : > { %v5030_v6 = vpop.f32.mrb[102].mxu0 }
0x1209   : > { %v5048_v9 = vadd.f32 %v5041_v61, %v5034_v4  ;;  %v5035_v10 = vadd.f32 %v5030_v6, %v4966_v55  ;;  %v6797_v48 = vpop.f32.mrb[103].mxu0 }
0x120b   : > { %v5049_v11 = vadd.f32 %v5046_v56, %v5035_v10  ;;  %v5050_v13 = vmax.f32 %v5048_v9, 0.0 }
0x120d   : > { %v5051_v15 = vmax.f32 %v5049_v11, 0.0 }
0x120f   : > { %v5052_v16 = vpack.c.bf16 %v5051_v15, %v5050_v13  ;;  %v5869_v13 = vld [vmem:[#allocation21] sm:$0xff] }
0x1211   : > { %6372 = vmatmul.mubr.msk.bf16.vlgmr.msra.gmra.mrb[92].mxu1 %vm3501_vm2, %v5052_v16  ;;  %vm9386_vm2 = vcmp.ne.s16.totalorder %v8140_v49, 0 }
0x1212   : > { %5296 = vmatprep.mubr.bf16.mxu1 %v7501_v1  ;;  %v5633_v38 = vsel %vm9386_vm2, %v8903_v26, 0  ;;  %vm9404_vm2 = vcmp.ne.s16.totalorder %v8052_v27, 0 }
0x12e4   : > { %v5138_v19 = vpop.f32.mrb[92].mxu1 }
0x12e5   : > { %v5140_v20 = vpop.f32.mrb[93].mxu1 }
0x12e6   : > { %v5142_v22 = vpop.f32.mrb[94].mxu1 }
0x12e7   : > { %v5147_v23 = vpack.c.bf16 %v5142_v22, %v5138_v19  ;;  %v5144_v42 = vpop.f32.mrb[95].mxu1 }
0x12e8   : > { %v5148_v63 = vpack.c.bf16 %v5144_v42, %v5140_v20 }
0x12e9   : > { %5151 = vrot.lane.b32.xlu1 %v5147_v23, %s9373_s13 }
0x12ea   : > { %5153 = vrot.lane.b32.xlu0 %v5148_v63, %s9373_s13  ;;  %s9387_s13 = smov 96  }
0x12ed   : > { %5194 = vrot.lane.b32.xlu1 %v8903_v26, %s7509_s27 }
0x12ee   : > { %5192 = vrot.lane.b32.xlu0 %v8906_v30, %s7509_s27 }
0x12f1   : > { %5327 = vrot.lane.b32.xlu1 %v5309_v2, %s9377_s4 }
0x12f2   : > { %5196 = vrot.lane.b32.xlu0 %v8916_v33, %s7509_s27 }
0x12f5   : > { %5409 = vrot.lane.b32.xlu1 %v5392_v12, %s9379_s2 }
0x12f6   : > { %5325 = vrot.lane.b32.xlu0 %v5308_v14, %s9377_s4 }
0x12f9   : > { %5413 = vrot.lane.b32.xlu1 %v5394_v25, %s9379_s2 }
0x12fa   : > { %5329 = vrot.lane.b32.xlu0 %v5310_v8, %s9377_s4 }
0x12fd   : > { %5483 = vrot.lane.b32.xlu1 %v8903_v26, %s9372_s1 }
0x12fe   : > { %5411 = vrot.lane.b32.xlu0 %v5393_v28, %s9379_s2 }
0x1301   : > { %5565 = vrot.lane.b32.xlu1 %v5548_v34, %s9346_s26 }
0x1302   : > { %5481 = vrot.lane.b32.xlu0 %v8906_v30, %s9372_s1 }
0x1305   : > { %5569 = vrot.lane.b32.xlu1 %v5550_v7, %s9346_s26 }
0x1306   : > { %5485 = vrot.lane.b32.xlu0 %v8916_v33, %s9372_s1 }
0x1309   : > { %5651 = vrot.lane.b32.xlu1 %v5633_v38, %s9387_s13 }
0x130a   : > { %5567 = vrot.lane.b32.xlu0 %v5549_v39, %s9346_s26 }
0x130e   : > { %5649 = vrot.lane.b32.xlu0 %v5632_v41, %s9387_s13 }
0x1312   : > { %5653 = vrot.lane.b32.xlu0 %v5634_v45, %s9387_s13  ;;  %v5181_v45 = vld [vmem:[#allocation19 + $0x4] sm:$0xf] }
0x135b   : > { %v5152_v47 = vpop.permute.xlu1 %5151 }
0x135c   : > { %v5164_v50 = vsel %vm870_vm6, 0, %v5152_v47  ;;  %v5154_v58 = vpop.permute.xlu0 %5153 }
0x135d   : > { %v5159_v53 = vsel %vm870_vm6, %v5152_v47, %v5154_v58  ;;  %5475 = vrot.lane.b32.xlu0 %v5164_v50, %s9372_s1  ;;  %5186 = vrot.lane.b32.xlu1 %v5164_v50, %s7509_s27  ;;  %v5175_v44 = vsel %vm9391_vm1, %v5164_v50, 0  ;;  %v5170_v62 = vsel %vm870_vm6, %v5154_v58, 0  ;;  %vm9398_vm6 = vmmov %vm9389_vm11  ;;  %v5305_v61 = vsel %vm9399_vm4, %v5164_v50, 0 }
0x135e   : > { %6375 = vmatprep.subr.msk.bf16.mxu1 %vm9392_vm9, %v5159_v53  ;;  %v5629_v5 = vsel %vm9398_vm6, %v5164_v50, 0  ;;  %v5389_v9 = vsel %vm9401_vm5, %v5164_v50, 0  ;;  %v5785_v36 = vsel %vm9402_vm15, %v5164_v50, 0  ;;  %v5307_v10 = vsel %vm9404_vm2, %v5170_v62, 0  ;;  %vm9418_vm5 = vmmov %vm9413_vm0 }
0x135f   : > { %5265 = vmatpush1.bf16.msra.mxu1 %v5175_v44  ;;  %v8991_v55 = vpop.permute.xlu1 %5194  ;;  %v5545_v29 = vsel %vm9405_vm12, %v5164_v50, 0  ;;  %vm9406_vm11 = vcmp.ne.s16.totalorder %v8064_v31, 0  ;;  %v5306_v27 = vsel %vm9407_vm10, %v5159_v53, 0  ;;  %vm9408_vm1 = vcmp.ne.s16.totalorder %v8086_v37, 0 }
0x1360   : > { %6376 = vmatprep.subr.msk.bf16.mxu1 %vm9395_vm13, %v5178_v57  ;;  %v8987_v60 = vpop.permute.xlu0 %5192  ;;  %v5391_v48 = vsel %vm9406_vm11, %v5170_v62, 0  ;;  %v5547_v32 = vsel %vm9408_vm1, %v5170_v62, 0  ;;  %vm9409_vm9 = vcmp.ne.s16.totalorder %v8101_v40, 0  ;;  %v5630_v31 = vsel %vm9410_vm14, %v5159_v53, 0 }
0x1361   : > { %5715 = vrot.lane.b32.xlu1 %v5164_v50, %s9396_s0  ;;  %5190 = vrot.lane.b32.xlu0 %v5170_v62, %s7509_s27  ;;  %v5390_v56 = vsel %vm9409_vm9, %v5159_v53, 0  ;;  %vm9412_vm13 = vcmp.ne.s16.totalorder %v8127_v46, 0  ;;  %v5786_v40 = vsel %vm9413_vm0, %v5159_v53, 0  ;;  %vm9414_vm6 = vcmp.ne.s16.totalorder %v8113_v43, 0  ;;  %v5882_v46 = vld [vmem:[%s9416_s20] sm:$0x3] }
0x1362   : > { %v5546_v37 = vsel %vm9412_vm13, %v5159_v53, 0  ;;  %v5631_v49 = vsel %vm9414_vm6, %v5170_v62, 0  ;;  %vm9415_vm4 = vcmp.ne.s16.totalorder %v8151_v52, 0  ;;  %v5789_v11 = vsel %vm9418_vm5, %v8903_v26, 0 }
0x1363   : > { %5267 = vmatpush1.bf16.msra.mxu1 %v5259_v0  ;;  %v8998_v17 = vpop.permute.xlu1 %5327  ;;  %v5790_v51 = vsel %vm9415_vm4, %v8916_v33, 0  ;;  %vm9419_vm15 = vcmask 1039360   ;;  %vm9423_vm10 = vcmask 1043456   ;;  %vm9425_vm9 = vcmask 1031168  }
0x1364   : > { %v8994_v18 = vpop.permute.xlu0 %5196  ;;  %vm9420_vm2 = vmmov %vm9419_vm15  ;;  %vm9429_vm0 = vcmask 916480  }
0x1365   : > { %5477 = vrot.lane.b32.xlu0 %v5159_v53, %s9372_s1  ;;  %5188 = vrot.lane.b32.xlu1 %v5159_v53, %s7509_s27  ;;  %s9403_s27 = smov 94   ;;  %vm9421_vm12 = vmmov %vm9420_vm2 }
0x1366   : > { %6377 = vmatmul.mubr.msk.bf16.vlgmr.msra.gmra.mrb[96].mxu1 %vm5204_vm8, %v5179_v21  ;;  %v5200_v34 = vsel %vm9421_vm12, %v8987_v60, %v8991_v55  ;;  %vm9422_vm11 = vmmov %vm9420_vm2 }
0x1367   : > { %5462 = vmatprep.mubr.bf16.mxu1 %v7501_v1  ;;  %v5410_v16 = vpop.permute.xlu1 %5409  ;;  %v5201_v7 = vsel %vm9422_vm11, %v8991_v55, %v8994_v18  ;;  %vm9424_vm1 = vmmov %vm9423_vm10 }
0x1368   : > { %v5326_v4 = vpop.permute.xlu0 %5325  ;;  %v5209_v41 = vsel %vm9424_vm1, %v5200_v34, 0  ;;  %vm9426_vm14 = vmmov %vm9425_vm9 }
0x1369   : > { %v9006_v6 = vsel %vm9400_vm7, %v5326_v4, %v8998_v17  ;;  %5643 = vrot.lane.b32.xlu0 %v5629_v5, %s9387_s13  ;;  %5319 = vrot.lane.b32.xlu1 %v5305_v61, %s9377_s4  ;;  %vm9417_vm7 = vmmov %vm9415_vm4 }
0x136a   : > { %v5787_v43 = vsel %vm9417_vm7, %v5170_v62, 0  ;;  %vm9427_vm3 = vmmov %vm9425_vm9 }
0x136b   : > { %v5414_v20 = vpop.permute.xlu1 %5413  ;;  %vm9428_vm13 = vmmov %vm9424_vm1 }
0x136c   : > { %v5330_v15 = vpop.permute.xlu0 %5329  ;;  %vm9430_vm6 = vmmov %vm9429_vm0 }
0x136d   : > { %5719 = vrot.lane.b32.xlu0 %v5170_v62, %s9396_s0  ;;  %5403 = vrot.lane.b32.xlu1 %v5389_v9, %s9379_s2  ;;  %v5334_v4 = vsel %vm9427_vm3, %v8998_v17, %v5330_v15  ;;  %vm9431_vm4 = vmmov %vm9424_vm1 }
0x136e   : > { %v5341_v21 = vsel %vm9431_vm4, %v9006_v6, 0  ;;  %vm9432_vm7 = vmmov %vm9429_vm0 }
0x136f   : > { %v9077_v23 = vpop.permute.xlu1 %5483  ;;  %vm9433_vm5 = vmmov %vm9429_vm0 }
0x1370   : > { %v5412_v19 = vpop.permute.xlu0 %5411  ;;  %vm9436_vm12 = vmmov %vm9424_vm1 }
0x1371   : > { %5799 = vrot.lane.b32.xlu0 %v5785_v36, %s9403_s27  ;;  %5479 = vrot.lane.b32.xlu1 %v5170_v62, %s9372_s1 }
0x1373   : > { %v9081_v42 = vpop.permute.xlu1 %5565 }
0x1374   : > { %v9075_v22 = vpop.permute.xlu0 %5481 }
0x1375   : > { %5323 = vrot.lane.b32.xlu0 %v5307_v10, %s9377_s4  ;;  %5559 = vrot.lane.b32.xlu1 %v5545_v29, %s9346_s26  ;;  %v5417_v10 = vsel %vm9432_vm7, %v5410_v16, %v5412_v19  ;;  %v5418_v29 = vsel %vm9433_vm5, %v5412_v19, %v5414_v20  ;;  %vm9447_vm7 = vcmask 785408  }
0x1377   : > { %v9085_v54 = vpop.permute.xlu1 %5569 }
0x1378   : > { %v9079_v52 = vpop.permute.xlu0 %5485 }
0x1379   : > { %5407 = vrot.lane.b32.xlu0 %v5391_v48, %s9379_s2  ;;  %5717 = vrot.lane.b32.xlu1 %v5159_v53, %s9396_s0  ;;  %v5312_v48 = vld [vmem:[#allocation19 + $0x8] sm:$0xf] }
0x137b   : > { %v9089_v24 = vpop.permute.xlu1 %5651 }
0x137c   : > { %v9083_v63 = vpop.permute.xlu0 %5567 }
0x137d   : > { %5723 = vrot.lane.b32.xlu0 %v8903_v26, %s9396_s0  ;;  %5321 = vrot.lane.b32.xlu1 %v5306_v27, %s9377_s4  ;;  %s9470_s4 = sld [smem:[#allocation41_spill]] }
0x1380   : > { %v9087_v3 = vpop.permute.xlu0 %5649 }
0x1381   : > { %5563 = vrot.lane.b32.xlu0 %v5547_v32, %s9346_s26  ;;  %5405 = vrot.lane.b32.xlu1 %v5390_v56, %s9379_s2  ;;  %v5425_v32 = vsel %vm9436_vm12, %v5417_v10, 0 }
0x1383   : > { %s839_s2 = scalar_lea.vmem %s9470_s4, %s6398_s29 }
0x1384   : > { %v9091_v26 = vpop.permute.xlu0 %5653 }
0x1385   : > { %5645 = vrot.lane.b32.xlu0 %v5630_v31, %s9387_s13  ;;  %5721 = vrot.lane.b32.xlu1 %v8906_v30, %s9396_s0 }
0x1389   : > { %5805 = vrot.lane.b32.xlu0 %v5788_v35, %s9403_s27  ;;  %5561 = vrot.lane.b32.xlu1 %v5546_v37, %s9346_s26  ;;  %v5396_v37 = vld [vmem:[#allocation19 + $0xc] sm:$0xf] }
0x138d   : > { %5801 = vrot.lane.b32.xlu0 %v5786_v40, %s9403_s27  ;;  %5647 = vrot.lane.b32.xlu1 %v5631_v49, %s9387_s13 }
0x1391   : > { %5809 = vrot.lane.b32.xlu0 %v5790_v51, %s9403_s27  ;;  %5725 = vrot.lane.b32.xlu1 %v8916_v33, %s9396_s0 }
0x1395   : > { %5885 = vperm.xlu0 %7003, %v5882_v46   ;;  %5803 = vrot.lane.b32.xlu1 %v5787_v43, %s9403_s27 }
0x1399   : > { %5807 = vrot.lane.b32.xlu1 %v5789_v11, %s9403_s27 }
0x139d   : > { %5872 = vperm.xlu1 %7004, %v5869_v13   ;;  %v5474_v13 = vld [vmem:[#allocation19 + $0x10] sm:$0xf] }
0x13cf   : > { %v5187_v30 = vpop.permute.xlu1 %5186  ;;  %v5476_v2 = vpop.permute.xlu0 %5475 }
0x13d3   : > { %v9093_v33 = vpop.permute.xlu1 %5715  ;;  %v5191_v12 = vpop.permute.xlu0 %5190 }
0x13d7   : > { %v5189_v14 = vpop.permute.xlu1 %5188  ;;  %v5478_v25 = vpop.permute.xlu0 %5477 }
0x13d8   : > { %v5198_v8 = vsel %vm9419_vm15, %v5187_v30, %v5189_v14  ;;  %v5199_v28 = vsel %vm9420_vm2, %v5189_v14, %v5191_v12  ;;  %vm9434_vm15 = vcmask 908288   ;;  %vm9435_vm2 = vmmov %vm9424_vm1  ;;  %v5636_v12 = vld [vmem:[#allocation19 + $0x18] sm:$0xf] }
0x13d9   : > { %5214 = vmatprep.subr.bf16.mxu0 %v5199_v28  ;;  %vm9437_vm11 = vmmov %vm9434_vm15  ;;  %v5714_v28 = vld [vmem:[#allocation19 + $0x1c] sm:$0xf] }
0x13da   : > { %5215 = vmatpush1.bf16.msra.mxu0 %v5198_v8  ;;  %v5487_v56 = vsel %vm9437_vm11, %v5476_v2, %v5478_v25  ;;  %vm9446_vm4 = vmmov %vm9435_vm2 }
0x13db   : > { %v5320_v38 = vpop.permute.xlu1 %5319  ;;  %6373 = vmatprep.subr.msk.bf16.mxu0 %vm9423_vm10, %v5201_v7  ;;  %v9104_v39 = vpop.permute.xlu0 %5643  ;;  %vm9438_vm10 = vmmov %vm9437_vm11  ;;  %vm9452_vm11 = vcmask 777216  }
0x13dc   : > { %v5489_v6 = vsel %vm9438_vm10, %v9075_v22, %v9077_v23  ;;  %vm9439_vm1 = vmmov %vm9438_vm10 }
0x13dd   : > { %v5490_v35 = vsel %vm9439_vm1, %v9077_v23, %v9079_v52  ;;  %vm9448_vm5 = vmmov %vm9435_vm2 }
0x13de   : > { %5217 = vmatpush1.bf16.msra.mxu0 %v5209_v41  ;;  %vm9453_vm10 = vmmov %vm9446_vm4 }
0x13df   : > { %v5404_v47 = vpop.permute.xlu1 %5403  ;;  %v9107_v50 = vpop.permute.xlu0 %5719  ;;  %vm9454_vm1 = vmmov %vm9446_vm4 }
0x13e1   : > { %6374 = vmatmul.mubr.msk.bf16.vlgmr.msra.gmra.mrb[104].mxu0 %vm5204_vm8, %v5181_v45  ;;  %v5792_v45 = vld [vmem:[#allocation19 + $0x20] sm:$0xf] }
0x13e2   : > { %5378 = vmatprep.mubr.bf16.mxu0 %v7501_v1 }
0x13e3   : > { %v5480_v58 = vpop.permute.xlu1 %5479  ;;  %v9111_v53 = vpop.permute.xlu0 %5799 }
0x13e4   : > { %v5488_v17 = vsel %vm9434_vm15, %v5478_v25, %v5480_v58  ;;  %vm9449_vm15 = vmmov %vm9447_vm7 }
0x13e7   : > { %v5560_v44 = vpop.permute.xlu1 %5559  ;;  %v5324_v57 = vpop.permute.xlu0 %5323 }
0x13eb   : > { %v9113_v59 = vpop.permute.xlu1 %5717  ;;  %v5408_v62 = vpop.permute.xlu0 %5407 }
0x13ef   : > { %v5322_v60 = vpop.permute.xlu1 %5321  ;;  %v9115_v55 = vpop.permute.xlu0 %5723 }
0x13f0   : > { %v5331_v0 = vsel %vm9425_vm9, %v5320_v38, %v5322_v60  ;;  %v5332_v18 = vsel %vm9426_vm14, %v5322_v60, %v5324_v57  ;;  %vm9440_vm9 = vmmov %vm9435_vm2  ;;  %vm9441_vm14 = vcmask 900096  }
0x13f1   : > { %5346 = vmatprep.subr.bf16.mxu0 %v5332_v18  ;;  %vm9442_vm3 = vmmov %vm9441_vm14 }
0x13f2   : > { %5347 = vmatpush1.bf16.msra.mxu0 %v5331_v0 }
0x13f3   : > { %v5406_v5 = vpop.permute.xlu1 %5405  ;;  %6378 = vmatprep.subr.msk.bf16.mxu0 %vm9428_vm13, %v5334_v4  ;;  %v5564_v61 = vpop.permute.xlu0 %5563  ;;  %vm9443_vm13 = vmmov %vm9435_vm2 }
0x13f4   : > { %v5415_v9 = vsel %vm9429_vm0, %v5404_v47, %v5406_v5  ;;  %v5416_v36 = vsel %vm9430_vm6, %v5406_v5, %v5408_v62  ;;  %v5497_v46 = vsel %vm9443_vm13, %v5489_v6, 0  ;;  %vm9444_vm0 = vmmov %vm9442_vm3 }
0x13f5   : > { %5430 = vmatprep.subr.bf16.mxu1 %v5416_v36  ;;  %v5573_v43 = vsel %vm9444_vm0, %v9081_v42, %v9083_v63  ;;  %vm9445_vm6 = vmmov %vm9444_vm0  ;;  %v5728_v42 = vsel %vm9452_vm11, %v9113_v59, %v9107_v50  ;;  %vm9459_vm0 = vcmask 769024  }
0x13f6   : > { %5349 = vmatpush1.bf16.msra.mxu0 %v5341_v21  ;;  %5431 = vmatpush1.bf16.msra.mxu1 %v5415_v9  ;;  %v5574_v11 = vsel %vm9445_vm6, %v9083_v63, %v9085_v54  ;;  %v5581_v20 = vsel %vm9448_vm5, %v5573_v43, 0  ;;  %v5552_v63 = vld [vmem:[#allocation19 + $0x14] sm:$0xf]  ;;  %vm9458_vm13 = vmmov %vm9454_vm1 }
0x13f7   : > { %v5722_v27 = vpop.permute.xlu1 %5721  ;;  %6380 = vmatprep.subr.msk.bf16.mxu1 %vm9435_vm2, %v5418_v29  ;;  %5502 = vmatprep.subr.bf16.mxu0 %v5488_v17  ;;  %v5646_v31 = vpop.permute.xlu0 %5645  ;;  %vm9450_vm2 = vmmov %vm9447_vm7 }
0x13f8   : > { %v5655_v22 = vsel %vm9449_vm15, %v9104_v39, %v5646_v31  ;;  %v5657_v23 = vsel %vm9450_vm2, %v9087_v3, %v9089_v24  ;;  %vm9451_vm12 = vmmov %vm9450_vm2 }
0x13f9   : > { %6379 = vmatmul.mubr.msk.bf16.vlgmr.msra.gmra.mrb[108].mxu0 %vm5204_vm8, %v5312_v48  ;;  %v5658_v52 = vsel %vm9451_vm12, %v9089_v24, %v9091_v26  ;;  %v5665_v30 = vsel %vm9454_vm1, %v5657_v23, 0  ;;  %vm9460_vm6 = vmmov %vm9454_vm1 }
0x13fa   : > { %5433 = vmatpush1.bf16.msra.mxu1 %v5425_v32  ;;  %5503 = vmatpush1.bf16.msra.mxu0 %v5487_v56  ;;  %vm9463_vm5 = vmmov %vm9459_vm0 }
0x13fb   : > { %v5562_v40 = vpop.permute.xlu1 %5561  ;;  %6382 = vmatprep.subr.msk.bf16.mxu0 %vm9440_vm9, %v5490_v35  ;;  %5534 = vmatprep.mubr.bf16.mxu0 %v7501_v1  ;;  %v5806_v15 = vpop.permute.xlu0 %5805  ;;  %vm9455_vm9 = vmmov %vm9452_vm11  ;;  %vm9469_vm11 = vcmask 64512  }
0x13fc   : > { %v5571_v49 = vsel %vm9441_vm14, %v5560_v44, %v5562_v40  ;;  %v5572_v51 = vsel %vm9442_vm3, %v5562_v40, %v5564_v61  ;;  %v5727_v3 = vsel %vm9455_vm9, %v9093_v33, %v9113_v59  ;;  %vm9456_vm14 = vmmov %vm9455_vm9 }
0x13fd   : > { %6381 = vmatmul.mubr.msk.bf16.vlgmr.msra.gmra.mrb[100].mxu1 %vm5204_vm8, %v5396_v37  ;;  %5586 = vmatprep.subr.bf16.mxu1 %v5572_v51  ;;  %v5729_v26 = vsel %vm9456_vm14, %v5722_v27, %v9115_v55  ;;  %vm9457_vm3 = vmmov %vm9455_vm9 }
0x13fe   : > { %5505 = vmatpush1.bf16.msra.mxu0 %v5497_v46  ;;  %5587 = vmatpush1.bf16.msra.mxu1 %v5571_v49  ;;  %v5737_v33 = vsel %vm9460_vm6, %v5729_v26, 0  ;;  %vm9464_vm15 = vmmov %vm9454_vm1 }
0x13ff   : > { %v5648_v16 = vpop.permute.xlu1 %5647  ;;  %6384 = vmatprep.subr.msk.bf16.mxu1 %vm9446_vm4, %v5574_v11  ;;  %5618 = vmatprep.mubr.bf16.mxu1 %v7501_v1  ;;  %v5802_v24 = vpop.permute.xlu0 %5801  ;;  %vm9461_vm4 = vmmov %vm9459_vm0 }
0x1400   : > { %v5656_v19 = vsel %vm9447_vm7, %v5646_v31, %v5648_v16  ;;  %v5811_v8 = vsel %vm9461_vm4, %v9111_v53, %v5802_v24  ;;  %vm9462_vm7 = vmmov %vm9459_vm0 }
0x1401   : > { %6383 = vmatmul.mubr.msk.bf16.vlgmr.msra.gmra.mrb[112].mxu0 %vm5204_vm8, %v5474_v13  ;;  %5670 = vmatprep.subr.bf16.mxu0 %v5656_v19  ;;  %vm9465_vm2 = vmmov %vm9454_vm1 }
0x1402   : > { %5589 = vmatpush1.bf16.msra.mxu1 %v5581_v20  ;;  %5671 = vmatpush1.bf16.msra.mxu0 %v5655_v22  ;;  %vm9467_vm12 = vmmov %vm9454_vm1 }
0x1403   : > { %v5726_v54 = vpop.permute.xlu1 %5725  ;;  %6386 = vmatprep.subr.msk.bf16.mxu0 %vm9453_vm10, %v5658_v52  ;;  %5742 = vmatprep.subr.bf16.mxu1 %v5728_v42  ;;  %v5810_v34 = vpop.permute.xlu0 %5809 }
0x1404   : > { %5702 = vmatprep.mubr.bf16.mxu0 %v7501_v1  ;;  %v5730_v2 = vsel %vm9457_vm3, %v9115_v55, %v5726_v54 }
0x1405   : > { %6385 = vmatmul.mubr.msk.bf16.vlgmr.msra.gmra.mrb[104].mxu1 %vm5204_vm8, %v5552_v63 }
0x1406   : > { %5673 = vmatpush1.bf16.msra.mxu0 %v5665_v30  ;;  %5743 = vmatpush1.bf16.msra.mxu1 %v5727_v3 }
0x1407   : > { %v5804_v14 = vpop.permute.xlu1 %5803  ;;  %6388 = vmatprep.subr.msk.bf16.mxu1 %vm9458_vm13, %v5730_v2  ;;  %5774 = vmatprep.mubr.bf16.mxu1 %v7501_v1 }
0x1408   : > { %v5812_v25 = vsel %vm9459_vm0, %v5802_v24, %v5804_v14 }
0x1409   : > { %6387 = vmatmul.mubr.msk.bf16.vlgmr.msra.gmra.mrb[116].mxu0 %vm5204_vm8, %v5636_v12  ;;  %5826 = vmatprep.subr.bf16.mxu0 %v5812_v25 }
0x140a   : > { %5745 = vmatpush1.bf16.msra.mxu1 %v5737_v33  ;;  %5827 = vmatpush1.bf16.msra.mxu0 %v5811_v8 }
0x140b   : > { %v5808_v7 = vpop.permute.xlu1 %5807  ;;  %5858 = vmatprep.mubr.bf16.mxu0 %v7501_v1 }
0x140c   : > { %v5813_v38 = vsel %vm9462_vm7, %v5806_v15, %v5808_v7  ;;  %v5814_v39 = vsel %vm9463_vm5, %v5808_v7, %v5810_v34 }
0x140d   : > { %v5821_v41 = vsel %vm9464_vm15, %v5813_v38, 0  ;;  %6389 = vmatmul.mubr.msk.bf16.vlgmr.msra.gmra.mrb[108].mxu1 %vm5204_vm8, %v5714_v28  ;;  %6390 = vmatprep.subr.msk.bf16.mxu0 %vm9465_vm2, %v5814_v39  ;;  %v5881_v38 = vld [vmem:[%s9468_s30] sm:$0x1] }
0x140e   : > { %5829 = vmatpush1.bf16.msra.mxu0 %v5821_v41  ;;  %5929 = vmatprep.mubr.bf16.mxu1 %v7501_v1 }
0x1411   : > { %6391 = vmatmul.mubr.msk.bf16.vlgmr.msra.gmra.mrb[120].mxu0 %vm5204_vm8, %v5792_v45  ;;  %vm9466_vm8 = vmmov %vm9454_vm1 }
0x1414   : > { %v5886_v39 = vpop.permute.xlu0 %5885 }
0x141c   : > { %v5873_v24 = vpop.permute.xlu1 %5872 }
0x1439   : > { %v5298_v47 = vpop.f32.mrb[96].mxu1 }
0x143a   : > { %v5300_v50 = vpop.f32.mrb[97].mxu1 }
0x143b   : > { %v5302_v58 = vpop.f32.mrb[98].mxu1 }
0x143c   : > { %v5303_v53 = vpop.f32.mrb[99].mxu1 }
0x14b4   : > { %v5248_v44 = vpop.f32.mrb[104].mxu0 }
0x14b5   : > { %v5250_v57 = vpop.f32.mrb[105].mxu0  ;;  %v5299_v59 = vadd.f32 %v5298_v47, %v5248_v44 }
0x14b6   : > { %v5252_v62 = vpop.f32.mrb[106].mxu0  ;;  %v5301_v60 = vadd.f32 %v5300_v50, %v5250_v57 }
0x14b7   : > { %v5253_v55 = vpop.f32.mrb[107].mxu0 }
0x14cc   : > { %v5380_v0 = vpop.f32.mrb[108].mxu0 }
0x14cd   : > { %v5387_v18 = vadd.f32 %v5380_v0, %v5299_v59  ;;  %v5382_v4 = vpop.f32.mrb[109].mxu0 }
0x14ce   : > { %v5388_v5 = vadd.f32 %v5382_v4, %v5301_v60  ;;  %v5384_v61 = vpop.f32.mrb[110].mxu0 }
0x14cf   : > { %v5385_v9 = vpop.f32.mrb[111].mxu0 }
0x14d0   : > { %v5464_v36 = vpop.f32.mrb[100].mxu1 }
0x14d1   : > { %v5471_v1 = vadd.f32 %v5464_v36, %v5387_v18  ;;  %v5466_v21 = vpop.f32.mrb[101].mxu1 }
0x14d2   : > { %v5472_v10 = vadd.f32 %v5466_v21, %v5388_v5  ;;  %v5468_v29 = vpop.f32.mrb[102].mxu1 }
0x14d3   : > { %v5469_v17 = vpop.f32.mrb[103].mxu1 }
0x14d4   : > { %v5536_v48 = vpop.f32.mrb[112].mxu0 }
0x14d5   : > { %v5543_v27 = vadd.f32 %v5536_v48, %v5471_v1  ;;  %v5538_v32 = vpop.f32.mrb[113].mxu0 }
0x14d6   : > { %v5544_v56 = vadd.f32 %v5538_v32, %v5472_v10  ;;  %v5540_v31 = vpop.f32.mrb[114].mxu0 }
0x14d7   : > { %v5541_v6 = vpop.f32.mrb[115].mxu0 }
0x14d8   : > { %v5620_v35 = vpop.f32.mrb[104].mxu1 }
0x14d9   : > { %v5627_v37 = vadd.f32 %v5620_v35, %v5543_v27  ;;  %v5622_v40 = vpop.f32.mrb[105].mxu1 }
0x14da   : > { %v5628_v49 = vadd.f32 %v5622_v40, %v5544_v56  ;;  %v5624_v51 = vpop.f32.mrb[106].mxu1 }
0x14db   : > { %v5625_v46 = vpop.f32.mrb[107].mxu1 }
0x14dc   : > { %v5704_v43 = vpop.f32.mrb[116].mxu0 }
0x14dd   : > { %v5711_v11 = vadd.f32 %v5704_v43, %v5627_v37  ;;  %v5706_v13 = vpop.f32.mrb[117].mxu0 }
0x14de   : > { %v5712_v15 = vadd.f32 %v5706_v13, %v5628_v49  ;;  %v5708_v16 = vpop.f32.mrb[118].mxu0 }
0x14df   : > { %v5709_v19 = vpop.f32.mrb[119].mxu0 }
0x14e0   : > { %v5776_v20 = vpop.f32.mrb[108].mxu1 }
0x14e1   : > { %v5783_v22 = vadd.f32 %v5776_v20, %v5711_v11  ;;  %v5778_v23 = vpop.f32.mrb[109].mxu1 }
0x14e2   : > { %v5784_v52 = vadd.f32 %v5778_v23, %v5712_v15  ;;  %v5780_v42 = vpop.f32.mrb[110].mxu1 }
0x14e3   : > { %v5781_v63 = vpop.f32.mrb[111].mxu1 }
0x14e4   : > { %v5860_v54 = vpop.f32.mrb[120].mxu0 }
0x14e5   : > { %v5867_v30 = vadd.f32 %v5860_v54, %v5783_v22  ;;  %v5862_v3 = vpop.f32.mrb[121].mxu0 }
0x14e6   : > { %v5868_v26 = vadd.f32 %v5862_v3, %v5784_v52  ;;  %v5864_v2 = vpop.f32.mrb[122].mxu0 }
0x14e7   : > { %v5875_v12 = vadd.f32 %v5873_v24, %v5867_v30  ;;  %v5865_v14 = vpop.f32.mrb[123].mxu0 }
0x14e8   : > { %v5876_v25 = vadd.f32 %v5873_v24, %v5868_v26 }
0x14e9   : > { %v5877_v33 = vmax.f32 %v5875_v12, 0.0 }
0x14ea   : > { %v5878_v8 = vmax.f32 %v5876_v25, 0.0 }
0x14eb   : > { %v5879_v28 = vpack.c.bf16 %v5877_v33, %v5877_v33 }
0x14ec   : > { %v5880_v34 = vpack.c.bf16 %v5878_v8, %v5878_v8 }
0x14ed   : > { %v5892_v7 = vsel %vm9466_vm8, %v5879_v28, 0 }
0x14ee   : > { %6392 = vmatprep.subr.msk.bf16.mxu1 %vm9467_vm12, %v5880_v34 }
0x14ef   : > { %5898 = vmatpush1.bf16.msra.mxu1 %v5892_v7 }
0x14f2   : > { %6393 = vmatmul.mubr.msk.bf16.vlgmr.msra.gmra.mrb[112].mxu1 %vm9469_vm11, %v5881_v38 }
0x15c5   : > { %v5931_v41 = vpop.f32.mrb[112].mxu1 }
0x15c6   : > { %v5932_v45 = vadd.f32 %v5931_v41, %v5886_v39  ;;  %v5933_v47 = vpop.f32.mrb[113].mxu1 }
0x15c7   : > { %v5934_v50 = vadd.f32 %v5933_v47, %v5886_v39  ;;  %v5935_v58 = vpop.f32.mrb[114].mxu1 }
0x15c8   : > { %v5936_v53 = vpop.f32.mrb[115].mxu1 }
0x15c9   : > { %v5940_v44 = vcombine.low %v5932_v45, %v5934_v50 }
0x15cb   : > { %6394 = vst.sshfl [vmem:[%s839_s2] sm:$0x33 pattern:$0x76325410] %v5940_v44 }
0x15cc PF: > { %s9471_s13 = sld [smem:[#allocation29_spill]] }
0x15d2   : > { %s38_s2 = sadd.s32 1, %s9471_s13  }
0x15d3   : > { %p35_p7 = scmp.ge.s32.totalorder %s38_s2, 4  }
0x15d5   :  { %37 = sbr.rel (!%p35_p7) target bundleno = 20 (0x14), region = 243 }
0x15dc   :  { %5971 = vsyncpa [#allocation3], 1 }
0x15dd   :  { %5973 = vsyncpa [#allocation3 + $0x1], 1 }
0x15de   :  { %5974 = vsyncpa [#allocation5], 1 }
0x15df   :  { %5975 = vsyncpa [#allocation8], 1 }
0x15e0   :  { %5976 = vsyncpa [#allocation11], 1 }
0x15e1   :  { %5977 = vsyncpa [#allocation14], 1 }
0x15e2   :  { %5978 = vsyncpa [#allocation17], 1 }
0x15e3   :  { %5979 = vsyncpa [#allocation20], 1 }

</bundles_post_ra>
